<compile_context>
chip_gen: v7x
topology: tpu7x:2x2x1
jax: 0.10.0
libtpu: 0.0.40
codegen_flags: <defaults>
</compile_context>

<pallas_src>
import functools

import jax
import jax.numpy as jnp
from jax.experimental import pallas as pl
from jax.experimental.pallas import tpu as pltpu


def _round_up(x, m):
    return (x + m - 1) // m * m


# ----------------------------------------------------------------------------
# Kernel 1: dense matmul + bias (hoisted LSTM input projections, final linear)
# ----------------------------------------------------------------------------
def _matmul_bias_kernel(x_ref, w_ref, b_ref, o_ref):
    o_ref[...] = (jnp.dot(x_ref[...], w_ref[...], preferred_element_type=jnp.float32)
                  + b_ref[...])


def matmul_bias_pallas(x, w, b_row, tm_max=512):
    """x: (M, K) f32, w: (K, N) f32, b_row: (1, N) f32 -> (M, N) f32, tiled over M."""
    M, K = x.shape
    N = w.shape[1]
    M8 = _round_up(M, 8)
    tm = M8 if M8 <= tm_max else tm_max
    Mp = _round_up(M8, tm)
    if Mp != M:
        x = jnp.pad(x, ((0, Mp - M), (0, 0)))
    out = pl.pallas_call(
        _matmul_bias_kernel,
        out_shape=jax.ShapeDtypeStruct((Mp, N), jnp.float32),
        grid_spec=pltpu.PrefetchScalarGridSpec(
            num_scalar_prefetch=0,
            grid=(Mp // tm,),
            in_specs=[pl.BlockSpec((tm, K), lambda i: (i, 0)),
                      pl.BlockSpec((K, N), lambda i: (0, 0)),
                      pl.BlockSpec((1, N), lambda i: (0, 0))],
            out_specs=pl.BlockSpec((tm, N), lambda i: (i, 0))),
        compiler_params=pltpu.CompilerParams(dimension_semantics=("parallel",)),
    )(x, w, b_row)
    return out if Mp == M else out[:M]


# ----------------------------------------------------------------------------
# Kernel 2: two-operand accumulating matmul + bias (folds the [kin | vid] feature concat
#           into the decoder input projection: x1 @ w1 + x2 @ w2 + b)
# ----------------------------------------------------------------------------
def _matmul2_bias_kernel(x1_ref, w1_ref, x2_ref, w2_ref, b_ref, o_ref):
    acc = jnp.dot(x1_ref[...], w1_ref[...], preferred_element_type=jnp.float32)
    acc = acc + jnp.dot(x2_ref[...], w2_ref[...], preferred_element_type=jnp.float32)
    o_ref[...] = acc + b_ref[...]


def matmul2_bias_pallas(x1, w1, x2, w2, b_row, tm_max=512):
    M, K1 = x1.shape
    K2 = x2.shape[1]
    N = w1.shape[1]
    M8 = _round_up(M, 8)
    tm = M8 if M8 <= tm_max else tm_max
    Mp = _round_up(M8, tm)
    if Mp != M:
        x1 = jnp.pad(x1, ((0, Mp - M), (0, 0)))
        x2 = jnp.pad(x2, ((0, Mp - M), (0, 0)))
    out = pl.pallas_call(
        _matmul2_bias_kernel,
        out_shape=jax.ShapeDtypeStruct((Mp, N), jnp.float32),
        grid_spec=pltpu.PrefetchScalarGridSpec(
            num_scalar_prefetch=0,
            grid=(Mp // tm,),
            in_specs=[pl.BlockSpec((tm, K1), lambda i: (i, 0)),
                      pl.BlockSpec((K1, N), lambda i: (0, 0)),
                      pl.BlockSpec((tm, K2), lambda i: (i, 0)),
                      pl.BlockSpec((K2, N), lambda i: (0, 0)),
                      pl.BlockSpec((1, N), lambda i: (0, 0))],
            out_specs=pl.BlockSpec((tm, N), lambda i: (i, 0))),
        compiler_params=pltpu.CompilerParams(dimension_semantics=("parallel",)),
    )(x1, w1, x2, w2, b_row)
    return out if Mp == M else out[:M]


# ----------------------------------------------------------------------------
# Kernel 3: fused bidirectional LSTM recurrence (whole sequence resident in VMEM)
#
# Gate lane layout (8H lanes):
#   [ i_f | f_f | o_f | i_b | f_b | o_b | g_f | g_b ]   (H lanes each)
# so one sigmoid covers lanes [0:6H] and one tanh covers lanes [6H:8H].
# W_hh is block-diagonal in this layout: rows [0:H] (hf) feed only forward gate columns,
# rows [H:2H] (hb) feed only backward gate columns -> ONE matmul serves both directions.
# ----------------------------------------------------------------------------
def _bilstm_rec_kernel(gx_ref, whh_ref, len_ref, o_ref):
    """gx_ref: (T, B, 8H) precomputed x @ W_ih + b (both directions, interleaved layout).
    whh_ref: (2H, 8H) block-diagonal recurrent weight.  len_ref: (B, 1) int32 valid lengths.
    o_ref: (T, B, 2H) with forward hidden in [..., :H], backward in [..., H:] (-1 at pad)."""
    T, B, G8 = gx_ref.shape
    H = G8 // 8

    whh = whh_ref[...]                         # loop-invariant loads, hoisted
    lens = len_ref[...]                        # (B, 1) int32
    lane = jax.lax.broadcasted_iota(jnp.int32, (B, G8), 1)
    # Forward-direction gate lanes: [0:3H] (i_f,f_f,o_f) and [6H:7H] (g_f).
    fwd_lane = (lane < 3 * H) | ((lane >= 6 * H) & (lane < 7 * H))

    def step(t, carry):
        h_cat, cf, cb = carry                  # h_cat: (B, 2H) = [hf | hb]
        tb = T - 1 - t

        # Forward gate pre-acts come from time t, backward from time tb: one lane select.
        gx_sel = jnp.where(fwd_lane, gx_ref[t], gx_ref[tb])          # (B, 8H)
        pre = gx_sel + jnp.dot(h_cat, whh, preferred_element_type=jnp.float32)

        s = jax.nn.sigmoid(pre[:, :6 * H])     # one wide EUP push: i_f,f_f,o_f,i_b,f_b,o_b
        g = jnp.tanh(pre[:, 6 * H:])           # one wide EUP push: g_f, g_b
        i_f, f_f, o_f = s[:, :H], s[:, H:2 * H], s[:, 2 * H:3 * H]
        i_b, f_b, o_b = s[:, 3 * H:4 * H], s[:, 4 * H:5 * H], s[:, 5 * H:6 * H]
        g_f, g_b = g[:, :H], g[:, H:]

        # -- forward chain at time t (causal: padded steps cannot affect valid outputs).
        cf = f_f * cf + i_f * g_f
        hf = o_f * jnp.tanh(cf)
        o_ref[t, :, :H] = jnp.where(t < lens, hf, -1.0)              # pad_packed padding = -1

        # -- backward chain at time tb: keep state zero while tb >= length so the recurrence
        #    effectively starts at tb == length - 1 (exact packed bidirectional-LSTM semantics).
        cb_new = f_b * cb + i_b * g_b
        hb_new = o_b * jnp.tanh(cb_new)
        valid_b = tb < lens                                           # (B, 1) bool
        hb = jnp.where(valid_b, hb_new, 0.0)
        cb = jnp.where(valid_b, cb_new, 0.0)
        o_ref[tb, :, H:] = jnp.where(valid_b, hb, -1.0)

        return jnp.concatenate([hf, hb], axis=1), cf, cb

    z2 = jnp.zeros((B, 2 * H), jnp.float32)
    z1 = jnp.zeros((B, H), jnp.float32)
    jax.lax.fori_loop(0, T, step, (z2, z1, z1), unroll=min(T, 8))


def bilstm_recurrence(gx_tm, whh_cat, lens_col):
    """gx_tm: (T, Bp, 8H) hoisted input projection -> (T, Bp, 2H) [fwd | bwd] hidden sequence."""
    T, Bp, G8 = gx_tm.shape
    H = G8 // 8
    return pl.pallas_call(
        _bilstm_rec_kernel,
        out_shape=jax.ShapeDtypeStruct((T, Bp, 2 * H), jnp.float32),
    )(gx_tm, whh_cat, lens_col)


# ----------------------------------------------------------------------------
# Parameter init (deterministic, PyTorch-style U(-1/sqrt(H), 1/sqrt(H)))
# ----------------------------------------------------------------------------
def _split_gates(w):
    """Split a (..., 4H) tensor stored in PyTorch gate order [i, f, g, o]."""
    H = w.shape[-1] // 4
    return w[..., :H], w[..., H:2 * H], w[..., 2 * H:3 * H], w[..., 3 * H:]


def _interleave_gate_cols(wf, wb):
    """(..., 4H) fwd + (..., 4H) bwd (torch order [i,f,g,o]) -> (..., 8H) kernel layout
    [i_f, f_f, o_f, i_b, f_b, o_b, g_f, g_b]."""
    i_f, f_f, g_f, o_f = _split_gates(wf)
    i_b, f_b, g_b, o_b = _split_gates(wb)
    return jnp.concatenate([i_f, f_f, o_f, i_b, f_b, o_b, g_f, g_b], axis=-1)


def init_bilstm_params(key, input_dim, hidden_dim):
    """NOTE for importing real nn.LSTM weights: torch stores weight_ih_l0 as (4H, D) and
    weight_hh_l0 as (4H, H) (plus *_reverse) in gate order [i,f,g,o] -> transpose to (D,4H)/(H,4H),
    sum the two biases, then apply the SAME _interleave_gate_cols permutation used here."""
    bound = 1.0 / (hidden_dim ** 0.5)
    ks = jax.random.split(key, 8)

    def u(k, shape):
        return jax.random.uniform(k, shape, jnp.float32, -bound, bound)

    H = hidden_dim
    w_ih_f = u(ks[0], (input_dim, 4 * H))
    w_hh_f = u(ks[1], (H, 4 * H))
    b_f = u(ks[2], (1, 4 * H)) + u(ks[3], (1, 4 * H))          # b_ih + b_hh
    w_ih_b = u(ks[4], (input_dim, 4 * H))
    w_hh_b = u(ks[5], (H, 4 * H))
    b_b = u(ks[6], (1, 4 * H)) + u(ks[7], (1, 4 * H))

    zf = jnp.zeros_like(w_hh_f)
    whh_cat = jnp.concatenate([_interleave_gate_cols(w_hh_f, zf),    # rows [0:H]  -> fwd cols
                               _interleave_gate_cols(zf, w_hh_b)],   # rows [H:2H] -> bwd cols
                              axis=0)                                # (2H, 8H) block-diagonal
    return dict(
        wih=_interleave_gate_cols(w_ih_f, w_ih_b),   # (D, 8H)
        b=_interleave_gate_cols(b_f, b_b),           # (1, 8H)
        whh=whh_cat,                                 # (2H, 8H)
    )


def init_params(key, kin_dim, vid_dim, kin_hid, vid_hid, dec_hid, num_classes, lane_pad=128):
    k1, k2, k3, k4 = jax.random.split(key, 4)
    dec_in = 2 * (kin_hid + vid_hid)              # include_video == 1 -> dim_factor = 1
    kin_p = init_bilstm_params(k1, kin_dim, kin_hid)
    vid_p = init_bilstm_params(k2, vid_dim, vid_hid)
    dec_p = init_bilstm_params(k3, dec_in, dec_hid)
    # Split the decoder input-projection rows so the [kin_out | vid_out] concat is folded into
    # two accumulating matmuls instead of an HBM concat of all encoder activations.
    dec_p['wih_kin'] = dec_p['wih'][:2 * kin_hid]
    dec_p['wih_vid'] = dec_p['wih'][2 * kin_hid:]
    del dec_p['wih']

    lin_in = 2 * dec_hid
    lb = 1.0 / (lin_in ** 0.5)
    kw, kb = jax.random.split(k4)
    c_pad = _round_up(num_classes, lane_pad)
    lin_w = jax.random.uniform(kw, (lin_in, num_classes), jnp.float32, -lb, lb)
    lin_b = jax.random.uniform(kb, (num_classes,), jnp.float32, -lb, lb)
    # Pad the tiny class dim to a full 128-lane store; sliced back to num_classes outside.
    lin_w_pad = jnp.zeros((lin_in, c_pad), jnp.float32).at[:, :num_classes].set(lin_w)
    lin_b_pad = jnp.zeros((1, c_pad), jnp.float32).at[:, :num_classes].set(lin_b)
    return dict(kin=kin_p, vid=vid_p, dec=dec_p, lin_w_pad=lin_w_pad, lin_b_pad=lin_b_pad)


# ----------------------------------------------------------------------------
# Model forward (mirrors RecognitionModel.forward; lstm encoder + lstm decoder, include_video=1)
# ----------------------------------------------------------------------------
def recognition_forward(params, kin_in, vid_in, mask, *, num_classes):
    B, T = mask.shape
    Bp = _round_up(B, 8)                          # pad batch to a full 8-sublane tile
    lengths = jnp.sum(mask, axis=-1).astype(jnp.int32)                # (B,)
    lens_col = jnp.zeros((Bp, 1), jnp.int32).at[:B, 0].set(lengths)   # padded rows -> length 0

    # Keep activations time-major end-to-end; only the raw inputs and the final permute transpose.
    kin_tm = jnp.transpose(kin_in, (2, 0, 1))                         # (B, Ck, T) -> (T, B, Ck)
    vid_tm = jnp.transpose(vid_in[0], (1, 0, 2))                      # (B, T, Cv) -> (T, B, Cv)
    if Bp != B:
        pad = ((0, 0), (0, Bp - B), (0, 0))
        kin_tm = jnp.pad(kin_tm, pad)
        vid_tm = jnp.pad(vid_tm, pad)

    Hk = params['kin']['whh'].shape[0] // 2
    Hv = params['vid']['whh'].shape[0] // 2
    Hd = params['dec']['whh'].shape[0] // 2

    # TODO(synk): on v7x (2 TensorCores) dispatch the two independent encoders to separate cores
    # via pl.core_map; a single stream is already optimal on v5e/v6e.
    gx_kin = matmul_bias_pallas(kin_tm.reshape(T * Bp, -1),
                                params['kin']['wih'], params['kin']['b'])     # (T*Bp, 8Hk)
    kin_out = bilstm_recurrence(gx_kin.reshape(T, Bp, 8 * Hk),
                                params['kin']['whh'], lens_col)               # (T, Bp, 2Hk)

    gx_vid = matmul_bias_pallas(vid_tm.reshape(T * Bp, -1),
                                params['vid']['wih'], params['vid']['b'])     # (T*Bp, 8Hv)
    vid_out = bilstm_recurrence(gx_vid.reshape(T, Bp, 8 * Hv),
                                params['vid']['whh'], lens_col)               # (T, Bp, 2Hv)

    # Decoder input projection with the feature concat folded into two accumulating matmuls.
    gx_dec = matmul2_bias_pallas(kin_out.reshape(T * Bp, 2 * Hk), params['dec']['wih_kin'],
                                 vid_out.reshape(T * Bp, 2 * Hv), params['dec']['wih_vid'],
                                 params['dec']['b'])                          # (T*Bp, 8Hd)
    dec = bilstm_recurrence(gx_dec.reshape(T, Bp, 8 * Hd),
                            params['dec']['whh'], lens_col)                   # (T, Bp, 2Hd)

    logits = matmul_bias_pallas(dec.reshape(T * Bp, 2 * Hd),
                                params['lin_w_pad'], params['lin_b_pad'])     # (T*Bp, 128)
    out = logits[:, :num_classes].reshape(T, Bp, num_classes)[:, :B]          # drop batch pad
    # NOTE: pad_packed_sequence trims to max(lengths); we keep the static T (== max here) so the
    # whole forward is jit-able with static shapes (padded positions hold linear(-1 padding)).
    return [jnp.transpose(out, (1, 2, 0))]                                    # (B, num_classes, T)


# ----------------------------------------------------------------------------
if __name__ == "__main__":
    B, T = 2, 8
    KIN_DIM, VID_DIM = 12, 20
    KIN_HID, VID_HID, DEC_HID = 16, 16, 32
    NUM_CLASSES = 6

    root = jax.random.PRNGKey(0)
    kp, kk, kv = jax.random.split(root, 3)
    params = init_params(kp, KIN_DIM, VID_DIM, KIN_HID, VID_HID, DEC_HID, NUM_CLASSES)

    kin_in = jax.random.normal(kk, (B, KIN_DIM, T), jnp.float32)          # (B, C_kin, T)
    vid_in = [jax.random.normal(kv, (B, T, VID_DIM), jnp.float32)]        # list of one tensor
    lengths = jnp.array([8, 6], dtype=jnp.int32)
    mask = (jnp.arange(T)[None, :] < lengths[:, None]).astype(jnp.float32)   # (B, T)

    fwd = jax.jit(functools.partial(recognition_forward, num_classes=NUM_CLASSES))
    out = fwd(params, kin_in, vid_in, mask)
    out = [jax.block_until_ready(o) for o in out]

    assert out[0].shape == (B, NUM_CLASSES, T), out[0].shape
    assert jnp.all(jnp.isfinite(out[0]))
    print("KERNEL_OK")
</pallas_src>

<mosaic_0001>
module attributes {stable_mosaic.version = 11 : i64} {
  func.func @_matmul_bias_kernel(%arg0: i32, %arg1: memref<64x20xf32, #tpu.memory_space<vmem>>, %arg2: memref<20x128xf32, #tpu.memory_space<vmem>>, %arg3: memref<1x128xf32, #tpu.memory_space<vmem>>, %arg4: memref<64x128xf32, #tpu.memory_space<vmem>>) attributes {dimension_semantics = [#tpu.dimension_semantics<parallel>], iteration_bounds = array<i64: 1>, scalar_prefetch = 0 : i64, scratch_operands = 0 : i64, tpu.core_type = #tpu.core_type<tc>, window_params = [{transform_indices = @transform_0, window_bounds = array<i64: 64, 20>}, {pipeline_mode = #tpu.pipeline_mode<synchronous>, transform_indices = @transform_1, window_bounds = array<i64: 20, 128>}, {pipeline_mode = #tpu.pipeline_mode<synchronous>, transform_indices = @transform_2, window_bounds = array<i64: 1, 128>}, {transform_indices = @transform_3, window_bounds = array<i64: 64, 128>}]} {
    %c0 = arith.constant 0 : index
    %c0_0 = arith.constant 0 : index
    %0 = vector.load %arg1[%c0, %c0_0] : memref<64x20xf32, #tpu.memory_space<vmem>>, vector<64x20xf32>
    %c0_1 = arith.constant 0 : index
    %c0_2 = arith.constant 0 : index
    %1 = vector.load %arg2[%c0_1, %c0_2] : memref<20x128xf32, #tpu.memory_space<vmem>>, vector<20x128xf32>
    %cst = arith.constant dense<0.000000e+00> : vector<64x128xf32>
    %2 = tpu.matmul %0, %1, %cst {dimension_numbers = #tpu.dot_dimension_numbers<[1], [0], [0], [1], [0, 0, 1, 1], [], []>} : vector<64x20xf32>, vector<20x128xf32>, vector<64x128xf32> -> vector<64x128xf32>
    %c0_3 = arith.constant 0 : index
    %c0_4 = arith.constant 0 : index
    %3 = vector.load %arg3[%c0_3, %c0_4] : memref<1x128xf32, #tpu.memory_space<vmem>>, vector<1x128xf32>
    %4 = vector.broadcast %3 : vector<1x128xf32> to vector<64x128xf32>
    %5 = arith.addf %2, %4 : vector<64x128xf32>
    %c0_5 = arith.constant 0 : index
    %c0_6 = arith.constant 0 : index
    %6 = vector.load %arg4[%c0_5, %c0_6] : memref<64x128xf32, #tpu.memory_space<vmem>>, vector<64x128xf32>
    tpu.vector_store %arg4[%c0_5, %c0_6], %5 {strides = array<i32>} : memref<64x128xf32, #tpu.memory_space<vmem>>, vector<64x128xf32>,
    return
  }
  func.func @transform_0(%arg0: i32) -> (i32, i32) {
    %c0_i32 = arith.constant 0 : i32
    %c0_i32_0 = arith.constant 0 : i32
    return %arg0, %c0_i32 : i32, i32
  }
  func.func @transform_1(%arg0: i32) -> (i32, i32) {
    %c0_i32 = arith.constant 0 : i32
    %c0_i32_0 = arith.constant 0 : i32
    %c0_i32_1 = arith.constant 0 : i32
    return %c0_i32, %c0_i32_0 : i32, i32
  }
  func.func @transform_2(%arg0: i32) -> (i32, i32) {
    %c0_i32 = arith.constant 0 : i32
    %c0_i32_0 = arith.constant 0 : i32
    %c0_i32_1 = arith.constant 0 : i32
    return %c0_i32, %c0_i32_0 : i32, i32
  }
  func.func @transform_3(%arg0: i32) -> (i32, i32) {
    %c0_i32 = arith.constant 0 : i32
    %c0_i32_0 = arith.constant 0 : i32
    return %arg0, %c0_i32 : i32, i32
  }
}

module attributes {stable_mosaic.version = 11 : i64} {
  func.func @_matmul_bias_kernel(%arg0: i32, %arg1: memref<64x12xf32, #tpu.memory_space<vmem>>, %arg2: memref<12x128xf32, #tpu.memory_space<vmem>>, %arg3: memref<1x128xf32, #tpu.memory_space<vmem>>, %arg4: memref<64x128xf32, #tpu.memory_space<vmem>>) attributes {dimension_semantics = [#tpu.dimension_semantics<parallel>], iteration_bounds = array<i64: 1>, scalar_prefetch = 0 : i64, scratch_operands = 0 : i64, tpu.core_type = #tpu.core_type<tc>, window_params = [{transform_indices = @transform_0, window_bounds = array<i64: 64, 12>}, {pipeline_mode = #tpu.pipeline_mode<synchronous>, transform_indices = @transform_1, window_bounds = array<i64: 12, 128>}, {pipeline_mode = #tpu.pipeline_mode<synchronous>, transform_indices = @transform_2, window_bounds = array<i64: 1, 128>}, {transform_indices = @transform_3, window_bounds = array<i64: 64, 128>}]} {
    %c0 = arith.constant 0 : index
    %c0_0 = arith.constant 0 : index
    %0 = vector.load %arg1[%c0, %c0_0] : memref<64x12xf32, #tpu.memory_space<vmem>>, vector<64x12xf32>
    %c0_1 = arith.constant 0 : index
    %c0_2 = arith.constant 0 : index
    %1 = vector.load %arg2[%c0_1, %c0_2] : memref<12x128xf32, #tpu.memory_space<vmem>>, vector<12x128xf32>
    %cst = arith.constant dense<0.000000e+00> : vector<64x128xf32>
    %2 = tpu.matmul %0, %1, %cst {dimension_numbers = #tpu.dot_dimension_numbers<[1], [0], [0], [1], [0, 0, 1, 1], [], []>} : vector<64x12xf32>, vector<12x128xf32>, vector<64x128xf32> -> vector<64x128xf32>
    %c0_3 = arith.constant 0 : index
    %c0_4 = arith.constant 0 : index
    %3 = vector.load %arg3[%c0_3, %c0_4] : memref<1x128xf32, #tpu.memory_space<vmem>>, vector<1x128xf32>
    %4 = vector.broadcast %3 : vector<1x128xf32> to vector<64x128xf32>
    %5 = arith.addf %2, %4 : vector<64x128xf32>
    %c0_5 = arith.constant 0 : index
    %c0_6 = arith.constant 0 : index
    %6 = vector.load %arg4[%c0_5, %c0_6] : memref<64x128xf32, #tpu.memory_space<vmem>>, vector<64x128xf32>
    tpu.vector_store %arg4[%c0_5, %c0_6], %5 {strides = array<i32>} : memref<64x128xf32, #tpu.memory_space<vmem>>, vector<64x128xf32>,
    return
  }
  func.func @transform_0(%arg0: i32) -> (i32, i32) {
    %c0_i32 = arith.constant 0 : i32
    %c0_i32_0 = arith.constant 0 : i32
    return %arg0, %c0_i32 : i32, i32
  }
  func.func @transform_1(%arg0: i32) -> (i32, i32) {
    %c0_i32 = arith.constant 0 : i32
    %c0_i32_0 = arith.constant 0 : i32
    %c0_i32_1 = arith.constant 0 : i32
    return %c0_i32, %c0_i32_0 : i32, i32
  }
  func.func @transform_2(%arg0: i32) -> (i32, i32) {
    %c0_i32 = arith.constant 0 : i32
    %c0_i32_0 = arith.constant 0 : i32
    %c0_i32_1 = arith.constant 0 : i32
    return %c0_i32, %c0_i32_0 : i32, i32
  }
  func.func @transform_3(%arg0: i32) -> (i32, i32) {
    %c0_i32 = arith.constant 0 : i32
    %c0_i32_0 = arith.constant 0 : i32
    return %arg0, %c0_i32 : i32, i32
  }
}

module attributes {stable_mosaic.version = 11 : i64} {
  func.func @_matmul2_bias_kernel(%arg0: i32, %arg1: memref<64x32xf32, #tpu.memory_space<vmem>>, %arg2: memref<32x256xf32, #tpu.memory_space<vmem>>, %arg3: memref<64x32xf32, #tpu.memory_space<vmem>>, %arg4: memref<32x256xf32, #tpu.memory_space<vmem>>, %arg5: memref<1x256xf32, #tpu.memory_space<vmem>>, %arg6: memref<64x256xf32, #tpu.memory_space<vmem>>) attributes {dimension_semantics = [#tpu.dimension_semantics<parallel>], iteration_bounds = array<i64: 1>, scalar_prefetch = 0 : i64, scratch_operands = 0 : i64, tpu.core_type = #tpu.core_type<tc>, window_params = [{transform_indices = @transform_0, window_bounds = array<i64: 64, 32>}, {pipeline_mode = #tpu.pipeline_mode<synchronous>, transform_indices = @transform_1, window_bounds = array<i64: 32, 256>}, {transform_indices = @transform_2, window_bounds = array<i64: 64, 32>}, {pipeline_mode = #tpu.pipeline_mode<synchronous>, transform_indices = @transform_3, window_bounds = array<i64: 32, 256>}, {pipeline_mode = #tpu.pipeline_mode<synchronous>, transform_indices = @transform_4, window_bounds = array<i64: 1, 256>}, {transform_indices = @transform_5, window_bounds = array<i64: 64, 256>}]} {
    %c0 = arith.constant 0 : index
    %c0_0 = arith.constant 0 : index
    %0 = vector.load %arg1[%c0, %c0_0] : memref<64x32xf32, #tpu.memory_space<vmem>>, vector<64x32xf32>
    %c0_1 = arith.constant 0 : index
    %c0_2 = arith.constant 0 : index
    %1 = vector.load %arg2[%c0_1, %c0_2] : memref<32x256xf32, #tpu.memory_space<vmem>>, vector<32x256xf32>
    %cst = arith.constant dense<0.000000e+00> : vector<64x256xf32>
    %2 = tpu.matmul %0, %1, %cst {dimension_numbers = #tpu.dot_dimension_numbers<[1], [0], [0], [1], [0, 0, 1, 1], [], []>} : vector<64x32xf32>, vector<32x256xf32>, vector<64x256xf32> -> vector<64x256xf32>
    %c0_3 = arith.constant 0 : index
    %c0_4 = arith.constant 0 : index
    %3 = vector.load %arg3[%c0_3, %c0_4] : memref<64x32xf32, #tpu.memory_space<vmem>>, vector<64x32xf32>
    %c0_5 = arith.constant 0 : index
    %c0_6 = arith.constant 0 : index
    %4 = vector.load %arg4[%c0_5, %c0_6] : memref<32x256xf32, #tpu.memory_space<vmem>>, vector<32x256xf32>
    %cst_7 = arith.constant dense<0.000000e+00> : vector<64x256xf32>
    %5 = tpu.matmul %3, %4, %cst_7 {dimension_numbers = #tpu.dot_dimension_numbers<[1], [0], [0], [1], [0, 0, 1, 1], [], []>} : vector<64x32xf32>, vector<32x256xf32>, vector<64x256xf32> -> vector<64x256xf32>
    %6 = arith.addf %2, %5 : vector<64x256xf32>
    %c0_8 = arith.constant 0 : index
    %c0_9 = arith.constant 0 : index
    %7 = vector.load %arg5[%c0_8, %c0_9] : memref<1x256xf32, #tpu.memory_space<vmem>>, vector<1x256xf32>
    %8 = vector.broadcast %7 : vector<1x256xf32> to vector<64x256xf32>
    %9 = arith.addf %6, %8 : vector<64x256xf32>
    %c0_10 = arith.constant 0 : index
    %c0_11 = arith.constant 0 : index
    %10 = vector.load %arg6[%c0_10, %c0_11] : memref<64x256xf32, #tpu.memory_space<vmem>>, vector<64x256xf32>
    tpu.vector_store %arg6[%c0_10, %c0_11], %9 {strides = array<i32>} : memref<64x256xf32, #tpu.memory_space<vmem>>, vector<64x256xf32>,
    return
  }
  func.func @transform_0(%arg0: i32) -> (i32, i32) {
    %c0_i32 = arith.constant 0 : i32
    %c0_i32_0 = arith.constant 0 : i32
    return %arg0, %c0_i32 : i32, i32
  }
  func.func @transform_1(%arg0: i32) -> (i32, i32) {
    %c0_i32 = arith.constant 0 : i32
    %c0_i32_0 = arith.constant 0 : i32
    %c0_i32_1 = arith.constant 0 : i32
    return %c0_i32, %c0_i32_0 : i32, i32
  }
  func.func @transform_2(%arg0: i32) -> (i32, i32) {
    %c0_i32 = arith.constant 0 : i32
    %c0_i32_0 = arith.constant 0 : i32
    return %arg0, %c0_i32 : i32, i32
  }
  func.func @transform_3(%arg0: i32) -> (i32, i32) {
    %c0_i32 = arith.constant 0 : i32
    %c0_i32_0 = arith.constant 0 : i32
    %c0_i32_1 = arith.constant 0 : i32
    return %c0_i32, %c0_i32_0 : i32, i32
  }
  func.func @transform_4(%arg0: i32) -> (i32, i32) {
    %c0_i32 = arith.constant 0 : i32
    %c0_i32_0 = arith.constant 0 : i32
    %c0_i32_1 = arith.constant 0 : i32
    return %c0_i32, %c0_i32_0 : i32, i32
  }
  func.func @transform_5(%arg0: i32) -> (i32, i32) {
    %c0_i32 = arith.constant 0 : i32
    %c0_i32_0 = arith.constant 0 : i32
    return %arg0, %c0_i32 : i32, i32
  }
}

module attributes {stable_mosaic.version = 11 : i64} {
  func.func @_bilstm_rec_kernel(%arg0: memref<8x8x128xf32, #tpu.memory_space<vmem>>, %arg1: memref<32x128xf32, #tpu.memory_space<vmem>>, %arg2: memref<8x1xi32, #tpu.memory_space<vmem>>, %arg3: memref<8x8x32xf32, #tpu.memory_space<vmem>>) attributes {dimension_semantics = [], scalar_prefetch = 0 : i64, scratch_operands = 0 : i64, tpu.core_type = #tpu.core_type<tc>} {
    %c0 = arith.constant 0 : index
    %c0_0 = arith.constant 0 : index
    %0 = vector.load %arg1[%c0, %c0_0] : memref<32x128xf32, #tpu.memory_space<vmem>>, vector<32x128xf32>
    %c0_1 = arith.constant 0 : index
    %c0_2 = arith.constant 0 : index
    %1 = vector.load %arg2[%c0_1, %c0_2] : memref<8x1xi32, #tpu.memory_space<vmem>>, vector<8x1xi32>
    %2 = tpu.iota {dimensions = array<i32: 1>} : vector<8x128xi32>
    %c48_i32 = arith.constant 48 : i32
    %3 = vector.broadcast %c48_i32 : i32 to vector<8x128xi32>
    %4 = arith.cmpi slt, %2, %3 : vector<8x128xi32>
    %c96_i32 = arith.constant 96 : i32
    %5 = vector.broadcast %c96_i32 : i32 to vector<8x128xi32>
    %6 = arith.cmpi sge, %2, %5 : vector<8x128xi32>
    %c112_i32 = arith.constant 112 : i32
    %7 = vector.broadcast %c112_i32 : i32 to vector<8x128xi32>
    %8 = arith.cmpi slt, %2, %7 : vector<8x128xi32>
    %9 = arith.andi %6, %8 : vector<8x128xi1>
    %10 = arith.ori %4, %9 : vector<8x128xi1>
    %cst = arith.constant 0.000000e+00 : f32
    %11 = vector.broadcast %cst : f32 to vector<8x32xf32>
    %cst_3 = arith.constant 0.000000e+00 : f32
    %12 = vector.broadcast %cst_3 : f32 to vector<8x16xf32>
    %c0_i32 = arith.constant 0 : i32
    %c7_i32 = arith.constant 7 : i32
    %13 = arith.subi %c7_i32, %c0_i32 : i32
    %14 = arith.index_cast %c0_i32 : i32 to index
    %c0_4 = arith.constant 0 : index
    %c0_5 = arith.constant 0 : index
    %15 = vector.load %arg0[%14, %c0_4, %c0_5] : memref<8x8x128xf32, #tpu.memory_space<vmem>>, vector<1x8x128xf32>
    %16 = vector.shape_cast %15 : vector<1x8x128xf32> to vector<8x128xf32>
    %17 = arith.index_cast %13 : i32 to index
    %c0_6 = arith.constant 0 : index
    %c0_7 = arith.constant 0 : index
    %18 = vector.load %arg0[%17, %c0_6, %c0_7] : memref<8x8x128xf32, #tpu.memory_space<vmem>>, vector<1x8x128xf32>
    %19 = vector.shape_cast %18 : vector<1x8x128xf32> to vector<8x128xf32>
    %20 = arith.select %10, %16, %19 : vector<8x128xi1>, vector<8x128xf32>
    %cst_8 = arith.constant dense<0.000000e+00> : vector<8x128xf32>
    %21 = tpu.matmul %11, %0, %cst_8 {dimension_numbers = #tpu.dot_dimension_numbers<[1], [0], [0], [1], [0, 0, 1, 1], [], []>} : vector<8x32xf32>, vector<32x128xf32>, vector<8x128xf32> -> vector<8x128xf32>
    %22 = arith.addf %20, %21 : vector<8x128xf32>
    %23 = vector.extract_strided_slice %22 {offsets = [0, 0], sizes = [8, 96], strides = [1, 1]} : vector<8x128xf32> to vector<8x96xf32>
    %24 = arith.negf %23 : vector<8x96xf32>
    %25 = math.exp %24 : vector<8x96xf32>
    %cst_9 = arith.constant 1.000000e+00 : f32
    %26 = vector.broadcast %cst_9 : f32 to vector<8x96xf32>
    %27 = arith.addf %26, %25 : vector<8x96xf32>
    %28 = arith.divf %26, %27 : vector<8x96xf32>
    %29 = vector.extract_strided_slice %22 {offsets = [0, 96], sizes = [8, 32], strides = [1, 1]} : vector<8x128xf32> to vector<8x32xf32>
    %30 = math.tanh %29 : vector<8x32xf32>
    %31 = vector.extract_strided_slice %28 {offsets = [0, 0], sizes = [8, 16], strides = [1, 1]} : vector<8x96xf32> to vector<8x16xf32>
    %32 = vector.extract_strided_slice %28 {offsets = [0, 16], sizes = [8, 16], strides = [1, 1]} : vector<8x96xf32> to vector<8x16xf32>
    %33 = vector.extract_strided_slice %28 {offsets = [0, 32], sizes = [8, 16], strides = [1, 1]} : vector<8x96xf32> to vector<8x16xf32>
    %34 = vector.extract_strided_slice %28 {offsets = [0, 48], sizes = [8, 16], strides = [1, 1]} : vector<8x96xf32> to vector<8x16xf32>
    %35 = vector.extract_strided_slice %28 {offsets = [0, 64], sizes = [8, 16], strides = [1, 1]} : vector<8x96xf32> to vector<8x16xf32>
    %36 = vector.extract_strided_slice %28 {offsets = [0, 80], sizes = [8, 16], strides = [1, 1]} : vector<8x96xf32> to vector<8x16xf32>
    %37 = vector.extract_strided_slice %30 {offsets = [0, 0], sizes = [8, 16], strides = [1, 1]} : vector<8x32xf32> to vector<8x16xf32>
    %38 = vector.extract_strided_slice %30 {offsets = [0, 16], sizes = [8, 16], strides = [1, 1]} : vector<8x32xf32> to vector<8x16xf32>
    %39 = arith.mulf %32, %12 : vector<8x16xf32>
    %40 = arith.mulf %31, %37 : vector<8x16xf32>
    %41 = arith.addf %39, %40 : vector<8x16xf32>
    %42 = math.tanh %41 : vector<8x16xf32>
    %43 = arith.mulf %33, %42 : vector<8x16xf32>
    %44 = vector.broadcast %c0_i32 : i32 to vector<8x1xi32>
    %45 = arith.cmpi slt, %44, %1 : vector<8x1xi32>
    %cst_10 = arith.constant -1.000000e+00 : f32
    %46 = vector.shape_cast %45 : vector<8x1xi1> to vector<8x1xi1>
    %47 = vector.broadcast %46 : vector<8x1xi1> to vector<8x16xi1>
    %48 = vector.broadcast %cst_10 : f32 to vector<8x16xf32>
    %49 = arith.select %47, %43, %48 : vector<8x16xi1>, vector<8x16xf32>
    %50 = arith.index_cast %c0_i32 : i32 to index
    %c0_11 = arith.constant 0 : index
    %c0_12 = arith.constant 0 : index
    %51 = vector.load %arg3[%50, %c0_11, %c0_12] : memref<8x8x32xf32, #tpu.memory_space<vmem>>, vector<1x8x16xf32>
    %52 = vector.shape_cast %51 : vector<1x8x16xf32> to vector<8x16xf32>
    %53 = vector.shape_cast %49 : vector<8x16xf32> to vector<1x8x16xf32>
    tpu.vector_store %arg3[%50, %c0_11, %c0_12], %53 {strides = array<i32>} : memref<8x8x32xf32, #tpu.memory_space<vmem>>, vector<1x8x16xf32>,
    %54 = arith.mulf %35, %12 : vector<8x16xf32>
    %55 = arith.mulf %34, %38 : vector<8x16xf32>
    %56 = arith.addf %54, %55 : vector<8x16xf32>
    %57 = math.tanh %56 : vector<8x16xf32>
    %58 = arith.mulf %36, %57 : vector<8x16xf32>
    %59 = vector.broadcast %13 : i32 to vector<8x1xi32>
    %60 = arith.cmpi slt, %59, %1 : vector<8x1xi32>
    %cst_13 = arith.constant 0.000000e+00 : f32
    %61 = vector.shape_cast %60 : vector<8x1xi1> to vector<8x1xi1>
    %62 = vector.broadcast %61 : vector<8x1xi1> to vector<8x16xi1>
    %63 = vector.broadcast %cst_13 : f32 to vector<8x16xf32>
    %64 = arith.select %62, %58, %63 : vector<8x16xi1>, vector<8x16xf32>
    %cst_14 = arith.constant 0.000000e+00 : f32
    %65 = vector.shape_cast %60 : vector<8x1xi1> to vector<8x1xi1>
    %66 = vector.broadcast %65 : vector<8x1xi1> to vector<8x16xi1>
    %67 = vector.broadcast %cst_14 : f32 to vector<8x16xf32>
    %68 = arith.select %66, %56, %67 : vector<8x16xi1>, vector<8x16xf32>
    %cst_15 = arith.constant -1.000000e+00 : f32
    %69 = vector.shape_cast %60 : vector<8x1xi1> to vector<8x1xi1>
    %70 = vector.broadcast %69 : vector<8x1xi1> to vector<8x16xi1>
    %71 = vector.broadcast %cst_15 : f32 to vector<8x16xf32>
    %72 = arith.select %70, %64, %71 : vector<8x16xi1>, vector<8x16xf32>
    %73 = arith.index_cast %13 : i32 to index
    %c0_16 = arith.constant 0 : index
    %c16 = arith.constant 16 : index
    %74 = vector.load %arg3[%73, %c0_16, %c16] : memref<8x8x32xf32, #tpu.memory_space<vmem>>, vector<1x8x16xf32>
    %75 = vector.shape_cast %74 : vector<1x8x16xf32> to vector<8x16xf32>
    %76 = vector.shape_cast %72 : vector<8x16xf32> to vector<1x8x16xf32>
    tpu.vector_store %arg3[%73, %c0_16, %c16], %76 {strides = array<i32>} : memref<8x8x32xf32, #tpu.memory_space<vmem>>, vector<1x8x16xf32>,
    %77 = tpu.concatenate %43, %64 in 1 : vector<8x16xf32>, vector<8x16xf32> -> vector<8x32xf32>
    %c1_i32 = arith.constant 1 : i32
    %c7_i32_17 = arith.constant 7 : i32
    %78 = arith.subi %c7_i32_17, %c1_i32 : i32
    %79 = arith.index_cast %c1_i32 : i32 to index
    %c0_18 = arith.constant 0 : index
    %c0_19 = arith.constant 0 : index
    %80 = vector.load %arg0[%79, %c0_18, %c0_19] : memref<8x8x128xf32, #tpu.memory_space<vmem>>, vector<1x8x128xf32>
    %81 = vector.shape_cast %80 : vector<1x8x128xf32> to vector<8x128xf32>
    %82 = arith.index_cast %78 : i32 to index
    %c0_20 = arith.constant 0 : index
    %c0_21 = arith.constant 0 : index
    %83 = vector.load %arg0[%82, %c0_20, %c0_21] : memref<8x8x128xf32, #tpu.memory_space<vmem>>, vector<1x8x128xf32>
    %84 = vector.shape_cast %83 : vector<1x8x128xf32> to vector<8x128xf32>
    %85 = arith.select %10, %81, %84 : vector<8x128xi1>, vector<8x128xf32>
    %cst_22 = arith.constant dense<0.000000e+00> : vector<8x128xf32>
    %86 = tpu.matmul %77, %0, %cst_22 {dimension_numbers = #tpu.dot_dimension_numbers<[1], [0], [0], [1], [0, 0, 1, 1], [], []>} : vector<8x32xf32>, vector<32x128xf32>, vector<8x128xf32> -> vector<8x128xf32>
    %87 = arith.addf %85, %86 : vector<8x128xf32>
    %88 = vector.extract_strided_slice %87 {offsets = [0, 0], sizes = [8, 96], strides = [1, 1]} : vector<8x128xf32> to vector<8x96xf32>
    %89 = arith.negf %88 : vector<8x96xf32>
    %90 = math.exp %89 : vector<8x96xf32>
    %cst_23 = arith.constant 1.000000e+00 : f32
    %91 = vector.broadcast %cst_23 : f32 to vector<8x96xf32>
    %92 = arith.addf %91, %90 : vector<8x96xf32>
    %93 = arith.divf %91, %92 : vector<8x96xf32>
    %94 = vector.extract_strided_slice %87 {offsets = [0, 96], sizes = [8, 32], strides = [1, 1]} : vector<8x128xf32> to vector<8x32xf32>
    %95 = math.tanh %94 : vector<8x32xf32>
    %96 = vector.extract_strided_slice %93 {offsets = [0, 0], sizes = [8, 16], strides = [1, 1]} : vector<8x96xf32> to vector<8x16xf32>
    %97 = vector.extract_strided_slice %93 {offsets = [0, 16], sizes = [8, 16], strides = [1, 1]} : vector<8x96xf32> to vector<8x16xf32>
    %98 = vector.extract_strided_slice %93 {offsets = [0, 32], sizes = [8, 16], strides = [1, 1]} : vector<8x96xf32> to vector<8x16xf32>
    %99 = vector.extract_strided_slice %93 {offsets = [0, 48], sizes = [8, 16], strides = [1, 1]} : vector<8x96xf32> to vector<8x16xf32>
    %100 = vector.extract_strided_slice %93 {offsets = [0, 64], sizes = [8, 16], strides = [1, 1]} : vector<8x96xf32> to vector<8x16xf32>
    %101 = vector.extract_strided_slice %93 {offsets = [0, 80], sizes = [8, 16], strides = [1, 1]} : vector<8x96xf32> to vector<8x16xf32>
    %102 = vector.extract_strided_slice %95 {offsets = [0, 0], sizes = [8, 16], strides = [1, 1]} : vector<8x32xf32> to vector<8x16xf32>
    %103 = vector.extract_strided_slice %95 {offsets = [0, 16], sizes = [8, 16], strides = [1, 1]} : vector<8x32xf32> to vector<8x16xf32>
    %104 = arith.mulf %97, %41 : vector<8x16xf32>
    %105 = arith.mulf %96, %102 : vector<8x16xf32>
    %106 = arith.addf %104, %105 : vector<8x16xf32>
    %107 = math.tanh %106 : vector<8x16xf32>
    %108 = arith.mulf %98, %107 : vector<8x16xf32>
    %109 = vector.broadcast %c1_i32 : i32 to vector<8x1xi32>
    %110 = arith.cmpi slt, %109, %1 : vector<8x1xi32>
    %cst_24 = arith.constant -1.000000e+00 : f32
    %111 = vector.shape_cast %110 : vector<8x1xi1> to vector<8x1xi1>
    %112 = vector.broadcast %111 : vector<8x1xi1> to vector<8x16xi1>
    %113 = vector.broadcast %cst_24 : f32 to vector<8x16xf32>
    %114 = arith.select %112, %108, %113 : vector<8x16xi1>, vector<8x16xf32>
    %115 = arith.index_cast %c1_i32 : i32 to index
    %c0_25 = arith.constant 0 : index
    %c0_26 = arith.constant 0 : index
    %116 = vector.load %arg3[%115, %c0_25, %c0_26] : memref<8x8x32xf32, #tpu.memory_space<vmem>>, vector<1x8x16xf32>
    %117 = vector.shape_cast %116 : vector<1x8x16xf32> to vector<8x16xf32>
    %118 = vector.shape_cast %114 : vector<8x16xf32> to vector<1x8x16xf32>
    tpu.vector_store %arg3[%115, %c0_25, %c0_26], %118 {strides = array<i32>} : memref<8x8x32xf32, #tpu.memory_space<vmem>>, vector<1x8x16xf32>,
    %119 = arith.mulf %100, %68 : vector<8x16xf32>
    %120 = arith.mulf %99, %103 : vector<8x16xf32>
    %121 = arith.addf %119, %120 : vector<8x16xf32>
    %122 = math.tanh %121 : vector<8x16xf32>
    %123 = arith.mulf %101, %122 : vector<8x16xf32>
    %124 = vector.broadcast %78 : i32 to vector<8x1xi32>
    %125 = arith.cmpi slt, %124, %1 : vector<8x1xi32>
    %cst_27 = arith.constant 0.000000e+00 : f32
    %126 = vector.shape_cast %125 : vector<8x1xi1> to vector<8x1xi1>
    %127 = vector.broadcast %126 : vector<8x1xi1> to vector<8x16xi1>
    %128 = vector.broadcast %cst_27 : f32 to vector<8x16xf32>
    %129 = arith.select %127, %123, %128 : vector<8x16xi1>, vector<8x16xf32>
    %cst_28 = arith.constant 0.000000e+00 : f32
    %130 = vector.shape_cast %125 : vector<8x1xi1> to vector<8x1xi1>
    %131 = vector.broadcast %130 : vector<8x1xi1> to vector<8x16xi1>
    %132 = vector.broadcast %cst_28 : f32 to vector<8x16xf32>
    %133 = arith.select %131, %121, %132 : vector<8x16xi1>, vector<8x16xf32>
    %cst_29 = arith.constant -1.000000e+00 : f32
    %134 = vector.shape_cast %125 : vector<8x1xi1> to vector<8x1xi1>
    %135 = vector.broadcast %134 : vector<8x1xi1> to vector<8x16xi1>
    %136 = vector.broadcast %cst_29 : f32 to vector<8x16xf32>
    %137 = arith.select %135, %129, %136 : vector<8x16xi1>, vector<8x16xf32>
    %138 = arith.index_cast %78 : i32 to index
    %c0_30 = arith.constant 0 : index
    %c16_31 = arith.constant 16 : index
    %139 = vector.load %arg3[%138, %c0_30, %c16_31] : memref<8x8x32xf32, #tpu.memory_space<vmem>>, vector<1x8x16xf32>
    %140 = vector.shape_cast %139 : vector<1x8x16xf32> to vector<8x16xf32>
    %141 = vector.shape_cast %137 : vector<8x16xf32> to vector<1x8x16xf32>
    tpu.vector_store %arg3[%138, %c0_30, %c16_31], %141 {strides = array<i32>} : memref<8x8x32xf32, #tpu.memory_space<vmem>>, vector<1x8x16xf32>,
    %142 = tpu.concatenate %108, %129 in 1 : vector<8x16xf32>, vector<8x16xf32> -> vector<8x32xf32>
    %c2_i32 = arith.constant 2 : i32
    %c7_i32_32 = arith.constant 7 : i32
    %143 = arith.subi %c7_i32_32, %c2_i32 : i32
    %144 = arith.index_cast %c2_i32 : i32 to index
    %c0_33 = arith.constant 0 : index
    %c0_34 = arith.constant 0 : index
    %145 = vector.load %arg0[%144, %c0_33, %c0_34] : memref<8x8x128xf32, #tpu.memory_space<vmem>>, vector<1x8x128xf32>
    %146 = vector.shape_cast %145 : vector<1x8x128xf32> to vector<8x128xf32>
    %147 = arith.index_cast %143 : i32 to index
    %c0_35 = arith.constant 0 : index
    %c0_36 = arith.constant 0 : index
    %148 = vector.load %arg0[%147, %c0_35, %c0_36] : memref<8x8x128xf32, #tpu.memory_space<vmem>>, vector<1x8x128xf32>
    %149 = vector.shape_cast %148 : vector<1x8x128xf32> to vector<8x128xf32>
    %150 = arith.select %10, %146, %149 : vector<8x128xi1>, vector<8x128xf32>
    %cst_37 = arith.constant dense<0.000000e+00> : vector<8x128xf32>
    %151 = tpu.matmul %142, %0, %cst_37 {dimension_numbers = #tpu.dot_dimension_numbers<[1], [0], [0], [1], [0, 0, 1, 1], [], []>} : vector<8x32xf32>, vector<32x128xf32>, vector<8x128xf32> -> vector<8x128xf32>
    %152 = arith.addf %150, %151 : vector<8x128xf32>
    %153 = vector.extract_strided_slice %152 {offsets = [0, 0], sizes = [8, 96], strides = [1, 1]} : vector<8x128xf32> to vector<8x96xf32>
    %154 = arith.negf %153 : vector<8x96xf32>
    %155 = math.exp %154 : vector<8x96xf32>
    %cst_38 = arith.constant 1.000000e+00 : f32
    %156 = vector.broadcast %cst_38 : f32 to vector<8x96xf32>
    %157 = arith.addf %156, %155 : vector<8x96xf32>
    %158 = arith.divf %156, %157 : vector<8x96xf32>
    %159 = vector.extract_strided_slice %152 {offsets = [0, 96], sizes = [8, 32], strides = [1, 1]} : vector<8x128xf32> to vector<8x32xf32>
    %160 = math.tanh %159 : vector<8x32xf32>
    %161 = vector.extract_strided_slice %158 {offsets = [0, 0], sizes = [8, 16], strides = [1, 1]} : vector<8x96xf32> to vector<8x16xf32>
    %162 = vector.extract_strided_slice %158 {offsets = [0, 16], sizes = [8, 16], strides = [1, 1]} : vector<8x96xf32> to vector<8x16xf32>
    %163 = vector.extract_strided_slice %158 {offsets = [0, 32], sizes = [8, 16], strides = [1, 1]} : vector<8x96xf32> to vector<8x16xf32>
    %164 = vector.extract_strided_slice %158 {offsets = [0, 48], sizes = [8, 16], strides = [1, 1]} : vector<8x96xf32> to vector<8x16xf32>
    %165 = vector.extract_strided_slice %158 {offsets = [0, 64], sizes = [8, 16], strides = [1, 1]} : vector<8x96xf32> to vector<8x16xf32>
    %166 = vector.extract_strided_slice %158 {offsets = [0, 80], sizes = [8, 16], strides = [1, 1]} : vector<8x96xf32> to vector<8x16xf32>
    %167 = vector.extract_strided_slice %160 {offsets = [0, 0], sizes = [8, 16], strides = [1, 1]} : vector<8x32xf32> to vector<8x16xf32>
    %168 = vector.extract_strided_slice %160 {offsets = [0, 16], sizes = [8, 16], strides = [1, 1]} : vector<8x32xf32> to vector<8x16xf32>
    %169 = arith.mulf %162, %106 : vector<8x16xf32>
    %170 = arith.mulf %161, %167 : vector<8x16xf32>
    %171 = arith.addf %169, %170 : vector<8x16xf32>
    %172 = math.tanh %171 : vector<8x16xf32>
    %173 = arith.mulf %163, %172 : vector<8x16xf32>
    %174 = vector.broadcast %c2_i32 : i32 to vector<8x1xi32>
    %175 = arith.cmpi slt, %174, %1 : vector<8x1xi32>
    %cst_39 = arith.constant -1.000000e+00 : f32
    %176 = vector.shape_cast %175 : vector<8x1xi1> to vector<8x1xi1>
    %177 = vector.broadcast %176 : vector<8x1xi1> to vector<8x16xi1>
    %178 = vector.broadcast %cst_39 : f32 to vector<8x16xf32>
    %179 = arith.select %177, %173, %178 : vector<8x16xi1>, vector<8x16xf32>
    %180 = arith.index_cast %c2_i32 : i32 to index
    %c0_40 = arith.constant 0 : index
    %c0_41 = arith.constant 0 : index
    %181 = vector.load %arg3[%180, %c0_40, %c0_41] : memref<8x8x32xf32, #tpu.memory_space<vmem>>, vector<1x8x16xf32>
    %182 = vector.shape_cast %181 : vector<1x8x16xf32> to vector<8x16xf32>
    %183 = vector.shape_cast %179 : vector<8x16xf32> to vector<1x8x16xf32>
    tpu.vector_store %arg3[%180, %c0_40, %c0_41], %183 {strides = array<i32>} : memref<8x8x32xf32, #tpu.memory_space<vmem>>, vector<1x8x16xf32>,
    %184 = arith.mulf %165, %133 : vector<8x16xf32>
    %185 = arith.mulf %164, %168 : vector<8x16xf32>
    %186 = arith.addf %184, %185 : vector<8x16xf32>
    %187 = math.tanh %186 : vector<8x16xf32>
    %188 = arith.mulf %166, %187 : vector<8x16xf32>
    %189 = vector.broadcast %143 : i32 to vector<8x1xi32>
    %190 = arith.cmpi slt, %189, %1 : vector<8x1xi32>
    %cst_42 = arith.constant 0.000000e+00 : f32
    %191 = vector.shape_cast %190 : vector<8x1xi1> to vector<8x1xi1>
    %192 = vector.broadcast %191 : vector<8x1xi1> to vector<8x16xi1>
    %193 = vector.broadcast %cst_42 : f32 to vector<8x16xf32>
    %194 = arith.select %192, %188, %193 : vector<8x16xi1>, vector<8x16xf32>
    %cst_43 = arith.constant 0.000000e+00 : f32
    %195 = vector.shape_cast %190 : vector<8x1xi1> to vector<8x1xi1>
    %196 = vector.broadcast %195 : vector<8x1xi1> to vector<8x16xi1>
    %197 = vector.broadcast %cst_43 : f32 to vector<8x16xf32>
    %198 = arith.select %196, %186, %197 : vector<8x16xi1>, vector<8x16xf32>
    %cst_44 = arith.constant -1.000000e+00 : f32
    %199 = vector.shape_cast %190 : vector<8x1xi1> to vector<8x1xi1>
    %200 = vector.broadcast %199 : vector<8x1xi1> to vector<8x16xi1>
    %201 = vector.broadcast %cst_44 : f32 to vector<8x16xf32>
    %202 = arith.select %200, %194, %201 : vector<8x16xi1>, vector<8x16xf32>
    %203 = arith.index_cast %143 : i32 to index
    %c0_45 = arith.constant 0 : index
    %c16_46 = arith.constant 16 : index
    %204 = vector.load %arg3[%203, %c0_45, %c16_46] : memref<8x8x32xf32, #tpu.memory_space<vmem>>, vector<1x8x16xf32>
    %205 = vector.shape_cast %204 : vector<1x8x16xf32> to vector<8x16xf32>
    %206 = vector.shape_cast %202 : vector<8x16xf32> to vector<1x8x16xf32>
    tpu.vector_store %arg3[%203, %c0_45, %c16_46], %206 {strides = array<i32>} : memref<8x8x32xf32, #tpu.memory_space<vmem>>, vector<1x8x16xf32>,
    %207 = tpu.concatenate %173, %194 in 1 : vector<8x16xf32>, vector<8x16xf32> -> vector<8x32xf32>
    %c3_i32 = arith.constant 3 : i32
    %c7_i32_47 = arith.constant 7 : i32
    %208 = arith.subi %c7_i32_47, %c3_i32 : i32
    %209 = arith.index_cast %c3_i32 : i32 to index
    %c0_48 = arith.constant 0 : index
    %c0_49 = arith.constant 0 : index
    %210 = vector.load %arg0[%209, %c0_48, %c0_49] : memref<8x8x128xf32, #tpu.memory_space<vmem>>, vector<1x8x128xf32>
    %211 = vector.shape_cast %210 : vector<1x8x128xf32> to vector<8x128xf32>
    %212 = arith.index_cast %208 : i32 to index
    %c0_50 = arith.constant 0 : index
    %c0_51 = arith.constant 0 : index
    %213 = vector.load %arg0[%212, %c0_50, %c0_51] : memref<8x8x128xf32, #tpu.memory_space<vmem>>, vector<1x8x128xf32>
    %214 = vector.shape_cast %213 : vector<1x8x128xf32> to vector<8x128xf32>
    %215 = arith.select %10, %211, %214 : vector<8x128xi1>, vector<8x128xf32>
    %cst_52 = arith.constant dense<0.000000e+00> : vector<8x128xf32>
    %216 = tpu.matmul %207, %0, %cst_52 {dimension_numbers = #tpu.dot_dimension_numbers<[1], [0], [0], [1], [0, 0, 1, 1], [], []>} : vector<8x32xf32>, vector<32x128xf32>, vector<8x128xf32> -> vector<8x128xf32>
    %217 = arith.addf %215, %216 : vector<8x128xf32>
    %218 = vector.extract_strided_slice %217 {offsets = [0, 0], sizes = [8, 96], strides = [1, 1]} : vector<8x128xf32> to vector<8x96xf32>
    %219 = arith.negf %218 : vector<8x96xf32>
    %220 = math.exp %219 : vector<8x96xf32>
    %cst_53 = arith.constant 1.000000e+00 : f32
    %221 = vector.broadcast %cst_53 : f32 to vector<8x96xf32>
    %222 = arith.addf %221, %220 : vector<8x96xf32>
    %223 = arith.divf %221, %222 : vector<8x96xf32>
    %224 = vector.extract_strided_slice %217 {offsets = [0, 96], sizes = [8, 32], strides = [1, 1]} : vector<8x128xf32> to vector<8x32xf32>
    %225 = math.tanh %224 : vector<8x32xf32>
    %226 = vector.extract_strided_slice %223 {offsets = [0, 0], sizes = [8, 16], strides = [1, 1]} : vector<8x96xf32> to vector<8x16xf32>
    %227 = vector.extract_strided_slice %223 {offsets = [0, 16], sizes = [8, 16], strides = [1, 1]} : vector<8x96xf32> to vector<8x16xf32>
    %228 = vector.extract_strided_slice %223 {offsets = [0, 32], sizes = [8, 16], strides = [1, 1]} : vector<8x96xf32> to vector<8x16xf32>
    %229 = vector.extract_strided_slice %223 {offsets = [0, 48], sizes = [8, 16], strides = [1, 1]} : vector<8x96xf32> to vector<8x16xf32>
    %230 = vector.extract_strided_slice %223 {offsets = [0, 64], sizes = [8, 16], strides = [1, 1]} : vector<8x96xf32> to vector<8x16xf32>
    %231 = vector.extract_strided_slice %223 {offsets = [0, 80], sizes = [8, 16], strides = [1, 1]} : vector<8x96xf32> to vector<8x16xf32>
    %232 = vector.extract_strided_slice %225 {offsets = [0, 0], sizes = [8, 16], strides = [1, 1]} : vector<8x32xf32> to vector<8x16xf32>
    %233 = vector.extract_strided_slice %225 {offsets = [0, 16], sizes = [8, 16], strides = [1, 1]} : vector<8x32xf32> to vector<8x16xf32>
    %234 = arith.mulf %227, %171 : vector<8x16xf32>
    %235 = arith.mulf %226, %232 : vector<8x16xf32>
    %236 = arith.addf %234, %235 : vector<8x16xf32>
    %237 = math.tanh %236 : vector<8x16xf32>
    %238 = arith.mulf %228, %237 : vector<8x16xf32>
    %239 = vector.broadcast %c3_i32 : i32 to vector<8x1xi32>
    %240 = arith.cmpi slt, %239, %1 : vector<8x1xi32>
    %cst_54 = arith.constant -1.000000e+00 : f32
    %241 = vector.shape_cast %240 : vector<8x1xi1> to vector<8x1xi1>
    %242 = vector.broadcast %241 : vector<8x1xi1> to vector<8x16xi1>
    %243 = vector.broadcast %cst_54 : f32 to vector<8x16xf32>
    %244 = arith.select %242, %238, %243 : vector<8x16xi1>, vector<8x16xf32>
    %245 = arith.index_cast %c3_i32 : i32 to index
    %c0_55 = arith.constant 0 : index
    %c0_56 = arith.constant 0 : index
    %246 = vector.load %arg3[%245, %c0_55, %c0_56] : memref<8x8x32xf32, #tpu.memory_space<vmem>>, vector<1x8x16xf32>
    %247 = vector.shape_cast %246 : vector<1x8x16xf32> to vector<8x16xf32>
    %248 = vector.shape_cast %244 : vector<8x16xf32> to vector<1x8x16xf32>
    tpu.vector_store %arg3[%245, %c0_55, %c0_56], %248 {strides = array<i32>} : memref<8x8x32xf32, #tpu.memory_space<vmem>>, vector<1x8x16xf32>,
    %249 = arith.mulf %230, %198 : vector<8x16xf32>
    %250 = arith.mulf %229, %233 : vector<8x16xf32>
    %251 = arith.addf %249, %250 : vector<8x16xf32>
    %252 = math.tanh %251 : vector<8x16xf32>
    %253 = arith.mulf %231, %252 : vector<8x16xf32>
    %254 = vector.broadcast %208 : i32 to vector<8x1xi32>
    %255 = arith.cmpi slt, %254, %1 : vector<8x1xi32>
    %cst_57 = arith.constant 0.000000e+00 : f32
    %256 = vector.shape_cast %255 : vector<8x1xi1> to vector<8x1xi1>
    %257 = vector.broadcast %256 : vector<8x1xi1> to vector<8x16xi1>
    %258 = vector.broadcast %cst_57 : f32 to vector<8x16xf32>
    %259 = arith.select %257, %253, %258 : vector<8x16xi1>, vector<8x16xf32>
    %cst_58 = arith.constant 0.000000e+00 : f32
    %260 = vector.shape_cast %255 : vector<8x1xi1> to vector<8x1xi1>
    %261 = vector.broadcast %260 : vector<8x1xi1> to vector<8x16xi1>
    %262 = vector.broadcast %cst_58 : f32 to vector<8x16xf32>
    %263 = arith.select %261, %251, %262 : vector<8x16xi1>, vector<8x16xf32>
    %cst_59 = arith.constant -1.000000e+00 : f32
    %264 = vector.shape_cast %255 : vector<8x1xi1> to vector<8x1xi1>
    %265 = vector.broadcast %264 : vector<8x1xi1> to vector<8x16xi1>
    %266 = vector.broadcast %cst_59 : f32 to vector<8x16xf32>
    %267 = arith.select %265, %259, %266 : vector<8x16xi1>, vector<8x16xf32>
    %268 = arith.index_cast %208 : i32 to index
    %c0_60 = arith.constant 0 : index
    %c16_61 = arith.constant 16 : index
    %269 = vector.load %arg3[%268, %c0_60, %c16_61] : memref<8x8x32xf32, #tpu.memory_space<vmem>>, vector<1x8x16xf32>
    %270 = vector.shape_cast %269 : vector<1x8x16xf32> to vector<8x16xf32>
    %271 = vector.shape_cast %267 : vector<8x16xf32> to vector<1x8x16xf32>
    tpu.vector_store %arg3[%268, %c0_60, %c16_61], %271 {strides = array<i32>} : memref<8x8x32xf32, #tpu.memory_space<vmem>>, vector<1x8x16xf32>,
    %272 = tpu.concatenate %238, %259 in 1 : vector<8x16xf32>, vector<8x16xf32> -> vector<8x32xf32>
    %c4_i32 = arith.constant 4 : i32
    %c7_i32_62 = arith.constant 7 : i32
    %273 = arith.subi %c7_i32_62, %c4_i32 : i32
    %274 = arith.index_cast %c4_i32 : i32 to index
    %c0_63 = arith.constant 0 : index
    %c0_64 = arith.constant 0 : index
    %275 = vector.load %arg0[%274, %c0_63, %c0_64] : memref<8x8x128xf32, #tpu.memory_space<vmem>>, vector<1x8x128xf32>
    %276 = vector.shape_cast %275 : vector<1x8x128xf32> to vector<8x128xf32>
    %277 = arith.index_cast %273 : i32 to index
    %c0_65 = arith.constant 0 : index
    %c0_66 = arith.constant 0 : index
    %278 = vector.load %arg0[%277, %c0_65, %c0_66] : memref<8x8x128xf32, #tpu.memory_space<vmem>>, vector<1x8x128xf32>
    %279 = vector.shape_cast %278 : vector<1x8x128xf32> to vector<8x128xf32>
    %280 = arith.select %10, %276, %279 : vector<8x128xi1>, vector<8x128xf32>
    %cst_67 = arith.constant dense<0.000000e+00> : vector<8x128xf32>
    %281 = tpu.matmul %272, %0, %cst_67 {dimension_numbers = #tpu.dot_dimension_numbers<[1], [0], [0], [1], [0, 0, 1, 1], [], []>} : vector<8x32xf32>, vector<32x128xf32>, vector<8x128xf32> -> vector<8x128xf32>
    %282 = arith.addf %280, %281 : vector<8x128xf32>
    %283 = vector.extract_strided_slice %282 {offsets = [0, 0], sizes = [8, 96], strides = [1, 1]} : vector<8x128xf32> to vector<8x96xf32>
    %284 = arith.negf %283 : vector<8x96xf32>
    %285 = math.exp %284 : vector<8x96xf32>
    %cst_68 = arith.constant 1.000000e+00 : f32
    %286 = vector.broadcast %cst_68 : f32 to vector<8x96xf32>
    %287 = arith.addf %286, %285 : vector<8x96xf32>
    %288 = arith.divf %286, %287 : vector<8x96xf32>
    %289 = vector.extract_strided_slice %282 {offsets = [0, 96], sizes = [8, 32], strides = [1, 1]} : vector<8x128xf32> to vector<8x32xf32>
    %290 = math.tanh %289 : vector<8x32xf32>
    %291 = vector.extract_strided_slice %288 {offsets = [0, 0], sizes = [8, 16], strides = [1, 1]} : vector<8x96xf32> to vector<8x16xf32>
    %292 = vector.extract_strided_slice %288 {offsets = [0, 16], sizes = [8, 16], strides = [1, 1]} : vector<8x96xf32> to vector<8x16xf32>
    %293 = vector.extract_strided_slice %288 {offsets = [0, 32], sizes = [8, 16], strides = [1, 1]} : vector<8x96xf32> to vector<8x16xf32>
    %294 = vector.extract_strided_slice %288 {offsets = [0, 48], sizes = [8, 16], strides = [1, 1]} : vector<8x96xf32> to vector<8x16xf32>
    %295 = vector.extract_strided_slice %288 {offsets = [0, 64], sizes = [8, 16], strides = [1, 1]} : vector<8x96xf32> to vector<8x16xf32>
    %296 = vector.extract_strided_slice %288 {offsets = [0, 80], sizes = [8, 16], strides = [1, 1]} : vector<8x96xf32> to vector<8x16xf32>
    %297 = vector.extract_strided_slice %290 {offsets = [0, 0], sizes = [8, 16], strides = [1, 1]} : vector<8x32xf32> to vector<8x16xf32>
    %298 = vector.extract_strided_slice %290 {offsets = [0, 16], sizes = [8, 16], strides = [1, 1]} : vector<8x32xf32> to vector<8x16xf32>
    %299 = arith.mulf %292, %236 : vector<8x16xf32>
    %300 = arith.mulf %291, %297 : vector<8x16xf32>
    %301 = arith.addf %299, %300 : vector<8x16xf32>
    %302 = math.tanh %301 : vector<8x16xf32>
    %303 = arith.mulf %293, %302 : vector<8x16xf32>
    %304 = vector.broadcast %c4_i32 : i32 to vector<8x1xi32>
    %305 = arith.cmpi slt, %304, %1 : vector<8x1xi32>
    %cst_69 = arith.constant -1.000000e+00 : f32
    %306 = vector.shape_cast %305 : vector<8x1xi1> to vector<8x1xi1>
    %307 = vector.broadcast %306 : vector<8x1xi1> to vector<8x16xi1>
    %308 = vector.broadcast %cst_69 : f32 to vector<8x16xf32>
    %309 = arith.select %307, %303, %308 : vector<8x16xi1>, vector<8x16xf32>
    %310 = arith.index_cast %c4_i32 : i32 to index
    %c0_70 = arith.constant 0 : index
    %c0_71 = arith.constant 0 : index
    %311 = vector.load %arg3[%310, %c0_70, %c0_71] : memref<8x8x32xf32, #tpu.memory_space<vmem>>, vector<1x8x16xf32>
    %312 = vector.shape_cast %311 : vector<1x8x16xf32> to vector<8x16xf32>
    %313 = vector.shape_cast %309 : vector<8x16xf32> to vector<1x8x16xf32>
    tpu.vector_store %arg3[%310, %c0_70, %c0_71], %313 {strides = array<i32>} : memref<8x8x32xf32, #tpu.memory_space<vmem>>, vector<1x8x16xf32>,
    %314 = arith.mulf %295, %263 : vector<8x16xf32>
    %315 = arith.mulf %294, %298 : vector<8x16xf32>
    %316 = arith.addf %314, %315 : vector<8x16xf32>
    %317 = math.tanh %316 : vector<8x16xf32>
    %318 = arith.mulf %296, %317 : vector<8x16xf32>
    %319 = vector.broadcast %273 : i32 to vector<8x1xi32>
    %320 = arith.cmpi slt, %319, %1 : vector<8x1xi32>
    %cst_72 = arith.constant 0.000000e+00 : f32
    %321 = vector.shape_cast %320 : vector<8x1xi1> to vector<8x1xi1>
    %322 = vector.broadcast %321 : vector<8x1xi1> to vector<8x16xi1>
    %323 = vector.broadcast %cst_72 : f32 to vector<8x16xf32>
    %324 = arith.select %322, %318, %323 : vector<8x16xi1>, vector<8x16xf32>
    %cst_73 = arith.constant 0.000000e+00 : f32
    %325 = vector.shape_cast %320 : vector<8x1xi1> to vector<8x1xi1>
    %326 = vector.broadcast %325 : vector<8x1xi1> to vector<8x16xi1>
    %327 = vector.broadcast %cst_73 : f32 to vector<8x16xf32>
    %328 = arith.select %326, %316, %327 : vector<8x16xi1>, vector<8x16xf32>
    %cst_74 = arith.constant -1.000000e+00 : f32
    %329 = vector.shape_cast %320 : vector<8x1xi1> to vector<8x1xi1>
    %330 = vector.broadcast %329 : vector<8x1xi1> to vector<8x16xi1>
    %331 = vector.broadcast %cst_74 : f32 to vector<8x16xf32>
    %332 = arith.select %330, %324, %331 : vector<8x16xi1>, vector<8x16xf32>
    %333 = arith.index_cast %273 : i32 to index
    %c0_75 = arith.constant 0 : index
    %c16_76 = arith.constant 16 : index
    %334 = vector.load %arg3[%333, %c0_75, %c16_76] : memref<8x8x32xf32, #tpu.memory_space<vmem>>, vector<1x8x16xf32>
    %335 = vector.shape_cast %334 : vector<1x8x16xf32> to vector<8x16xf32>
    %336 = vector.shape_cast %332 : vector<8x16xf32> to vector<1x8x16xf32>
    tpu.vector_store %arg3[%333, %c0_75, %c16_76], %336 {strides = array<i32>} : memref<8x8x32xf32, #tpu.memory_space<vmem>>, vector<1x8x16xf32>,
    %337 = tpu.concatenate %303, %324 in 1 : vector<8x16xf32>, vector<8x16xf32> -> vector<8x32xf32>
    %c5_i32 = arith.constant 5 : i32
    %c7_i32_77 = arith.constant 7 : i32
    %338 = arith.subi %c7_i32_77, %c5_i32 : i32
    %339 = arith.index_cast %c5_i32 : i32 to index
    %c0_78 = arith.constant 0 : index
    %c0_79 = arith.constant 0 : index
    %340 = vector.load %arg0[%339, %c0_78, %c0_79] : memref<8x8x128xf32, #tpu.memory_space<vmem>>, vector<1x8x128xf32>
    %341 = vector.shape_cast %340 : vector<1x8x128xf32> to vector<8x128xf32>
    %342 = arith.index_cast %338 : i32 to index
    %c0_80 = arith.constant 0 : index
    %c0_81 = arith.constant 0 : index
    %343 = vector.load %arg0[%342, %c0_80, %c0_81] : memref<8x8x128xf32, #tpu.memory_space<vmem>>, vector<1x8x128xf32>
    %344 = vector.shape_cast %343 : vector<1x8x128xf32> to vector<8x128xf32>
    %345 = arith.select %10, %341, %344 : vector<8x128xi1>, vector<8x128xf32>
    %cst_82 = arith.constant dense<0.000000e+00> : vector<8x128xf32>
    %346 = tpu.matmul %337, %0, %cst_82 {dimension_numbers = #tpu.dot_dimension_numbers<[1], [0], [0], [1], [0, 0, 1, 1], [], []>} : vector<8x32xf32>, vector<32x128xf32>, vector<8x128xf32> -> vector<8x128xf32>
    %347 = arith.addf %345, %346 : vector<8x128xf32>
    %348 = vector.extract_strided_slice %347 {offsets = [0, 0], sizes = [8, 96], strides = [1, 1]} : vector<8x128xf32> to vector<8x96xf32>
    %349 = arith.negf %348 : vector<8x96xf32>
    %350 = math.exp %349 : vector<8x96xf32>
    %cst_83 = arith.constant 1.000000e+00 : f32
    %351 = vector.broadcast %cst_83 : f32 to vector<8x96xf32>
    %352 = arith.addf %351, %350 : vector<8x96xf32>
    %353 = arith.divf %351, %352 : vector<8x96xf32>
    %354 = vector.extract_strided_slice %347 {offsets = [0, 96], sizes = [8, 32], strides = [1, 1]} : vector<8x128xf32> to vector<8x32xf32>
    %355 = math.tanh %354 : vector<8x32xf32>
    %356 = vector.extract_strided_slice %353 {offsets = [0, 0], sizes = [8, 16], strides = [1, 1]} : vector<8x96xf32> to vector<8x16xf32>
    %357 = vector.extract_strided_slice %353 {offsets = [0, 16], sizes = [8, 16], strides = [1, 1]} : vector<8x96xf32> to vector<8x16xf32>
    %358 = vector.extract_strided_slice %353 {offsets = [0, 32], sizes = [8, 16], strides = [1, 1]} : vector<8x96xf32> to vector<8x16xf32>
    %359 = vector.extract_strided_slice %353 {offsets = [0, 48], sizes = [8, 16], strides = [1, 1]} : vector<8x96xf32> to vector<8x16xf32>
    %360 = vector.extract_strided_slice %353 {offsets = [0, 64], sizes = [8, 16], strides = [1, 1]} : vector<8x96xf32> to vector<8x16xf32>
    %361 = vector.extract_strided_slice %353 {offsets = [0, 80], sizes = [8, 16], strides = [1, 1]} : vector<8x96xf32> to vector<8x16xf32>
    %362 = vector.extract_strided_slice %355 {offsets = [0, 0], sizes = [8, 16], strides = [1, 1]} : vector<8x32xf32> to vector<8x16xf32>
    %363 = vector.extract_strided_slice %355 {offsets = [0, 16], sizes = [8, 16], strides = [1, 1]} : vector<8x32xf32> to vector<8x16xf32>
    %364 = arith.mulf %357, %301 : vector<8x16xf32>
    %365 = arith.mulf %356, %362 : vector<8x16xf32>
    %366 = arith.addf %364, %365 : vector<8x16xf32>
    %367 = math.tanh %366 : vector<8x16xf32>
    %368 = arith.mulf %358, %367 : vector<8x16xf32>
    %369 = vector.broadcast %c5_i32 : i32 to vector<8x1xi32>
    %370 = arith.cmpi slt, %369, %1 : vector<8x1xi32>
    %cst_84 = arith.constant -1.000000e+00 : f32
    %371 = vector.shape_cast %370 : vector<8x1xi1> to vector<8x1xi1>
    %372 = vector.broadcast %371 : vector<8x1xi1> to vector<8x16xi1>
    %373 = vector.broadcast %cst_84 : f32 to vector<8x16xf32>
    %374 = arith.select %372, %368, %373 : vector<8x16xi1>, vector<8x16xf32>
    %375 = arith.index_cast %c5_i32 : i32 to index
    %c0_85 = arith.constant 0 : index
    %c0_86 = arith.constant 0 : index
    %376 = vector.load %arg3[%375, %c0_85, %c0_86] : memref<8x8x32xf32, #tpu.memory_space<vmem>>, vector<1x8x16xf32>
    %377 = vector.shape_cast %376 : vector<1x8x16xf32> to vector<8x16xf32>
    %378 = vector.shape_cast %374 : vector<8x16xf32> to vector<1x8x16xf32>
    tpu.vector_store %arg3[%375, %c0_85, %c0_86], %378 {strides = array<i32>} : memref<8x8x32xf32, #tpu.memory_space<vmem>>, vector<1x8x16xf32>,
    %379 = arith.mulf %360, %328 : vector<8x16xf32>
    %380 = arith.mulf %359, %363 : vector<8x16xf32>
    %381 = arith.addf %379, %380 : vector<8x16xf32>
    %382 = math.tanh %381 : vector<8x16xf32>
    %383 = arith.mulf %361, %382 : vector<8x16xf32>
    %384 = vector.broadcast %338 : i32 to vector<8x1xi32>
    %385 = arith.cmpi slt, %384, %1 : vector<8x1xi32>
    %cst_87 = arith.constant 0.000000e+00 : f32
    %386 = vector.shape_cast %385 : vector<8x1xi1> to vector<8x1xi1>
    %387 = vector.broadcast %386 : vector<8x1xi1> to vector<8x16xi1>
    %388 = vector.broadcast %cst_87 : f32 to vector<8x16xf32>
    %389 = arith.select %387, %383, %388 : vector<8x16xi1>, vector<8x16xf32>
    %cst_88 = arith.constant 0.000000e+00 : f32
    %390 = vector.shape_cast %385 : vector<8x1xi1> to vector<8x1xi1>
    %391 = vector.broadcast %390 : vector<8x1xi1> to vector<8x16xi1>
    %392 = vector.broadcast %cst_88 : f32 to vector<8x16xf32>
    %393 = arith.select %391, %381, %392 : vector<8x16xi1>, vector<8x16xf32>
    %cst_89 = arith.constant -1.000000e+00 : f32
    %394 = vector.shape_cast %385 : vector<8x1xi1> to vector<8x1xi1>
    %395 = vector.broadcast %394 : vector<8x1xi1> to vector<8x16xi1>
    %396 = vector.broadcast %cst_89 : f32 to vector<8x16xf32>
    %397 = arith.select %395, %389, %396 : vector<8x16xi1>, vector<8x16xf32>
    %398 = arith.index_cast %338 : i32 to index
    %c0_90 = arith.constant 0 : index
    %c16_91 = arith.constant 16 : index
    %399 = vector.load %arg3[%398, %c0_90, %c16_91] : memref<8x8x32xf32, #tpu.memory_space<vmem>>, vector<1x8x16xf32>
    %400 = vector.shape_cast %399 : vector<1x8x16xf32> to vector<8x16xf32>
    %401 = vector.shape_cast %397 : vector<8x16xf32> to vector<1x8x16xf32>
    tpu.vector_store %arg3[%398, %c0_90, %c16_91], %401 {strides = array<i32>} : memref<8x8x32xf32, #tpu.memory_space<vmem>>, vector<1x8x16xf32>,
    %402 = tpu.concatenate %368, %389 in 1 : vector<8x16xf32>, vector<8x16xf32> -> vector<8x32xf32>
    %c6_i32 = arith.constant 6 : i32
    %c7_i32_92 = arith.constant 7 : i32
    %403 = arith.subi %c7_i32_92, %c6_i32 : i32
    %404 = arith.index_cast %c6_i32 : i32 to index
    %c0_93 = arith.constant 0 : index
    %c0_94 = arith.constant 0 : index
    %405 = vector.load %arg0[%404, %c0_93, %c0_94] : memref<8x8x128xf32, #tpu.memory_space<vmem>>, vector<1x8x128xf32>
    %406 = vector.shape_cast %405 : vector<1x8x128xf32> to vector<8x128xf32>
    %407 = arith.index_cast %403 : i32 to index
    %c0_95 = arith.constant 0 : index
    %c0_96 = arith.constant 0 : index
    %408 = vector.load %arg0[%407, %c0_95, %c0_96] : memref<8x8x128xf32, #tpu.memory_space<vmem>>, vector<1x8x128xf32>
    %409 = vector.shape_cast %408 : vector<1x8x128xf32> to vector<8x128xf32>
    %410 = arith.select %10, %406, %409 : vector<8x128xi1>, vector<8x128xf32>
    %cst_97 = arith.constant dense<0.000000e+00> : vector<8x128xf32>
    %411 = tpu.matmul %402, %0, %cst_97 {dimension_numbers = #tpu.dot_dimension_numbers<[1], [0], [0], [1], [0, 0, 1, 1], [], []>} : vector<8x32xf32>, vector<32x128xf32>, vector<8x128xf32> -> vector<8x128xf32>
    %412 = arith.addf %410, %411 : vector<8x128xf32>
    %413 = vector.extract_strided_slice %412 {offsets = [0, 0], sizes = [8, 96], strides = [1, 1]} : vector<8x128xf32> to vector<8x96xf32>
    %414 = arith.negf %413 : vector<8x96xf32>
    %415 = math.exp %414 : vector<8x96xf32>
    %cst_98 = arith.constant 1.000000e+00 : f32
    %416 = vector.broadcast %cst_98 : f32 to vector<8x96xf32>
    %417 = arith.addf %416, %415 : vector<8x96xf32>
    %418 = arith.divf %416, %417 : vector<8x96xf32>
    %419 = vector.extract_strided_slice %412 {offsets = [0, 96], sizes = [8, 32], strides = [1, 1]} : vector<8x128xf32> to vector<8x32xf32>
    %420 = math.tanh %419 : vector<8x32xf32>
    %421 = vector.extract_strided_slice %418 {offsets = [0, 0], sizes = [8, 16], strides = [1, 1]} : vector<8x96xf32> to vector<8x16xf32>
    %422 = vector.extract_strided_slice %418 {offsets = [0, 16], sizes = [8, 16], strides = [1, 1]} : vector<8x96xf32> to vector<8x16xf32>
    %423 = vector.extract_strided_slice %418 {offsets = [0, 32], sizes = [8, 16], strides = [1, 1]} : vector<8x96xf32> to vector<8x16xf32>
    %424 = vector.extract_strided_slice %418 {offsets = [0, 48], sizes = [8, 16], strides = [1, 1]} : vector<8x96xf32> to vector<8x16xf32>
    %425 = vector.extract_strided_slice %418 {offsets = [0, 64], sizes = [8, 16], strides = [1, 1]} : vector<8x96xf32> to vector<8x16xf32>
    %426 = vector.extract_strided_slice %418 {offsets = [0, 80], sizes = [8, 16], strides = [1, 1]} : vector<8x96xf32> to vector<8x16xf32>
    %427 = vector.extract_strided_slice %420 {offsets = [0, 0], sizes = [8, 16], strides = [1, 1]} : vector<8x32xf32> to vector<8x16xf32>
    %428 = vector.extract_strided_slice %420 {offsets = [0, 16], sizes = [8, 16], strides = [1, 1]} : vector<8x32xf32> to vector<8x16xf32>
    %429 = arith.mulf %422, %366 : vector<8x16xf32>
    %430 = arith.mulf %421, %427 : vector<8x16xf32>
    %431 = arith.addf %429, %430 : vector<8x16xf32>
    %432 = math.tanh %431 : vector<8x16xf32>
    %433 = arith.mulf %423, %432 : vector<8x16xf32>
    %434 = vector.broadcast %c6_i32 : i32 to vector<8x1xi32>
    %435 = arith.cmpi slt, %434, %1 : vector<8x1xi32>
    %cst_99 = arith.constant -1.000000e+00 : f32
    %436 = vector.shape_cast %435 : vector<8x1xi1> to vector<8x1xi1>
    %437 = vector.broadcast %436 : vector<8x1xi1> to vector<8x16xi1>
    %438 = vector.broadcast %cst_99 : f32 to vector<8x16xf32>
    %439 = arith.select %437, %433, %438 : vector<8x16xi1>, vector<8x16xf32>
    %440 = arith.index_cast %c6_i32 : i32 to index
    %c0_100 = arith.constant 0 : index
    %c0_101 = arith.constant 0 : index
    %441 = vector.load %arg3[%440, %c0_100, %c0_101] : memref<8x8x32xf32, #tpu.memory_space<vmem>>, vector<1x8x16xf32>
    %442 = vector.shape_cast %441 : vector<1x8x16xf32> to vector<8x16xf32>
    %443 = vector.shape_cast %439 : vector<8x16xf32> to vector<1x8x16xf32>
    tpu.vector_store %arg3[%440, %c0_100, %c0_101], %443 {strides = array<i32>} : memref<8x8x32xf32, #tpu.memory_space<vmem>>, vector<1x8x16xf32>,
    %444 = arith.mulf %425, %393 : vector<8x16xf32>
    %445 = arith.mulf %424, %428 : vector<8x16xf32>
    %446 = arith.addf %444, %445 : vector<8x16xf32>
    %447 = math.tanh %446 : vector<8x16xf32>
    %448 = arith.mulf %426, %447 : vector<8x16xf32>
    %449 = vector.broadcast %403 : i32 to vector<8x1xi32>
    %450 = arith.cmpi slt, %449, %1 : vector<8x1xi32>
    %cst_102 = arith.constant 0.000000e+00 : f32
    %451 = vector.shape_cast %450 : vector<8x1xi1> to vector<8x1xi1>
    %452 = vector.broadcast %451 : vector<8x1xi1> to vector<8x16xi1>
    %453 = vector.broadcast %cst_102 : f32 to vector<8x16xf32>
    %454 = arith.select %452, %448, %453 : vector<8x16xi1>, vector<8x16xf32>
    %cst_103 = arith.constant 0.000000e+00 : f32
    %455 = vector.shape_cast %450 : vector<8x1xi1> to vector<8x1xi1>
    %456 = vector.broadcast %455 : vector<8x1xi1> to vector<8x16xi1>
    %457 = vector.broadcast %cst_103 : f32 to vector<8x16xf32>
    %458 = arith.select %456, %446, %457 : vector<8x16xi1>, vector<8x16xf32>
    %cst_104 = arith.constant -1.000000e+00 : f32
    %459 = vector.shape_cast %450 : vector<8x1xi1> to vector<8x1xi1>
    %460 = vector.broadcast %459 : vector<8x1xi1> to vector<8x16xi1>
    %461 = vector.broadcast %cst_104 : f32 to vector<8x16xf32>
    %462 = arith.select %460, %454, %461 : vector<8x16xi1>, vector<8x16xf32>
    %463 = arith.index_cast %403 : i32 to index
    %c0_105 = arith.constant 0 : index
    %c16_106 = arith.constant 16 : index
    %464 = vector.load %arg3[%463, %c0_105, %c16_106] : memref<8x8x32xf32, #tpu.memory_space<vmem>>, vector<1x8x16xf32>
    %465 = vector.shape_cast %464 : vector<1x8x16xf32> to vector<8x16xf32>
    %466 = vector.shape_cast %462 : vector<8x16xf32> to vector<1x8x16xf32>
    tpu.vector_store %arg3[%463, %c0_105, %c16_106], %466 {strides = array<i32>} : memref<8x8x32xf32, #tpu.memory_space<vmem>>, vector<1x8x16xf32>,
    %467 = tpu.concatenate %433, %454 in 1 : vector<8x16xf32>, vector<8x16xf32> -> vector<8x32xf32>
    %c7_i32_107 = arith.constant 7 : i32
    %c7_i32_108 = arith.constant 7 : i32
    %468 = arith.subi %c7_i32_108, %c7_i32_107 : i32
    %469 = arith.index_cast %c7_i32_107 : i32 to index
    %c0_109 = arith.constant 0 : index
    %c0_110 = arith.constant 0 : index
    %470 = vector.load %arg0[%469, %c0_109, %c0_110] : memref<8x8x128xf32, #tpu.memory_space<vmem>>, vector<1x8x128xf32>
    %471 = vector.shape_cast %470 : vector<1x8x128xf32> to vector<8x128xf32>
    %472 = arith.index_cast %468 : i32 to index
    %c0_111 = arith.constant 0 : index
    %c0_112 = arith.constant 0 : index
    %473 = vector.load %arg0[%472, %c0_111, %c0_112] : memref<8x8x128xf32, #tpu.memory_space<vmem>>, vector<1x8x128xf32>
    %474 = vector.shape_cast %473 : vector<1x8x128xf32> to vector<8x128xf32>
    %475 = arith.select %10, %471, %474 : vector<8x128xi1>, vector<8x128xf32>
    %cst_113 = arith.constant dense<0.000000e+00> : vector<8x128xf32>
    %476 = tpu.matmul %467, %0, %cst_113 {dimension_numbers = #tpu.dot_dimension_numbers<[1], [0], [0], [1], [0, 0, 1, 1], [], []>} : vector<8x32xf32>, vector<32x128xf32>, vector<8x128xf32> -> vector<8x128xf32>
    %477 = arith.addf %475, %476 : vector<8x128xf32>
    %478 = vector.extract_strided_slice %477 {offsets = [0, 0], sizes = [8, 96], strides = [1, 1]} : vector<8x128xf32> to vector<8x96xf32>
    %479 = arith.negf %478 : vector<8x96xf32>
    %480 = math.exp %479 : vector<8x96xf32>
    %cst_114 = arith.constant 1.000000e+00 : f32
    %481 = vector.broadcast %cst_114 : f32 to vector<8x96xf32>
    %482 = arith.addf %481, %480 : vector<8x96xf32>
    %483 = arith.divf %481, %482 : vector<8x96xf32>
    %484 = vector.extract_strided_slice %477 {offsets = [0, 96], sizes = [8, 32], strides = [1, 1]} : vector<8x128xf32> to vector<8x32xf32>
    %485 = math.tanh %484 : vector<8x32xf32>
    %486 = vector.extract_strided_slice %483 {offsets = [0, 0], sizes = [8, 16], strides = [1, 1]} : vector<8x96xf32> to vector<8x16xf32>
    %487 = vector.extract_strided_slice %483 {offsets = [0, 16], sizes = [8, 16], strides = [1, 1]} : vector<8x96xf32> to vector<8x16xf32>
    %488 = vector.extract_strided_slice %483 {offsets = [0, 32], sizes = [8, 16], strides = [1, 1]} : vector<8x96xf32> to vector<8x16xf32>
    %489 = vector.extract_strided_slice %483 {offsets = [0, 48], sizes = [8, 16], strides = [1, 1]} : vector<8x96xf32> to vector<8x16xf32>
    %490 = vector.extract_strided_slice %483 {offsets = [0, 64], sizes = [8, 16], strides = [1, 1]} : vector<8x96xf32> to vector<8x16xf32>
    %491 = vector.extract_strided_slice %483 {offsets = [0, 80], sizes = [8, 16], strides = [1, 1]} : vector<8x96xf32> to vector<8x16xf32>
    %492 = vector.extract_strided_slice %485 {offsets = [0, 0], sizes = [8, 16], strides = [1, 1]} : vector<8x32xf32> to vector<8x16xf32>
    %493 = vector.extract_strided_slice %485 {offsets = [0, 16], sizes = [8, 16], strides = [1, 1]} : vector<8x32xf32> to vector<8x16xf32>
    %494 = arith.mulf %487, %431 : vector<8x16xf32>
    %495 = arith.mulf %486, %492 : vector<8x16xf32>
    %496 = arith.addf %494, %495 : vector<8x16xf32>
    %497 = math.tanh %496 : vector<8x16xf32>
    %498 = arith.mulf %488, %497 : vector<8x16xf32>
    %499 = vector.broadcast %c7_i32_107 : i32 to vector<8x1xi32>
    %500 = arith.cmpi slt, %499, %1 : vector<8x1xi32>
    %cst_115 = arith.constant -1.000000e+00 : f32
    %501 = vector.shape_cast %500 : vector<8x1xi1> to vector<8x1xi1>
    %502 = vector.broadcast %501 : vector<8x1xi1> to vector<8x16xi1>
    %503 = vector.broadcast %cst_115 : f32 to vector<8x16xf32>
    %504 = arith.select %502, %498, %503 : vector<8x16xi1>, vector<8x16xf32>
    %505 = arith.index_cast %c7_i32_107 : i32 to index
    %c0_116 = arith.constant 0 : index
    %c0_117 = arith.constant 0 : index
    %506 = vector.load %arg3[%505, %c0_116, %c0_117] : memref<8x8x32xf32, #tpu.memory_space<vmem>>, vector<1x8x16xf32>
    %507 = vector.shape_cast %506 : vector<1x8x16xf32> to vector<8x16xf32>
    %508 = vector.shape_cast %504 : vector<8x16xf32> to vector<1x8x16xf32>
    tpu.vector_store %arg3[%505, %c0_116, %c0_117], %508 {strides = array<i32>} : memref<8x8x32xf32, #tpu.memory_space<vmem>>, vector<1x8x16xf32>,
    %509 = arith.mulf %490, %458 : vector<8x16xf32>
    %510 = arith.mulf %489, %493 : vector<8x16xf32>
    %511 = arith.addf %509, %510 : vector<8x16xf32>
    %512 = math.tanh %511 : vector<8x16xf32>
    %513 = arith.mulf %491, %512 : vector<8x16xf32>
    %514 = vector.broadcast %468 : i32 to vector<8x1xi32>
    %515 = arith.cmpi slt, %514, %1 : vector<8x1xi32>
    %cst_118 = arith.constant 0.000000e+00 : f32
    %516 = vector.shape_cast %515 : vector<8x1xi1> to vector<8x1xi1>
    %517 = vector.broadcast %516 : vector<8x1xi1> to vector<8x16xi1>
    %518 = vector.broadcast %cst_118 : f32 to vector<8x16xf32>
    %519 = arith.select %517, %513, %518 : vector<8x16xi1>, vector<8x16xf32>
    %cst_119 = arith.constant 0.000000e+00 : f32
    %520 = vector.shape_cast %515 : vector<8x1xi1> to vector<8x1xi1>
    %521 = vector.broadcast %520 : vector<8x1xi1> to vector<8x16xi1>
    %522 = vector.broadcast %cst_119 : f32 to vector<8x16xf32>
    %523 = arith.select %521, %511, %522 : vector<8x16xi1>, vector<8x16xf32>
    %cst_120 = arith.constant -1.000000e+00 : f32
    %524 = vector.shape_cast %515 : vector<8x1xi1> to vector<8x1xi1>
    %525 = vector.broadcast %524 : vector<8x1xi1> to vector<8x16xi1>
    %526 = vector.broadcast %cst_120 : f32 to vector<8x16xf32>
    %527 = arith.select %525, %519, %526 : vector<8x16xi1>, vector<8x16xf32>
    %528 = arith.index_cast %468 : i32 to index
    %c0_121 = arith.constant 0 : index
    %c16_122 = arith.constant 16 : index
    %529 = vector.load %arg3[%528, %c0_121, %c16_122] : memref<8x8x32xf32, #tpu.memory_space<vmem>>, vector<1x8x16xf32>
    %530 = vector.shape_cast %529 : vector<1x8x16xf32> to vector<8x16xf32>
    %531 = vector.shape_cast %527 : vector<8x16xf32> to vector<1x8x16xf32>
    tpu.vector_store %arg3[%528, %c0_121, %c16_122], %531 {strides = array<i32>} : memref<8x8x32xf32, #tpu.memory_space<vmem>>, vector<1x8x16xf32>,
    %532 = tpu.concatenate %498, %519 in 1 : vector<8x16xf32>, vector<8x16xf32> -> vector<8x32xf32>
    %c8_i32 = arith.constant 8 : i32
    return
  }
}

module attributes {stable_mosaic.version = 11 : i64} {
  func.func @_matmul_bias_kernel(%arg0: i32, %arg1: memref<64x64xf32, #tpu.memory_space<vmem>>, %arg2: memref<64x128xf32, #tpu.memory_space<vmem>>, %arg3: memref<1x128xf32, #tpu.memory_space<vmem>>, %arg4: memref<64x128xf32, #tpu.memory_space<vmem>>) attributes {dimension_semantics = [#tpu.dimension_semantics<parallel>], iteration_bounds = array<i64: 1>, scalar_prefetch = 0 : i64, scratch_operands = 0 : i64, tpu.core_type = #tpu.core_type<tc>, window_params = [{transform_indices = @transform_0, window_bounds = array<i64: 64, 64>}, {pipeline_mode = #tpu.pipeline_mode<synchronous>, transform_indices = @transform_1, window_bounds = array<i64: 64, 128>}, {pipeline_mode = #tpu.pipeline_mode<synchronous>, transform_indices = @transform_2, window_bounds = array<i64: 1, 128>}, {transform_indices = @transform_3, window_bounds = array<i64: 64, 128>}]} {
    %c0 = arith.constant 0 : index
    %c0_0 = arith.constant 0 : index
    %0 = vector.load %arg1[%c0, %c0_0] : memref<64x64xf32, #tpu.memory_space<vmem>>, vector<64x64xf32>
    %c0_1 = arith.constant 0 : index
    %c0_2 = arith.constant 0 : index
    %1 = vector.load %arg2[%c0_1, %c0_2] : memref<64x128xf32, #tpu.memory_space<vmem>>, vector<64x128xf32>
    %cst = arith.constant dense<0.000000e+00> : vector<64x128xf32>
    %2 = tpu.matmul %0, %1, %cst {dimension_numbers = #tpu.dot_dimension_numbers<[1], [0], [0], [1], [0, 0, 1, 1], [], []>} : vector<64x64xf32>, vector<64x128xf32>, vector<64x128xf32> -> vector<64x128xf32>
    %c0_3 = arith.constant 0 : index
    %c0_4 = arith.constant 0 : index
    %3 = vector.load %arg3[%c0_3, %c0_4] : memref<1x128xf32, #tpu.memory_space<vmem>>, vector<1x128xf32>
    %4 = vector.broadcast %3 : vector<1x128xf32> to vector<64x128xf32>
    %5 = arith.addf %2, %4 : vector<64x128xf32>
    %c0_5 = arith.constant 0 : index
    %c0_6 = arith.constant 0 : index
    %6 = vector.load %arg4[%c0_5, %c0_6] : memref<64x128xf32, #tpu.memory_space<vmem>>, vector<64x128xf32>
    tpu.vector_store %arg4[%c0_5, %c0_6], %5 {strides = array<i32>} : memref<64x128xf32, #tpu.memory_space<vmem>>, vector<64x128xf32>,
    return
  }
  func.func @transform_0(%arg0: i32) -> (i32, i32) {
    %c0_i32 = arith.constant 0 : i32
    %c0_i32_0 = arith.constant 0 : i32
    return %arg0, %c0_i32 : i32, i32
  }
  func.func @transform_1(%arg0: i32) -> (i32, i32) {
    %c0_i32 = arith.constant 0 : i32
    %c0_i32_0 = arith.constant 0 : i32
    %c0_i32_1 = arith.constant 0 : i32
    return %c0_i32, %c0_i32_0 : i32, i32
  }
  func.func @transform_2(%arg0: i32) -> (i32, i32) {
    %c0_i32 = arith.constant 0 : i32
    %c0_i32_0 = arith.constant 0 : i32
    %c0_i32_1 = arith.constant 0 : i32
    return %c0_i32, %c0_i32_0 : i32, i32
  }
  func.func @transform_3(%arg0: i32) -> (i32, i32) {
    %c0_i32 = arith.constant 0 : i32
    %c0_i32_0 = arith.constant 0 : i32
    return %arg0, %c0_i32 : i32, i32
  }
}

module attributes {stable_mosaic.version = 11 : i64} {
  func.func @_bilstm_rec_kernel(%arg0: memref<8x8x256xf32, #tpu.memory_space<vmem>>, %arg1: memref<64x256xf32, #tpu.memory_space<vmem>>, %arg2: memref<8x1xi32, #tpu.memory_space<vmem>>, %arg3: memref<8x8x64xf32, #tpu.memory_space<vmem>>) attributes {dimension_semantics = [], scalar_prefetch = 0 : i64, scratch_operands = 0 : i64, tpu.core_type = #tpu.core_type<tc>} {
    %c0 = arith.constant 0 : index
    %c0_0 = arith.constant 0 : index
    %0 = vector.load %arg1[%c0, %c0_0] : memref<64x256xf32, #tpu.memory_space<vmem>>, vector<64x256xf32>
    %c0_1 = arith.constant 0 : index
    %c0_2 = arith.constant 0 : index
    %1 = vector.load %arg2[%c0_1, %c0_2] : memref<8x1xi32, #tpu.memory_space<vmem>>, vector<8x1xi32>
    %2 = tpu.iota {dimensions = array<i32: 1>} : vector<8x256xi32>
    %c96_i32 = arith.constant 96 : i32
    %3 = vector.broadcast %c96_i32 : i32 to vector<8x256xi32>
    %4 = arith.cmpi slt, %2, %3 : vector<8x256xi32>
    %c192_i32 = arith.constant 192 : i32
    %5 = vector.broadcast %c192_i32 : i32 to vector<8x256xi32>
    %6 = arith.cmpi sge, %2, %5 : vector<8x256xi32>
    %c224_i32 = arith.constant 224 : i32
    %7 = vector.broadcast %c224_i32 : i32 to vector<8x256xi32>
    %8 = arith.cmpi slt, %2, %7 : vector<8x256xi32>
    %9 = arith.andi %6, %8 : vector<8x256xi1>
    %10 = arith.ori %4, %9 : vector<8x256xi1>
    %cst = arith.constant 0.000000e+00 : f32
    %11 = vector.broadcast %cst : f32 to vector<8x64xf32>
    %cst_3 = arith.constant 0.000000e+00 : f32
    %12 = vector.broadcast %cst_3 : f32 to vector<8x32xf32>
    %c0_i32 = arith.constant 0 : i32
    %c7_i32 = arith.constant 7 : i32
    %13 = arith.subi %c7_i32, %c0_i32 : i32
    %14 = arith.index_cast %c0_i32 : i32 to index
    %c0_4 = arith.constant 0 : index
    %c0_5 = arith.constant 0 : index
    %15 = vector.load %arg0[%14, %c0_4, %c0_5] : memref<8x8x256xf32, #tpu.memory_space<vmem>>, vector<1x8x256xf32>
    %16 = vector.shape_cast %15 : vector<1x8x256xf32> to vector<8x256xf32>
    %17 = arith.index_cast %13 : i32 to index
    %c0_6 = arith.constant 0 : index
    %c0_7 = arith.constant 0 : index
    %18 = vector.load %arg0[%17, %c0_6, %c0_7] : memref<8x8x256xf32, #tpu.memory_space<vmem>>, vector<1x8x256xf32>
    %19 = vector.shape_cast %18 : vector<1x8x256xf32> to vector<8x256xf32>
    %20 = arith.select %10, %16, %19 : vector<8x256xi1>, vector<8x256xf32>
    %cst_8 = arith.constant dense<0.000000e+00> : vector<8x256xf32>
    %21 = tpu.matmul %11, %0, %cst_8 {dimension_numbers = #tpu.dot_dimension_numbers<[1], [0], [0], [1], [0, 0, 1, 1], [], []>} : vector<8x64xf32>, vector<64x256xf32>, vector<8x256xf32> -> vector<8x256xf32>
    %22 = arith.addf %20, %21 : vector<8x256xf32>
    %23 = vector.extract_strided_slice %22 {offsets = [0, 0], sizes = [8, 192], strides = [1, 1]} : vector<8x256xf32> to vector<8x192xf32>
    %24 = arith.negf %23 : vector<8x192xf32>
    %25 = math.exp %24 : vector<8x192xf32>
    %cst_9 = arith.constant 1.000000e+00 : f32
    %26 = vector.broadcast %cst_9 : f32 to vector<8x192xf32>
    %27 = arith.addf %26, %25 : vector<8x192xf32>
    %28 = arith.divf %26, %27 : vector<8x192xf32>
    %29 = vector.extract_strided_slice %22 {offsets = [0, 192], sizes = [8, 64], strides = [1, 1]} : vector<8x256xf32> to vector<8x64xf32>
    %30 = math.tanh %29 : vector<8x64xf32>
    %31 = vector.extract_strided_slice %28 {offsets = [0, 0], sizes = [8, 32], strides = [1, 1]} : vector<8x192xf32> to vector<8x32xf32>
    %32 = vector.extract_strided_slice %28 {offsets = [0, 32], sizes = [8, 32], strides = [1, 1]} : vector<8x192xf32> to vector<8x32xf32>
    %33 = vector.extract_strided_slice %28 {offsets = [0, 64], sizes = [8, 32], strides = [1, 1]} : vector<8x192xf32> to vector<8x32xf32>
    %34 = vector.extract_strided_slice %28 {offsets = [0, 96], sizes = [8, 32], strides = [1, 1]} : vector<8x192xf32> to vector<8x32xf32>
    %35 = vector.extract_strided_slice %28 {offsets = [0, 128], sizes = [8, 32], strides = [1, 1]} : vector<8x192xf32> to vector<8x32xf32>
    %36 = vector.extract_strided_slice %28 {offsets = [0, 160], sizes = [8, 32], strides = [1, 1]} : vector<8x192xf32> to vector<8x32xf32>
    %37 = vector.extract_strided_slice %30 {offsets = [0, 0], sizes = [8, 32], strides = [1, 1]} : vector<8x64xf32> to vector<8x32xf32>
    %38 = vector.extract_strided_slice %30 {offsets = [0, 32], sizes = [8, 32], strides = [1, 1]} : vector<8x64xf32> to vector<8x32xf32>
    %39 = arith.mulf %32, %12 : vector<8x32xf32>
    %40 = arith.mulf %31, %37 : vector<8x32xf32>
    %41 = arith.addf %39, %40 : vector<8x32xf32>
    %42 = math.tanh %41 : vector<8x32xf32>
    %43 = arith.mulf %33, %42 : vector<8x32xf32>
    %44 = vector.broadcast %c0_i32 : i32 to vector<8x1xi32>
    %45 = arith.cmpi slt, %44, %1 : vector<8x1xi32>
    %cst_10 = arith.constant -1.000000e+00 : f32
    %46 = vector.shape_cast %45 : vector<8x1xi1> to vector<8x1xi1>
    %47 = vector.broadcast %46 : vector<8x1xi1> to vector<8x32xi1>
    %48 = vector.broadcast %cst_10 : f32 to vector<8x32xf32>
    %49 = arith.select %47, %43, %48 : vector<8x32xi1>, vector<8x32xf32>
    %50 = arith.index_cast %c0_i32 : i32 to index
    %c0_11 = arith.constant 0 : index
    %c0_12 = arith.constant 0 : index
    %51 = vector.load %arg3[%50, %c0_11, %c0_12] : memref<8x8x64xf32, #tpu.memory_space<vmem>>, vector<1x8x32xf32>
    %52 = vector.shape_cast %51 : vector<1x8x32xf32> to vector<8x32xf32>
    %53 = vector.shape_cast %49 : vector<8x32xf32> to vector<1x8x32xf32>
    tpu.vector_store %arg3[%50, %c0_11, %c0_12], %53 {strides = array<i32>} : memref<8x8x64xf32, #tpu.memory_space<vmem>>, vector<1x8x32xf32>,
    %54 = arith.mulf %35, %12 : vector<8x32xf32>
    %55 = arith.mulf %34, %38 : vector<8x32xf32>
    %56 = arith.addf %54, %55 : vector<8x32xf32>
    %57 = math.tanh %56 : vector<8x32xf32>
    %58 = arith.mulf %36, %57 : vector<8x32xf32>
    %59 = vector.broadcast %13 : i32 to vector<8x1xi32>
    %60 = arith.cmpi slt, %59, %1 : vector<8x1xi32>
    %cst_13 = arith.constant 0.000000e+00 : f32
    %61 = vector.shape_cast %60 : vector<8x1xi1> to vector<8x1xi1>
    %62 = vector.broadcast %61 : vector<8x1xi1> to vector<8x32xi1>
    %63 = vector.broadcast %cst_13 : f32 to vector<8x32xf32>
    %64 = arith.select %62, %58, %63 : vector<8x32xi1>, vector<8x32xf32>
    %cst_14 = arith.constant 0.000000e+00 : f32
    %65 = vector.shape_cast %60 : vector<8x1xi1> to vector<8x1xi1>
    %66 = vector.broadcast %65 : vector<8x1xi1> to vector<8x32xi1>
    %67 = vector.broadcast %cst_14 : f32 to vector<8x32xf32>
    %68 = arith.select %66, %56, %67 : vector<8x32xi1>, vector<8x32xf32>
    %cst_15 = arith.constant -1.000000e+00 : f32
    %69 = vector.shape_cast %60 : vector<8x1xi1> to vector<8x1xi1>
    %70 = vector.broadcast %69 : vector<8x1xi1> to vector<8x32xi1>
    %71 = vector.broadcast %cst_15 : f32 to vector<8x32xf32>
    %72 = arith.select %70, %64, %71 : vector<8x32xi1>, vector<8x32xf32>
    %73 = arith.index_cast %13 : i32 to index
    %c0_16 = arith.constant 0 : index
    %c32 = arith.constant 32 : index
    %74 = vector.load %arg3[%73, %c0_16, %c32] : memref<8x8x64xf32, #tpu.memory_space<vmem>>, vector<1x8x32xf32>
    %75 = vector.shape_cast %74 : vector<1x8x32xf32> to vector<8x32xf32>
    %76 = vector.shape_cast %72 : vector<8x32xf32> to vector<1x8x32xf32>
    tpu.vector_store %arg3[%73, %c0_16, %c32], %76 {strides = array<i32>} : memref<8x8x64xf32, #tpu.memory_space<vmem>>, vector<1x8x32xf32>,
    %77 = tpu.concatenate %43, %64 in 1 : vector<8x32xf32>, vector<8x32xf32> -> vector<8x64xf32>
    %c1_i32 = arith.constant 1 : i32
    %c7_i32_17 = arith.constant 7 : i32
    %78 = arith.subi %c7_i32_17, %c1_i32 : i32
    %79 = arith.index_cast %c1_i32 : i32 to index
    %c0_18 = arith.constant 0 : index
    %c0_19 = arith.constant 0 : index
    %80 = vector.load %arg0[%79, %c0_18, %c0_19] : memref<8x8x256xf32, #tpu.memory_space<vmem>>, vector<1x8x256xf32>
    %81 = vector.shape_cast %80 : vector<1x8x256xf32> to vector<8x256xf32>
    %82 = arith.index_cast %78 : i32 to index
    %c0_20 = arith.constant 0 : index
    %c0_21 = arith.constant 0 : index
    %83 = vector.load %arg0[%82, %c0_20, %c0_21] : memref<8x8x256xf32, #tpu.memory_space<vmem>>, vector<1x8x256xf32>
    %84 = vector.shape_cast %83 : vector<1x8x256xf32> to vector<8x256xf32>
    %85 = arith.select %10, %81, %84 : vector<8x256xi1>, vector<8x256xf32>
    %cst_22 = arith.constant dense<0.000000e+00> : vector<8x256xf32>
    %86 = tpu.matmul %77, %0, %cst_22 {dimension_numbers = #tpu.dot_dimension_numbers<[1], [0], [0], [1], [0, 0, 1, 1], [], []>} : vector<8x64xf32>, vector<64x256xf32>, vector<8x256xf32> -> vector<8x256xf32>
    %87 = arith.addf %85, %86 : vector<8x256xf32>
    %88 = vector.extract_strided_slice %87 {offsets = [0, 0], sizes = [8, 192], strides = [1, 1]} : vector<8x256xf32> to vector<8x192xf32>
    %89 = arith.negf %88 : vector<8x192xf32>
    %90 = math.exp %89 : vector<8x192xf32>
    %cst_23 = arith.constant 1.000000e+00 : f32
    %91 = vector.broadcast %cst_23 : f32 to vector<8x192xf32>
    %92 = arith.addf %91, %90 : vector<8x192xf32>
    %93 = arith.divf %91, %92 : vector<8x192xf32>
    %94 = vector.extract_strided_slice %87 {offsets = [0, 192], sizes = [8, 64], strides = [1, 1]} : vector<8x256xf32> to vector<8x64xf32>
    %95 = math.tanh %94 : vector<8x64xf32>
    %96 = vector.extract_strided_slice %93 {offsets = [0, 0], sizes = [8, 32], strides = [1, 1]} : vector<8x192xf32> to vector<8x32xf32>
    %97 = vector.extract_strided_slice %93 {offsets = [0, 32], sizes = [8, 32], strides = [1, 1]} : vector<8x192xf32> to vector<8x32xf32>
    %98 = vector.extract_strided_slice %93 {offsets = [0, 64], sizes = [8, 32], strides = [1, 1]} : vector<8x192xf32> to vector<8x32xf32>
    %99 = vector.extract_strided_slice %93 {offsets = [0, 96], sizes = [8, 32], strides = [1, 1]} : vector<8x192xf32> to vector<8x32xf32>
    %100 = vector.extract_strided_slice %93 {offsets = [0, 128], sizes = [8, 32], strides = [1, 1]} : vector<8x192xf32> to vector<8x32xf32>
    %101 = vector.extract_strided_slice %93 {offsets = [0, 160], sizes = [8, 32], strides = [1, 1]} : vector<8x192xf32> to vector<8x32xf32>
    %102 = vector.extract_strided_slice %95 {offsets = [0, 0], sizes = [8, 32], strides = [1, 1]} : vector<8x64xf32> to vector<8x32xf32>
    %103 = vector.extract_strided_slice %95 {offsets = [0, 32], sizes = [8, 32], strides = [1, 1]} : vector<8x64xf32> to vector<8x32xf32>
    %104 = arith.mulf %97, %41 : vector<8x32xf32>
    %105 = arith.mulf %96, %102 : vector<8x32xf32>
    %106 = arith.addf %104, %105 : vector<8x32xf32>
    %107 = math.tanh %106 : vector<8x32xf32>
    %108 = arith.mulf %98, %107 : vector<8x32xf32>
    %109 = vector.broadcast %c1_i32 : i32 to vector<8x1xi32>
    %110 = arith.cmpi slt, %109, %1 : vector<8x1xi32>
    %cst_24 = arith.constant -1.000000e+00 : f32
    %111 = vector.shape_cast %110 : vector<8x1xi1> to vector<8x1xi1>
    %112 = vector.broadcast %111 : vector<8x1xi1> to vector<8x32xi1>
    %113 = vector.broadcast %cst_24 : f32 to vector<8x32xf32>
    %114 = arith.select %112, %108, %113 : vector<8x32xi1>, vector<8x32xf32>
    %115 = arith.index_cast %c1_i32 : i32 to index
    %c0_25 = arith.constant 0 : index
    %c0_26 = arith.constant 0 : index
    %116 = vector.load %arg3[%115, %c0_25, %c0_26] : memref<8x8x64xf32, #tpu.memory_space<vmem>>, vector<1x8x32xf32>
    %117 = vector.shape_cast %116 : vector<1x8x32xf32> to vector<8x32xf32>
    %118 = vector.shape_cast %114 : vector<8x32xf32> to vector<1x8x32xf32>
    tpu.vector_store %arg3[%115, %c0_25, %c0_26], %118 {strides = array<i32>} : memref<8x8x64xf32, #tpu.memory_space<vmem>>, vector<1x8x32xf32>,
    %119 = arith.mulf %100, %68 : vector<8x32xf32>
    %120 = arith.mulf %99, %103 : vector<8x32xf32>
    %121 = arith.addf %119, %120 : vector<8x32xf32>
    %122 = math.tanh %121 : vector<8x32xf32>
    %123 = arith.mulf %101, %122 : vector<8x32xf32>
    %124 = vector.broadcast %78 : i32 to vector<8x1xi32>
    %125 = arith.cmpi slt, %124, %1 : vector<8x1xi32>
    %cst_27 = arith.constant 0.000000e+00 : f32
    %126 = vector.shape_cast %125 : vector<8x1xi1> to vector<8x1xi1>
    %127 = vector.broadcast %126 : vector<8x1xi1> to vector<8x32xi1>
    %128 = vector.broadcast %cst_27 : f32 to vector<8x32xf32>
    %129 = arith.select %127, %123, %128 : vector<8x32xi1>, vector<8x32xf32>
    %cst_28 = arith.constant 0.000000e+00 : f32
    %130 = vector.shape_cast %125 : vector<8x1xi1> to vector<8x1xi1>
    %131 = vector.broadcast %130 : vector<8x1xi1> to vector<8x32xi1>
    %132 = vector.broadcast %cst_28 : f32 to vector<8x32xf32>
    %133 = arith.select %131, %121, %132 : vector<8x32xi1>, vector<8x32xf32>
    %cst_29 = arith.constant -1.000000e+00 : f32
    %134 = vector.shape_cast %125 : vector<8x1xi1> to vector<8x1xi1>
    %135 = vector.broadcast %134 : vector<8x1xi1> to vector<8x32xi1>
    %136 = vector.broadcast %cst_29 : f32 to vector<8x32xf32>
    %137 = arith.select %135, %129, %136 : vector<8x32xi1>, vector<8x32xf32>
    %138 = arith.index_cast %78 : i32 to index
    %c0_30 = arith.constant 0 : index
    %c32_31 = arith.constant 32 : index
    %139 = vector.load %arg3[%138, %c0_30, %c32_31] : memref<8x8x64xf32, #tpu.memory_space<vmem>>, vector<1x8x32xf32>
    %140 = vector.shape_cast %139 : vector<1x8x32xf32> to vector<8x32xf32>
    %141 = vector.shape_cast %137 : vector<8x32xf32> to vector<1x8x32xf32>
    tpu.vector_store %arg3[%138, %c0_30, %c32_31], %141 {strides = array<i32>} : memref<8x8x64xf32, #tpu.memory_space<vmem>>, vector<1x8x32xf32>,
    %142 = tpu.concatenate %108, %129 in 1 : vector<8x32xf32>, vector<8x32xf32> -> vector<8x64xf32>
    %c2_i32 = arith.constant 2 : i32
    %c7_i32_32 = arith.constant 7 : i32
    %143 = arith.subi %c7_i32_32, %c2_i32 : i32
    %144 = arith.index_cast %c2_i32 : i32 to index
    %c0_33 = arith.constant 0 : index
    %c0_34 = arith.constant 0 : index
    %145 = vector.load %arg0[%144, %c0_33, %c0_34] : memref<8x8x256xf32, #tpu.memory_space<vmem>>, vector<1x8x256xf32>
    %146 = vector.shape_cast %145 : vector<1x8x256xf32> to vector<8x256xf32>
    %147 = arith.index_cast %143 : i32 to index
    %c0_35 = arith.constant 0 : index
    %c0_36 = arith.constant 0 : index
    %148 = vector.load %arg0[%147, %c0_35, %c0_36] : memref<8x8x256xf32, #tpu.memory_space<vmem>>, vector<1x8x256xf32>
    %149 = vector.shape_cast %148 : vector<1x8x256xf32> to vector<8x256xf32>
    %150 = arith.select %10, %146, %149 : vector<8x256xi1>, vector<8x256xf32>
    %cst_37 = arith.constant dense<0.000000e+00> : vector<8x256xf32>
    %151 = tpu.matmul %142, %0, %cst_37 {dimension_numbers = #tpu.dot_dimension_numbers<[1], [0], [0], [1], [0, 0, 1, 1], [], []>} : vector<8x64xf32>, vector<64x256xf32>, vector<8x256xf32> -> vector<8x256xf32>
    %152 = arith.addf %150, %151 : vector<8x256xf32>
    %153 = vector.extract_strided_slice %152 {offsets = [0, 0], sizes = [8, 192], strides = [1, 1]} : vector<8x256xf32> to vector<8x192xf32>
    %154 = arith.negf %153 : vector<8x192xf32>
    %155 = math.exp %154 : vector<8x192xf32>
    %cst_38 = arith.constant 1.000000e+00 : f32
    %156 = vector.broadcast %cst_38 : f32 to vector<8x192xf32>
    %157 = arith.addf %156, %155 : vector<8x192xf32>
    %158 = arith.divf %156, %157 : vector<8x192xf32>
    %159 = vector.extract_strided_slice %152 {offsets = [0, 192], sizes = [8, 64], strides = [1, 1]} : vector<8x256xf32> to vector<8x64xf32>
    %160 = math.tanh %159 : vector<8x64xf32>
    %161 = vector.extract_strided_slice %158 {offsets = [0, 0], sizes = [8, 32], strides = [1, 1]} : vector<8x192xf32> to vector<8x32xf32>
    %162 = vector.extract_strided_slice %158 {offsets = [0, 32], sizes = [8, 32], strides = [1, 1]} : vector<8x192xf32> to vector<8x32xf32>
    %163 = vector.extract_strided_slice %158 {offsets = [0, 64], sizes = [8, 32], strides = [1, 1]} : vector<8x192xf32> to vector<8x32xf32>
    %164 = vector.extract_strided_slice %158 {offsets = [0, 96], sizes = [8, 32], strides = [1, 1]} : vector<8x192xf32> to vector<8x32xf32>
    %165 = vector.extract_strided_slice %158 {offsets = [0, 128], sizes = [8, 32], strides = [1, 1]} : vector<8x192xf32> to vector<8x32xf32>
    %166 = vector.extract_strided_slice %158 {offsets = [0, 160], sizes = [8, 32], strides = [1, 1]} : vector<8x192xf32> to vector<8x32xf32>
    %167 = vector.extract_strided_slice %160 {offsets = [0, 0], sizes = [8, 32], strides = [1, 1]} : vector<8x64xf32> to vector<8x32xf32>
    %168 = vector.extract_strided_slice %160 {offsets = [0, 32], sizes = [8, 32], strides = [1, 1]} : vector<8x64xf32> to vector<8x32xf32>
    %169 = arith.mulf %162, %106 : vector<8x32xf32>
    %170 = arith.mulf %161, %167 : vector<8x32xf32>
    %171 = arith.addf %169, %170 : vector<8x32xf32>
    %172 = math.tanh %171 : vector<8x32xf32>
    %173 = arith.mulf %163, %172 : vector<8x32xf32>
    %174 = vector.broadcast %c2_i32 : i32 to vector<8x1xi32>
    %175 = arith.cmpi slt, %174, %1 : vector<8x1xi32>
    %cst_39 = arith.constant -1.000000e+00 : f32
    %176 = vector.shape_cast %175 : vector<8x1xi1> to vector<8x1xi1>
    %177 = vector.broadcast %176 : vector<8x1xi1> to vector<8x32xi1>
    %178 = vector.broadcast %cst_39 : f32 to vector<8x32xf32>
    %179 = arith.select %177, %173, %178 : vector<8x32xi1>, vector<8x32xf32>
    %180 = arith.index_cast %c2_i32 : i32 to index
    %c0_40 = arith.constant 0 : index
    %c0_41 = arith.constant 0 : index
    %181 = vector.load %arg3[%180, %c0_40, %c0_41] : memref<8x8x64xf32, #tpu.memory_space<vmem>>, vector<1x8x32xf32>
    %182 = vector.shape_cast %181 : vector<1x8x32xf32> to vector<8x32xf32>
    %183 = vector.shape_cast %179 : vector<8x32xf32> to vector<1x8x32xf32>
    tpu.vector_store %arg3[%180, %c0_40, %c0_41], %183 {strides = array<i32>} : memref<8x8x64xf32, #tpu.memory_space<vmem>>, vector<1x8x32xf32>,
    %184 = arith.mulf %165, %133 : vector<8x32xf32>
    %185 = arith.mulf %164, %168 : vector<8x32xf32>
    %186 = arith.addf %184, %185 : vector<8x32xf32>
    %187 = math.tanh %186 : vector<8x32xf32>
    %188 = arith.mulf %166, %187 : vector<8x32xf32>
    %189 = vector.broadcast %143 : i32 to vector<8x1xi32>
    %190 = arith.cmpi slt, %189, %1 : vector<8x1xi32>
    %cst_42 = arith.constant 0.000000e+00 : f32
    %191 = vector.shape_cast %190 : vector<8x1xi1> to vector<8x1xi1>
    %192 = vector.broadcast %191 : vector<8x1xi1> to vector<8x32xi1>
    %193 = vector.broadcast %cst_42 : f32 to vector<8x32xf32>
    %194 = arith.select %192, %188, %193 : vector<8x32xi1>, vector<8x32xf32>
    %cst_43 = arith.constant 0.000000e+00 : f32
    %195 = vector.shape_cast %190 : vector<8x1xi1> to vector<8x1xi1>
    %196 = vector.broadcast %195 : vector<8x1xi1> to vector<8x32xi1>
    %197 = vector.broadcast %cst_43 : f32 to vector<8x32xf32>
    %198 = arith.select %196, %186, %197 : vector<8x32xi1>, vector<8x32xf32>
    %cst_44 = arith.constant -1.000000e+00 : f32
    %199 = vector.shape_cast %190 : vector<8x1xi1> to vector<8x1xi1>
    %200 = vector.broadcast %199 : vector<8x1xi1> to vector<8x32xi1>
    %201 = vector.broadcast %cst_44 : f32 to vector<8x32xf32>
    %202 = arith.select %200, %194, %201 : vector<8x32xi1>, vector<8x32xf32>
    %203 = arith.index_cast %143 : i32 to index
    %c0_45 = arith.constant 0 : index
    %c32_46 = arith.constant 32 : index
    %204 = vector.load %arg3[%203, %c0_45, %c32_46] : memref<8x8x64xf32, #tpu.memory_space<vmem>>, vector<1x8x32xf32>
    %205 = vector.shape_cast %204 : vector<1x8x32xf32> to vector<8x32xf32>
    %206 = vector.shape_cast %202 : vector<8x32xf32> to vector<1x8x32xf32>
    tpu.vector_store %arg3[%203, %c0_45, %c32_46], %206 {strides = array<i32>} : memref<8x8x64xf32, #tpu.memory_space<vmem>>, vector<1x8x32xf32>,
    %207 = tpu.concatenate %173, %194 in 1 : vector<8x32xf32>, vector<8x32xf32> -> vector<8x64xf32>
    %c3_i32 = arith.constant 3 : i32
    %c7_i32_47 = arith.constant 7 : i32
    %208 = arith.subi %c7_i32_47, %c3_i32 : i32
    %209 = arith.index_cast %c3_i32 : i32 to index
    %c0_48 = arith.constant 0 : index
    %c0_49 = arith.constant 0 : index
    %210 = vector.load %arg0[%209, %c0_48, %c0_49] : memref<8x8x256xf32, #tpu.memory_space<vmem>>, vector<1x8x256xf32>
    %211 = vector.shape_cast %210 : vector<1x8x256xf32> to vector<8x256xf32>
    %212 = arith.index_cast %208 : i32 to index
    %c0_50 = arith.constant 0 : index
    %c0_51 = arith.constant 0 : index
    %213 = vector.load %arg0[%212, %c0_50, %c0_51] : memref<8x8x256xf32, #tpu.memory_space<vmem>>, vector<1x8x256xf32>
    %214 = vector.shape_cast %213 : vector<1x8x256xf32> to vector<8x256xf32>
    %215 = arith.select %10, %211, %214 : vector<8x256xi1>, vector<8x256xf32>
    %cst_52 = arith.constant dense<0.000000e+00> : vector<8x256xf32>
    %216 = tpu.matmul %207, %0, %cst_52 {dimension_numbers = #tpu.dot_dimension_numbers<[1], [0], [0], [1], [0, 0, 1, 1], [], []>} : vector<8x64xf32>, vector<64x256xf32>, vector<8x256xf32> -> vector<8x256xf32>
    %217 = arith.addf %215, %216 : vector<8x256xf32>
    %218 = vector.extract_strided_slice %217 {offsets = [0, 0], sizes = [8, 192], strides = [1, 1]} : vector<8x256xf32> to vector<8x192xf32>
    %219 = arith.negf %218 : vector<8x192xf32>
    %220 = math.exp %219 : vector<8x192xf32>
    %cst_53 = arith.constant 1.000000e+00 : f32
    %221 = vector.broadcast %cst_53 : f32 to vector<8x192xf32>
    %222 = arith.addf %221, %220 : vector<8x192xf32>
    %223 = arith.divf %221, %222 : vector<8x192xf32>
    %224 = vector.extract_strided_slice %217 {offsets = [0, 192], sizes = [8, 64], strides = [1, 1]} : vector<8x256xf32> to vector<8x64xf32>
    %225 = math.tanh %224 : vector<8x64xf32>
    %226 = vector.extract_strided_slice %223 {offsets = [0, 0], sizes = [8, 32], strides = [1, 1]} : vector<8x192xf32> to vector<8x32xf32>
    %227 = vector.extract_strided_slice %223 {offsets = [0, 32], sizes = [8, 32], strides = [1, 1]} : vector<8x192xf32> to vector<8x32xf32>
    %228 = vector.extract_strided_slice %223 {offsets = [0, 64], sizes = [8, 32], strides = [1, 1]} : vector<8x192xf32> to vector<8x32xf32>
    %229 = vector.extract_strided_slice %223 {offsets = [0, 96], sizes = [8, 32], strides = [1, 1]} : vector<8x192xf32> to vector<8x32xf32>
    %230 = vector.extract_strided_slice %223 {offsets = [0, 128], sizes = [8, 32], strides = [1, 1]} : vector<8x192xf32> to vector<8x32xf32>
    %231 = vector.extract_strided_slice %223 {offsets = [0, 160], sizes = [8, 32], strides = [1, 1]} : vector<8x192xf32> to vector<8x32xf32>
    %232 = vector.extract_strided_slice %225 {offsets = [0, 0], sizes = [8, 32], strides = [1, 1]} : vector<8x64xf32> to vector<8x32xf32>
    %233 = vector.extract_strided_slice %225 {offsets = [0, 32], sizes = [8, 32], strides = [1, 1]} : vector<8x64xf32> to vector<8x32xf32>
    %234 = arith.mulf %227, %171 : vector<8x32xf32>
    %235 = arith.mulf %226, %232 : vector<8x32xf32>
    %236 = arith.addf %234, %235 : vector<8x32xf32>
    %237 = math.tanh %236 : vector<8x32xf32>
    %238 = arith.mulf %228, %237 : vector<8x32xf32>
    %239 = vector.broadcast %c3_i32 : i32 to vector<8x1xi32>
    %240 = arith.cmpi slt, %239, %1 : vector<8x1xi32>
    %cst_54 = arith.constant -1.000000e+00 : f32
    %241 = vector.shape_cast %240 : vector<8x1xi1> to vector<8x1xi1>
    %242 = vector.broadcast %241 : vector<8x1xi1> to vector<8x32xi1>
    %243 = vector.broadcast %cst_54 : f32 to vector<8x32xf32>
    %244 = arith.select %242, %238, %243 : vector<8x32xi1>, vector<8x32xf32>
    %245 = arith.index_cast %c3_i32 : i32 to index
    %c0_55 = arith.constant 0 : index
    %c0_56 = arith.constant 0 : index
    %246 = vector.load %arg3[%245, %c0_55, %c0_56] : memref<8x8x64xf32, #tpu.memory_space<vmem>>, vector<1x8x32xf32>
    %247 = vector.shape_cast %246 : vector<1x8x32xf32> to vector<8x32xf32>
    %248 = vector.shape_cast %244 : vector<8x32xf32> to vector<1x8x32xf32>
    tpu.vector_store %arg3[%245, %c0_55, %c0_56], %248 {strides = array<i32>} : memref<8x8x64xf32, #tpu.memory_space<vmem>>, vector<1x8x32xf32>,
    %249 = arith.mulf %230, %198 : vector<8x32xf32>
    %250 = arith.mulf %229, %233 : vector<8x32xf32>
    %251 = arith.addf %249, %250 : vector<8x32xf32>
    %252 = math.tanh %251 : vector<8x32xf32>
    %253 = arith.mulf %231, %252 : vector<8x32xf32>
    %254 = vector.broadcast %208 : i32 to vector<8x1xi32>
    %255 = arith.cmpi slt, %254, %1 : vector<8x1xi32>
    %cst_57 = arith.constant 0.000000e+00 : f32
    %256 = vector.shape_cast %255 : vector<8x1xi1> to vector<8x1xi1>
    %257 = vector.broadcast %256 : vector<8x1xi1> to vector<8x32xi1>
    %258 = vector.broadcast %cst_57 : f32 to vector<8x32xf32>
    %259 = arith.select %257, %253, %258 : vector<8x32xi1>, vector<8x32xf32>
    %cst_58 = arith.constant 0.000000e+00 : f32
    %260 = vector.shape_cast %255 : vector<8x1xi1> to vector<8x1xi1>
    %261 = vector.broadcast %260 : vector<8x1xi1> to vector<8x32xi1>
    %262 = vector.broadcast %cst_58 : f32 to vector<8x32xf32>
    %263 = arith.select %261, %251, %262 : vector<8x32xi1>, vector<8x32xf32>
    %cst_59 = arith.constant -1.000000e+00 : f32
    %264 = vector.shape_cast %255 : vector<8x1xi1> to vector<8x1xi1>
    %265 = vector.broadcast %264 : vector<8x1xi1> to vector<8x32xi1>
    %266 = vector.broadcast %cst_59 : f32 to vector<8x32xf32>
    %267 = arith.select %265, %259, %266 : vector<8x32xi1>, vector<8x32xf32>
    %268 = arith.index_cast %208 : i32 to index
    %c0_60 = arith.constant 0 : index
    %c32_61 = arith.constant 32 : index
    %269 = vector.load %arg3[%268, %c0_60, %c32_61] : memref<8x8x64xf32, #tpu.memory_space<vmem>>, vector<1x8x32xf32>
    %270 = vector.shape_cast %269 : vector<1x8x32xf32> to vector<8x32xf32>
    %271 = vector.shape_cast %267 : vector<8x32xf32> to vector<1x8x32xf32>
    tpu.vector_store %arg3[%268, %c0_60, %c32_61], %271 {strides = array<i32>} : memref<8x8x64xf32, #tpu.memory_space<vmem>>, vector<1x8x32xf32>,
    %272 = tpu.concatenate %238, %259 in 1 : vector<8x32xf32>, vector<8x32xf32> -> vector<8x64xf32>
    %c4_i32 = arith.constant 4 : i32
    %c7_i32_62 = arith.constant 7 : i32
    %273 = arith.subi %c7_i32_62, %c4_i32 : i32
    %274 = arith.index_cast %c4_i32 : i32 to index
    %c0_63 = arith.constant 0 : index
    %c0_64 = arith.constant 0 : index
    %275 = vector.load %arg0[%274, %c0_63, %c0_64] : memref<8x8x256xf32, #tpu.memory_space<vmem>>, vector<1x8x256xf32>
    %276 = vector.shape_cast %275 : vector<1x8x256xf32> to vector<8x256xf32>
    %277 = arith.index_cast %273 : i32 to index
    %c0_65 = arith.constant 0 : index
    %c0_66 = arith.constant 0 : index
    %278 = vector.load %arg0[%277, %c0_65, %c0_66] : memref<8x8x256xf32, #tpu.memory_space<vmem>>, vector<1x8x256xf32>
    %279 = vector.shape_cast %278 : vector<1x8x256xf32> to vector<8x256xf32>
    %280 = arith.select %10, %276, %279 : vector<8x256xi1>, vector<8x256xf32>
    %cst_67 = arith.constant dense<0.000000e+00> : vector<8x256xf32>
    %281 = tpu.matmul %272, %0, %cst_67 {dimension_numbers = #tpu.dot_dimension_numbers<[1], [0], [0], [1], [0, 0, 1, 1], [], []>} : vector<8x64xf32>, vector<64x256xf32>, vector<8x256xf32> -> vector<8x256xf32>
    %282 = arith.addf %280, %281 : vector<8x256xf32>
    %283 = vector.extract_strided_slice %282 {offsets = [0, 0], sizes = [8, 192], strides = [1, 1]} : vector<8x256xf32> to vector<8x192xf32>
    %284 = arith.negf %283 : vector<8x192xf32>
    %285 = math.exp %284 : vector<8x192xf32>
    %cst_68 = arith.constant 1.000000e+00 : f32
    %286 = vector.broadcast %cst_68 : f32 to vector<8x192xf32>
    %287 = arith.addf %286, %285 : vector<8x192xf32>
    %288 = arith.divf %286, %287 : vector<8x192xf32>
    %289 = vector.extract_strided_slice %282 {offsets = [0, 192], sizes = [8, 64], strides = [1, 1]} : vector<8x256xf32> to vector<8x64xf32>
    %290 = math.tanh %289 : vector<8x64xf32>
    %291 = vector.extract_strided_slice %288 {offsets = [0, 0], sizes = [8, 32], strides = [1, 1]} : vector<8x192xf32> to vector<8x32xf32>
    %292 = vector.extract_strided_slice %288 {offsets = [0, 32], sizes = [8, 32], strides = [1, 1]} : vector<8x192xf32> to vector<8x32xf32>
    %293 = vector.extract_strided_slice %288 {offsets = [0, 64], sizes = [8, 32], strides = [1, 1]} : vector<8x192xf32> to vector<8x32xf32>
    %294 = vector.extract_strided_slice %288 {offsets = [0, 96], sizes = [8, 32], strides = [1, 1]} : vector<8x192xf32> to vector<8x32xf32>
    %295 = vector.extract_strided_slice %288 {offsets = [0, 128], sizes = [8, 32], strides = [1, 1]} : vector<8x192xf32> to vector<8x32xf32>
    %296 = vector.extract_strided_slice %288 {offsets = [0, 160], sizes = [8, 32], strides = [1, 1]} : vector<8x192xf32> to vector<8x32xf32>
    %297 = vector.extract_strided_slice %290 {offsets = [0, 0], sizes = [8, 32], strides = [1, 1]} : vector<8x64xf32> to vector<8x32xf32>
    %298 = vector.extract_strided_slice %290 {offsets = [0, 32], sizes = [8, 32], strides = [1, 1]} : vector<8x64xf32> to vector<8x32xf32>
    %299 = arith.mulf %292, %236 : vector<8x32xf32>
    %300 = arith.mulf %291, %297 : vector<8x32xf32>
    %301 = arith.addf %299, %300 : vector<8x32xf32>
    %302 = math.tanh %301 : vector<8x32xf32>
    %303 = arith.mulf %293, %302 : vector<8x32xf32>
    %304 = vector.broadcast %c4_i32 : i32 to vector<8x1xi32>
    %305 = arith.cmpi slt, %304, %1 : vector<8x1xi32>
    %cst_69 = arith.constant -1.000000e+00 : f32
    %306 = vector.shape_cast %305 : vector<8x1xi1> to vector<8x1xi1>
    %307 = vector.broadcast %306 : vector<8x1xi1> to vector<8x32xi1>
    %308 = vector.broadcast %cst_69 : f32 to vector<8x32xf32>
    %309 = arith.select %307, %303, %308 : vector<8x32xi1>, vector<8x32xf32>
    %310 = arith.index_cast %c4_i32 : i32 to index
    %c0_70 = arith.constant 0 : index
    %c0_71 = arith.constant 0 : index
    %311 = vector.load %arg3[%310, %c0_70, %c0_71] : memref<8x8x64xf32, #tpu.memory_space<vmem>>, vector<1x8x32xf32>
    %312 = vector.shape_cast %311 : vector<1x8x32xf32> to vector<8x32xf32>
    %313 = vector.shape_cast %309 : vector<8x32xf32> to vector<1x8x32xf32>
    tpu.vector_store %arg3[%310, %c0_70, %c0_71], %313 {strides = array<i32>} : memref<8x8x64xf32, #tpu.memory_space<vmem>>, vector<1x8x32xf32>,
    %314 = arith.mulf %295, %263 : vector<8x32xf32>
    %315 = arith.mulf %294, %298 : vector<8x32xf32>
    %316 = arith.addf %314, %315 : vector<8x32xf32>
    %317 = math.tanh %316 : vector<8x32xf32>
    %318 = arith.mulf %296, %317 : vector<8x32xf32>
    %319 = vector.broadcast %273 : i32 to vector<8x1xi32>
    %320 = arith.cmpi slt, %319, %1 : vector<8x1xi32>
    %cst_72 = arith.constant 0.000000e+00 : f32
    %321 = vector.shape_cast %320 : vector<8x1xi1> to vector<8x1xi1>
    %322 = vector.broadcast %321 : vector<8x1xi1> to vector<8x32xi1>
    %323 = vector.broadcast %cst_72 : f32 to vector<8x32xf32>
    %324 = arith.select %322, %318, %323 : vector<8x32xi1>, vector<8x32xf32>
    %cst_73 = arith.constant 0.000000e+00 : f32
    %325 = vector.shape_cast %320 : vector<8x1xi1> to vector<8x1xi1>
    %326 = vector.broadcast %325 : vector<8x1xi1> to vector<8x32xi1>
    %327 = vector.broadcast %cst_73 : f32 to vector<8x32xf32>
    %328 = arith.select %326, %316, %327 : vector<8x32xi1>, vector<8x32xf32>
    %cst_74 = arith.constant -1.000000e+00 : f32
    %329 = vector.shape_cast %320 : vector<8x1xi1> to vector<8x1xi1>
    %330 = vector.broadcast %329 : vector<8x1xi1> to vector<8x32xi1>
    %331 = vector.broadcast %cst_74 : f32 to vector<8x32xf32>
    %332 = arith.select %330, %324, %331 : vector<8x32xi1>, vector<8x32xf32>
    %333 = arith.index_cast %273 : i32 to index
    %c0_75 = arith.constant 0 : index
    %c32_76 = arith.constant 32 : index
    %334 = vector.load %arg3[%333, %c0_75, %c32_76] : memref<8x8x64xf32, #tpu.memory_space<vmem>>, vector<1x8x32xf32>
    %335 = vector.shape_cast %334 : vector<1x8x32xf32> to vector<8x32xf32>
    %336 = vector.shape_cast %332 : vector<8x32xf32> to vector<1x8x32xf32>
    tpu.vector_store %arg3[%333, %c0_75, %c32_76], %336 {strides = array<i32>} : memref<8x8x64xf32, #tpu.memory_space<vmem>>, vector<1x8x32xf32>,
    %337 = tpu.concatenate %303, %324 in 1 : vector<8x32xf32>, vector<8x32xf32> -> vector<8x64xf32>
    %c5_i32 = arith.constant 5 : i32
    %c7_i32_77 = arith.constant 7 : i32
    %338 = arith.subi %c7_i32_77, %c5_i32 : i32
    %339 = arith.index_cast %c5_i32 : i32 to index
    %c0_78 = arith.constant 0 : index
    %c0_79 = arith.constant 0 : index
    %340 = vector.load %arg0[%339, %c0_78, %c0_79] : memref<8x8x256xf32, #tpu.memory_space<vmem>>, vector<1x8x256xf32>
    %341 = vector.shape_cast %340 : vector<1x8x256xf32> to vector<8x256xf32>
    %342 = arith.index_cast %338 : i32 to index
    %c0_80 = arith.constant 0 : index
    %c0_81 = arith.constant 0 : index
    %343 = vector.load %arg0[%342, %c0_80, %c0_81] : memref<8x8x256xf32, #tpu.memory_space<vmem>>, vector<1x8x256xf32>
    %344 = vector.shape_cast %343 : vector<1x8x256xf32> to vector<8x256xf32>
    %345 = arith.select %10, %341, %344 : vector<8x256xi1>, vector<8x256xf32>
    %cst_82 = arith.constant dense<0.000000e+00> : vector<8x256xf32>
    %346 = tpu.matmul %337, %0, %cst_82 {dimension_numbers = #tpu.dot_dimension_numbers<[1], [0], [0], [1], [0, 0, 1, 1], [], []>} : vector<8x64xf32>, vector<64x256xf32>, vector<8x256xf32> -> vector<8x256xf32>
    %347 = arith.addf %345, %346 : vector<8x256xf32>
    %348 = vector.extract_strided_slice %347 {offsets = [0, 0], sizes = [8, 192], strides = [1, 1]} : vector<8x256xf32> to vector<8x192xf32>
    %349 = arith.negf %348 : vector<8x192xf32>
    %350 = math.exp %349 : vector<8x192xf32>
    %cst_83 = arith.constant 1.000000e+00 : f32
    %351 = vector.broadcast %cst_83 : f32 to vector<8x192xf32>
    %352 = arith.addf %351, %350 : vector<8x192xf32>
    %353 = arith.divf %351, %352 : vector<8x192xf32>
    %354 = vector.extract_strided_slice %347 {offsets = [0, 192], sizes = [8, 64], strides = [1, 1]} : vector<8x256xf32> to vector<8x64xf32>
    %355 = math.tanh %354 : vector<8x64xf32>
    %356 = vector.extract_strided_slice %353 {offsets = [0, 0], sizes = [8, 32], strides = [1, 1]} : vector<8x192xf32> to vector<8x32xf32>
    %357 = vector.extract_strided_slice %353 {offsets = [0, 32], sizes = [8, 32], strides = [1, 1]} : vector<8x192xf32> to vector<8x32xf32>
    %358 = vector.extract_strided_slice %353 {offsets = [0, 64], sizes = [8, 32], strides = [1, 1]} : vector<8x192xf32> to vector<8x32xf32>
    %359 = vector.extract_strided_slice %353 {offsets = [0, 96], sizes = [8, 32], strides = [1, 1]} : vector<8x192xf32> to vector<8x32xf32>
    %360 = vector.extract_strided_slice %353 {offsets = [0, 128], sizes = [8, 32], strides = [1, 1]} : vector<8x192xf32> to vector<8x32xf32>
    %361 = vector.extract_strided_slice %353 {offsets = [0, 160], sizes = [8, 32], strides = [1, 1]} : vector<8x192xf32> to vector<8x32xf32>
    %362 = vector.extract_strided_slice %355 {offsets = [0, 0], sizes = [8, 32], strides = [1, 1]} : vector<8x64xf32> to vector<8x32xf32>
    %363 = vector.extract_strided_slice %355 {offsets = [0, 32], sizes = [8, 32], strides = [1, 1]} : vector<8x64xf32> to vector<8x32xf32>
    %364 = arith.mulf %357, %301 : vector<8x32xf32>
    %365 = arith.mulf %356, %362 : vector<8x32xf32>
    %366 = arith.addf %364, %365 : vector<8x32xf32>
    %367 = math.tanh %366 : vector<8x32xf32>
    %368 = arith.mulf %358, %367 : vector<8x32xf32>
    %369 = vector.broadcast %c5_i32 : i32 to vector<8x1xi32>
    %370 = arith.cmpi slt, %369, %1 : vector<8x1xi32>
    %cst_84 = arith.constant -1.000000e+00 : f32
    %371 = vector.shape_cast %370 : vector<8x1xi1> to vector<8x1xi1>
    %372 = vector.broadcast %371 : vector<8x1xi1> to vector<8x32xi1>
    %373 = vector.broadcast %cst_84 : f32 to vector<8x32xf32>
    %374 = arith.select %372, %368, %373 : vector<8x32xi1>, vector<8x32xf32>
    %375 = arith.index_cast %c5_i32 : i32 to index
    %c0_85 = arith.constant 0 : index
    %c0_86 = arith.constant 0 : index
    %376 = vector.load %arg3[%375, %c0_85, %c0_86] : memref<8x8x64xf32, #tpu.memory_space<vmem>>, vector<1x8x32xf32>
    %377 = vector.shape_cast %376 : vector<1x8x32xf32> to vector<8x32xf32>
    %378 = vector.shape_cast %374 : vector<8x32xf32> to vector<1x8x32xf32>
    tpu.vector_store %arg3[%375, %c0_85, %c0_86], %378 {strides = array<i32>} : memref<8x8x64xf32, #tpu.memory_space<vmem>>, vector<1x8x32xf32>,
    %379 = arith.mulf %360, %328 : vector<8x32xf32>
    %380 = arith.mulf %359, %363 : vector<8x32xf32>
    %381 = arith.addf %379, %380 : vector<8x32xf32>
    %382 = math.tanh %381 : vector<8x32xf32>
    %383 = arith.mulf %361, %382 : vector<8x32xf32>
    %384 = vector.broadcast %338 : i32 to vector<8x1xi32>
    %385 = arith.cmpi slt, %384, %1 : vector<8x1xi32>
    %cst_87 = arith.constant 0.000000e+00 : f32
    %386 = vector.shape_cast %385 : vector<8x1xi1> to vector<8x1xi1>
    %387 = vector.broadcast %386 : vector<8x1xi1> to vector<8x32xi1>
    %388 = vector.broadcast %cst_87 : f32 to vector<8x32xf32>
    %389 = arith.select %387, %383, %388 : vector<8x32xi1>, vector<8x32xf32>
    %cst_88 = arith.constant 0.000000e+00 : f32
    %390 = vector.shape_cast %385 : vector<8x1xi1> to vector<8x1xi1>
    %391 = vector.broadcast %390 : vector<8x1xi1> to vector<8x32xi1>
    %392 = vector.broadcast %cst_88 : f32 to vector<8x32xf32>
    %393 = arith.select %391, %381, %392 : vector<8x32xi1>, vector<8x32xf32>
    %cst_89 = arith.constant -1.000000e+00 : f32
    %394 = vector.shape_cast %385 : vector<8x1xi1> to vector<8x1xi1>
    %395 = vector.broadcast %394 : vector<8x1xi1> to vector<8x32xi1>
    %396 = vector.broadcast %cst_89 : f32 to vector<8x32xf32>
    %397 = arith.select %395, %389, %396 : vector<8x32xi1>, vector<8x32xf32>
    %398 = arith.index_cast %338 : i32 to index
    %c0_90 = arith.constant 0 : index
    %c32_91 = arith.constant 32 : index
    %399 = vector.load %arg3[%398, %c0_90, %c32_91] : memref<8x8x64xf32, #tpu.memory_space<vmem>>, vector<1x8x32xf32>
    %400 = vector.shape_cast %399 : vector<1x8x32xf32> to vector<8x32xf32>
    %401 = vector.shape_cast %397 : vector<8x32xf32> to vector<1x8x32xf32>
    tpu.vector_store %arg3[%398, %c0_90, %c32_91], %401 {strides = array<i32>} : memref<8x8x64xf32, #tpu.memory_space<vmem>>, vector<1x8x32xf32>,
    %402 = tpu.concatenate %368, %389 in 1 : vector<8x32xf32>, vector<8x32xf32> -> vector<8x64xf32>
    %c6_i32 = arith.constant 6 : i32
    %c7_i32_92 = arith.constant 7 : i32
    %403 = arith.subi %c7_i32_92, %c6_i32 : i32
    %404 = arith.index_cast %c6_i32 : i32 to index
    %c0_93 = arith.constant 0 : index
    %c0_94 = arith.constant 0 : index
    %405 = vector.load %arg0[%404, %c0_93, %c0_94] : memref<8x8x256xf32, #tpu.memory_space<vmem>>, vector<1x8x256xf32>
    %406 = vector.shape_cast %405 : vector<1x8x256xf32> to vector<8x256xf32>
    %407 = arith.index_cast %403 : i32 to index
    %c0_95 = arith.constant 0 : index
    %c0_96 = arith.constant 0 : index
    %408 = vector.load %arg0[%407, %c0_95, %c0_96] : memref<8x8x256xf32, #tpu.memory_space<vmem>>, vector<1x8x256xf32>
    %409 = vector.shape_cast %408 : vector<1x8x256xf32> to vector<8x256xf32>
    %410 = arith.select %10, %406, %409 : vector<8x256xi1>, vector<8x256xf32>
    %cst_97 = arith.constant dense<0.000000e+00> : vector<8x256xf32>
    %411 = tpu.matmul %402, %0, %cst_97 {dimension_numbers = #tpu.dot_dimension_numbers<[1], [0], [0], [1], [0, 0, 1, 1], [], []>} : vector<8x64xf32>, vector<64x256xf32>, vector<8x256xf32> -> vector<8x256xf32>
    %412 = arith.addf %410, %411 : vector<8x256xf32>
    %413 = vector.extract_strided_slice %412 {offsets = [0, 0], sizes = [8, 192], strides = [1, 1]} : vector<8x256xf32> to vector<8x192xf32>
    %414 = arith.negf %413 : vector<8x192xf32>
    %415 = math.exp %414 : vector<8x192xf32>
    %cst_98 = arith.constant 1.000000e+00 : f32
    %416 = vector.broadcast %cst_98 : f32 to vector<8x192xf32>
    %417 = arith.addf %416, %415 : vector<8x192xf32>
    %418 = arith.divf %416, %417 : vector<8x192xf32>
    %419 = vector.extract_strided_slice %412 {offsets = [0, 192], sizes = [8, 64], strides = [1, 1]} : vector<8x256xf32> to vector<8x64xf32>
    %420 = math.tanh %419 : vector<8x64xf32>
    %421 = vector.extract_strided_slice %418 {offsets = [0, 0], sizes = [8, 32], strides = [1, 1]} : vector<8x192xf32> to vector<8x32xf32>
    %422 = vector.extract_strided_slice %418 {offsets = [0, 32], sizes = [8, 32], strides = [1, 1]} : vector<8x192xf32> to vector<8x32xf32>
    %423 = vector.extract_strided_slice %418 {offsets = [0, 64], sizes = [8, 32], strides = [1, 1]} : vector<8x192xf32> to vector<8x32xf32>
    %424 = vector.extract_strided_slice %418 {offsets = [0, 96], sizes = [8, 32], strides = [1, 1]} : vector<8x192xf32> to vector<8x32xf32>
    %425 = vector.extract_strided_slice %418 {offsets = [0, 128], sizes = [8, 32], strides = [1, 1]} : vector<8x192xf32> to vector<8x32xf32>
    %426 = vector.extract_strided_slice %418 {offsets = [0, 160], sizes = [8, 32], strides = [1, 1]} : vector<8x192xf32> to vector<8x32xf32>
    %427 = vector.extract_strided_slice %420 {offsets = [0, 0], sizes = [8, 32], strides = [1, 1]} : vector<8x64xf32> to vector<8x32xf32>
    %428 = vector.extract_strided_slice %420 {offsets = [0, 32], sizes = [8, 32], strides = [1, 1]} : vector<8x64xf32> to vector<8x32xf32>
    %429 = arith.mulf %422, %366 : vector<8x32xf32>
    %430 = arith.mulf %421, %427 : vector<8x32xf32>
    %431 = arith.addf %429, %430 : vector<8x32xf32>
    %432 = math.tanh %431 : vector<8x32xf32>
    %433 = arith.mulf %423, %432 : vector<8x32xf32>
    %434 = vector.broadcast %c6_i32 : i32 to vector<8x1xi32>
    %435 = arith.cmpi slt, %434, %1 : vector<8x1xi32>
    %cst_99 = arith.constant -1.000000e+00 : f32
    %436 = vector.shape_cast %435 : vector<8x1xi1> to vector<8x1xi1>
    %437 = vector.broadcast %436 : vector<8x1xi1> to vector<8x32xi1>
    %438 = vector.broadcast %cst_99 : f32 to vector<8x32xf32>
    %439 = arith.select %437, %433, %438 : vector<8x32xi1>, vector<8x32xf32>
    %440 = arith.index_cast %c6_i32 : i32 to index
    %c0_100 = arith.constant 0 : index
    %c0_101 = arith.constant 0 : index
    %441 = vector.load %arg3[%440, %c0_100, %c0_101] : memref<8x8x64xf32, #tpu.memory_space<vmem>>, vector<1x8x32xf32>
    %442 = vector.shape_cast %441 : vector<1x8x32xf32> to vector<8x32xf32>
    %443 = vector.shape_cast %439 : vector<8x32xf32> to vector<1x8x32xf32>
    tpu.vector_store %arg3[%440, %c0_100, %c0_101], %443 {strides = array<i32>} : memref<8x8x64xf32, #tpu.memory_space<vmem>>, vector<1x8x32xf32>,
    %444 = arith.mulf %425, %393 : vector<8x32xf32>
    %445 = arith.mulf %424, %428 : vector<8x32xf32>
    %446 = arith.addf %444, %445 : vector<8x32xf32>
    %447 = math.tanh %446 : vector<8x32xf32>
    %448 = arith.mulf %426, %447 : vector<8x32xf32>
    %449 = vector.broadcast %403 : i32 to vector<8x1xi32>
    %450 = arith.cmpi slt, %449, %1 : vector<8x1xi32>
    %cst_102 = arith.constant 0.000000e+00 : f32
    %451 = vector.shape_cast %450 : vector<8x1xi1> to vector<8x1xi1>
    %452 = vector.broadcast %451 : vector<8x1xi1> to vector<8x32xi1>
    %453 = vector.broadcast %cst_102 : f32 to vector<8x32xf32>
    %454 = arith.select %452, %448, %453 : vector<8x32xi1>, vector<8x32xf32>
    %cst_103 = arith.constant 0.000000e+00 : f32
    %455 = vector.shape_cast %450 : vector<8x1xi1> to vector<8x1xi1>
    %456 = vector.broadcast %455 : vector<8x1xi1> to vector<8x32xi1>
    %457 = vector.broadcast %cst_103 : f32 to vector<8x32xf32>
    %458 = arith.select %456, %446, %457 : vector<8x32xi1>, vector<8x32xf32>
    %cst_104 = arith.constant -1.000000e+00 : f32
    %459 = vector.shape_cast %450 : vector<8x1xi1> to vector<8x1xi1>
    %460 = vector.broadcast %459 : vector<8x1xi1> to vector<8x32xi1>
    %461 = vector.broadcast %cst_104 : f32 to vector<8x32xf32>
    %462 = arith.select %460, %454, %461 : vector<8x32xi1>, vector<8x32xf32>
    %463 = arith.index_cast %403 : i32 to index
    %c0_105 = arith.constant 0 : index
    %c32_106 = arith.constant 32 : index
    %464 = vector.load %arg3[%463, %c0_105, %c32_106] : memref<8x8x64xf32, #tpu.memory_space<vmem>>, vector<1x8x32xf32>
    %465 = vector.shape_cast %464 : vector<1x8x32xf32> to vector<8x32xf32>
    %466 = vector.shape_cast %462 : vector<8x32xf32> to vector<1x8x32xf32>
    tpu.vector_store %arg3[%463, %c0_105, %c32_106], %466 {strides = array<i32>} : memref<8x8x64xf32, #tpu.memory_space<vmem>>, vector<1x8x32xf32>,
    %467 = tpu.concatenate %433, %454 in 1 : vector<8x32xf32>, vector<8x32xf32> -> vector<8x64xf32>
    %c7_i32_107 = arith.constant 7 : i32
    %c7_i32_108 = arith.constant 7 : i32
    %468 = arith.subi %c7_i32_108, %c7_i32_107 : i32
    %469 = arith.index_cast %c7_i32_107 : i32 to index
    %c0_109 = arith.constant 0 : index
    %c0_110 = arith.constant 0 : index
    %470 = vector.load %arg0[%469, %c0_109, %c0_110] : memref<8x8x256xf32, #tpu.memory_space<vmem>>, vector<1x8x256xf32>
    %471 = vector.shape_cast %470 : vector<1x8x256xf32> to vector<8x256xf32>
    %472 = arith.index_cast %468 : i32 to index
    %c0_111 = arith.constant 0 : index
    %c0_112 = arith.constant 0 : index
    %473 = vector.load %arg0[%472, %c0_111, %c0_112] : memref<8x8x256xf32, #tpu.memory_space<vmem>>, vector<1x8x256xf32>
    %474 = vector.shape_cast %473 : vector<1x8x256xf32> to vector<8x256xf32>
    %475 = arith.select %10, %471, %474 : vector<8x256xi1>, vector<8x256xf32>
    %cst_113 = arith.constant dense<0.000000e+00> : vector<8x256xf32>
    %476 = tpu.matmul %467, %0, %cst_113 {dimension_numbers = #tpu.dot_dimension_numbers<[1], [0], [0], [1], [0, 0, 1, 1], [], []>} : vector<8x64xf32>, vector<64x256xf32>, vector<8x256xf32> -> vector<8x256xf32>
    %477 = arith.addf %475, %476 : vector<8x256xf32>
    %478 = vector.extract_strided_slice %477 {offsets = [0, 0], sizes = [8, 192], strides = [1, 1]} : vector<8x256xf32> to vector<8x192xf32>
    %479 = arith.negf %478 : vector<8x192xf32>
    %480 = math.exp %479 : vector<8x192xf32>
    %cst_114 = arith.constant 1.000000e+00 : f32
    %481 = vector.broadcast %cst_114 : f32 to vector<8x192xf32>
    %482 = arith.addf %481, %480 : vector<8x192xf32>
    %483 = arith.divf %481, %482 : vector<8x192xf32>
    %484 = vector.extract_strided_slice %477 {offsets = [0, 192], sizes = [8, 64], strides = [1, 1]} : vector<8x256xf32> to vector<8x64xf32>
    %485 = math.tanh %484 : vector<8x64xf32>
    %486 = vector.extract_strided_slice %483 {offsets = [0, 0], sizes = [8, 32], strides = [1, 1]} : vector<8x192xf32> to vector<8x32xf32>
    %487 = vector.extract_strided_slice %483 {offsets = [0, 32], sizes = [8, 32], strides = [1, 1]} : vector<8x192xf32> to vector<8x32xf32>
    %488 = vector.extract_strided_slice %483 {offsets = [0, 64], sizes = [8, 32], strides = [1, 1]} : vector<8x192xf32> to vector<8x32xf32>
    %489 = vector.extract_strided_slice %483 {offsets = [0, 96], sizes = [8, 32], strides = [1, 1]} : vector<8x192xf32> to vector<8x32xf32>
    %490 = vector.extract_strided_slice %483 {offsets = [0, 128], sizes = [8, 32], strides = [1, 1]} : vector<8x192xf32> to vector<8x32xf32>
    %491 = vector.extract_strided_slice %483 {offsets = [0, 160], sizes = [8, 32], strides = [1, 1]} : vector<8x192xf32> to vector<8x32xf32>
    %492 = vector.extract_strided_slice %485 {offsets = [0, 0], sizes = [8, 32], strides = [1, 1]} : vector<8x64xf32> to vector<8x32xf32>
    %493 = vector.extract_strided_slice %485 {offsets = [0, 32], sizes = [8, 32], strides = [1, 1]} : vector<8x64xf32> to vector<8x32xf32>
    %494 = arith.mulf %487, %431 : vector<8x32xf32>
    %495 = arith.mulf %486, %492 : vector<8x32xf32>
    %496 = arith.addf %494, %495 : vector<8x32xf32>
    %497 = math.tanh %496 : vector<8x32xf32>
    %498 = arith.mulf %488, %497 : vector<8x32xf32>
    %499 = vector.broadcast %c7_i32_107 : i32 to vector<8x1xi32>
    %500 = arith.cmpi slt, %499, %1 : vector<8x1xi32>
    %cst_115 = arith.constant -1.000000e+00 : f32
    %501 = vector.shape_cast %500 : vector<8x1xi1> to vector<8x1xi1>
    %502 = vector.broadcast %501 : vector<8x1xi1> to vector<8x32xi1>
    %503 = vector.broadcast %cst_115 : f32 to vector<8x32xf32>
    %504 = arith.select %502, %498, %503 : vector<8x32xi1>, vector<8x32xf32>
    %505 = arith.index_cast %c7_i32_107 : i32 to index
    %c0_116 = arith.constant 0 : index
    %c0_117 = arith.constant 0 : index
    %506 = vector.load %arg3[%505, %c0_116, %c0_117] : memref<8x8x64xf32, #tpu.memory_space<vmem>>, vector<1x8x32xf32>
    %507 = vector.shape_cast %506 : vector<1x8x32xf32> to vector<8x32xf32>
    %508 = vector.shape_cast %504 : vector<8x32xf32> to vector<1x8x32xf32>
    tpu.vector_store %arg3[%505, %c0_116, %c0_117], %508 {strides = array<i32>} : memref<8x8x64xf32, #tpu.memory_space<vmem>>, vector<1x8x32xf32>,
    %509 = arith.mulf %490, %458 : vector<8x32xf32>
    %510 = arith.mulf %489, %493 : vector<8x32xf32>
    %511 = arith.addf %509, %510 : vector<8x32xf32>
    %512 = math.tanh %511 : vector<8x32xf32>
    %513 = arith.mulf %491, %512 : vector<8x32xf32>
    %514 = vector.broadcast %468 : i32 to vector<8x1xi32>
    %515 = arith.cmpi slt, %514, %1 : vector<8x1xi32>
    %cst_118 = arith.constant 0.000000e+00 : f32
    %516 = vector.shape_cast %515 : vector<8x1xi1> to vector<8x1xi1>
    %517 = vector.broadcast %516 : vector<8x1xi1> to vector<8x32xi1>
    %518 = vector.broadcast %cst_118 : f32 to vector<8x32xf32>
    %519 = arith.select %517, %513, %518 : vector<8x32xi1>, vector<8x32xf32>
    %cst_119 = arith.constant 0.000000e+00 : f32
    %520 = vector.shape_cast %515 : vector<8x1xi1> to vector<8x1xi1>
    %521 = vector.broadcast %520 : vector<8x1xi1> to vector<8x32xi1>
    %522 = vector.broadcast %cst_119 : f32 to vector<8x32xf32>
    %523 = arith.select %521, %511, %522 : vector<8x32xi1>, vector<8x32xf32>
    %cst_120 = arith.constant -1.000000e+00 : f32
    %524 = vector.shape_cast %515 : vector<8x1xi1> to vector<8x1xi1>
    %525 = vector.broadcast %524 : vector<8x1xi1> to vector<8x32xi1>
    %526 = vector.broadcast %cst_120 : f32 to vector<8x32xf32>
    %527 = arith.select %525, %519, %526 : vector<8x32xi1>, vector<8x32xf32>
    %528 = arith.index_cast %468 : i32 to index
    %c0_121 = arith.constant 0 : index
    %c32_122 = arith.constant 32 : index
    %529 = vector.load %arg3[%528, %c0_121, %c32_122] : memref<8x8x64xf32, #tpu.memory_space<vmem>>, vector<1x8x32xf32>
    %530 = vector.shape_cast %529 : vector<1x8x32xf32> to vector<8x32xf32>
    %531 = vector.shape_cast %527 : vector<8x32xf32> to vector<1x8x32xf32>
    tpu.vector_store %arg3[%528, %c0_121, %c32_122], %531 {strides = array<i32>} : memref<8x8x64xf32, #tpu.memory_space<vmem>>, vector<1x8x32xf32>,
    %532 = tpu.concatenate %498, %519 in 1 : vector<8x32xf32>, vector<8x32xf32> -> vector<8x64xf32>
    %c8_i32 = arith.constant 8 : i32
    return
  }
}

</mosaic_0001>

<bundles_post_ra>
// kernel: recognition_forward.9
= control target key start
LH: loop header
LB: loop body
LE: loop exit
PB: predicated region body
PF: predicated region fallthrough
CT: control target
= control target key end

     0   :  { %vm32_vm0 = vcmask 162816   ;;  %vm57_vm1 = vcmask 1043456   ;;  %s313_s1 = inlined_call_operand.vmem [shape: f32[20,128], index: 1, kind: input, shape index: {}]   ;;  %s314_s0 = inlined_call_operand.vmem [shape: f32[64,20], index: 0, kind: input, shape index: {}]   ;;  %s315_s2 = inlined_call_operand.vmem [shape: f32[1,128], index: 2, kind: input, shape index: {}]   ;;  %s316_s3 = inlined_call_operand.vmem [shape: f32[64,128], index: 3, kind: output, shape index: {}]  }
   0x1   :  { %v22_v0 = vld [vmem:[%s313_s1] sm:$0xff]  ;;  %v23_v1 = vld [vmem:[%s313_s1 + $0x8] sm:$0xff]  ;;  %v24_v5 = vld [vmem:[%s313_s1 + $0x10] sm:$0xf] }
   0x2   :  { %v217_v2 = vpack.c.bf16 %v23_v1, %v22_v0  ;;  %v14_v3 = vld [vmem:[%s314_s0] sm:$0xff]  ;;  %v15_v6 = vld [vmem:[%s314_s0 + $0x8] sm:$0xff]  ;;  %v16_v8 = vld [vmem:[%s314_s0 + $0x10] sm:$0xff] }
   0x3   :  { %v18_v4 = vld [vmem:[%s314_s0 + $0x20] sm:$0xff]  ;;  %205 = vmatprep.mubr.msk.f32.mxu0 %vm32_vm0, %v14_v3  ;;  %v19_v7 = vld [vmem:[%s314_s0 + $0x28] sm:$0xff]  ;;  %v20_v9 = vld [vmem:[%s314_s0 + $0x30] sm:$0xff] }
   0x4   :  { %211 = vmatprep.mubr.msk.f32.mxu1 %vm32_vm0, %v18_v4  ;;  %218 = vmatprep.subr.bf16.mxu0 %v217_v2  ;;  %v17_v10 = vld [vmem:[%s314_s0 + $0x18] sm:$0xff]  ;;  %v178_v12 = vld [vmem:[%s315_s2] ss:$0 sm:$0xff] }
   0x5   :  { %221 = vmatprep.subr.bf16.mxu1 %v217_v2  ;;  %220 = vmatpush3.bf16.msra.mxu0 %v217_v2  ;;  %v21_v11 = vld [vmem:[%s314_s0 + $0x38] sm:$0xff] }
   0x6   :  { %223 = vmatpush3.bf16.msra.mxu1 %v217_v2  ;;  %203 = vmatprep.subr.msk.mxu0 %vm57_vm1, %v24_v5 }
   0x7   :  { %222 = vmatprep.subr.msk.mxu1 %vm57_vm1, %v24_v5 }
   0x9   :  { %204 = vmatpush3.msk.msra.mxu0 %vm57_vm1, %v24_v5 }
   0xa   :  { %224 = vmatpush3.msk.msra.mxu1 %vm57_vm1, %v24_v5  ;;  %206 = vmatmul.mubr.msk.f32.vlgmr.msra.gmra.mrb[0].mxu0 %vm32_vm0, %v15_v6 }
   0xb   :  { %212 = vmatmul.mubr.msk.f32.vlgmr.msra.gmra.mrb[0].mxu1 %vm32_vm0, %v19_v7  ;;  %208 = vmatprep.mubr.msk.f32.mxu0 %vm32_vm0, %v16_v8 }
   0xc   :  { %214 = vmatprep.mubr.msk.f32.mxu1 %vm32_vm0, %v20_v9 }
   0xe   :  { %209 = vmatmul.mubr.msk.f32.gmra.mrb[2].mxu0 %vm32_vm0, %v17_v10 }
   0xf   :  { %215 = vmatmul.mubr.msk.f32.gmra.mrb[2].mxu1 %vm32_vm0, %v21_v11 }
  0xdd   :  { %v207_v13 = vpop.f32.mrb[0].mxu0 }
  0xde   :  { %v213_v14 = vpop.f32.mrb[0].mxu1  ;;  %v133_v15 = vadd.f32 %v207_v13, %v178_v12  ;;  %v127_v17 = vpop.f32.mrb[1].mxu0 }
  0xdf   :  { %v153_v16 = vadd.f32 %v213_v14, %v178_v12  ;;  %v147_v18 = vpop.f32.mrb[1].mxu1  ;;  %v128_v19 = vadd.f32 %v178_v12, %v127_v17 }
  0xe0   :  { %v148_v20 = vadd.f32 %v178_v12, %v147_v18  ;;  %167 = vst [vmem:[%s316_s3 + $0x8] sm:$0xff] %v133_v15 }
  0xe1   :  { %171 = vst [vmem:[%s316_s3 + $0x28] sm:$0xff] %v153_v16  ;;  %166 = vst [vmem:[%s316_s3] sm:$0xff] %v128_v19  ;;  %v210_v21 = vpop.f32.mrb[2].mxu0 }
  0xe2   :  { %170 = vst [vmem:[%s316_s3 + $0x20] sm:$0xff] %v148_v20  ;;  %v216_v22 = vpop.f32.mrb[2].mxu1  ;;  %v143_v23 = vadd.f32 %v210_v21, %v178_v12  ;;  %v137_v25 = vpop.f32.mrb[3].mxu0 }
  0xe3   :  { %v163_v24 = vadd.f32 %v216_v22, %v178_v12  ;;  %v157_v26 = vpop.f32.mrb[3].mxu1  ;;  %v138_v27 = vadd.f32 %v178_v12, %v137_v25 }
  0xe4   :  { %v158_v28 = vadd.f32 %v178_v12, %v157_v26  ;;  %169 = vst [vmem:[%s316_s3 + $0x18] sm:$0xff] %v143_v23 }
  0xe5   :  { %173 = vst [vmem:[%s316_s3 + $0x38] sm:$0xff] %v163_v24  ;;  %168 = vst [vmem:[%s316_s3 + $0x10] sm:$0xff] %v138_v27 }
  0xe6   :  { %172 = vst [vmem:[%s316_s3 + $0x30] sm:$0xff] %v158_v28 }

// kernel: recognition_forward.7
= control target key start
LH: loop header
LB: loop body
LE: loop exit
PB: predicated region body
PF: predicated region fallthrough
CT: control target
= control target key end

     0   :  { %vm56_vm0 = vcmask 1043456   ;;  %vm31_vm1 = vcmask 97280   ;;  %vm222_vm2 = vmmov 1   ;;  %s308_s1 = inlined_call_operand.vmem [shape: f32[12,128], index: 1, kind: input, shape index: {}]   ;;  %s309_s0 = inlined_call_operand.vmem [shape: f32[64,12], index: 0, kind: input, shape index: {}]   ;;  %s310_s2 = inlined_call_operand.vmem [shape: f32[1,128], index: 2, kind: input, shape index: {}]   ;;  %s311_s3 = inlined_call_operand.vmem [shape: f32[64,128], index: 3, kind: output, shape index: {}]  }
   0x1   :  { %v22_v0 = vld [vmem:[%s308_s1] sm:$0xff]  ;;  %v23_v1 = vld [vmem:[%s308_s1 + $0x8] sm:$0xf]  ;;  %vm214_vm3 = vmpackc.low %vm56_vm0, %vm222_vm2 }
   0x2   :  { %v213_v2 = vpack.c.bf16 %v23_v1, %v22_v0  ;;  %v14_v3 = vld [vmem:[%s309_s0] sm:$0xff]  ;;  %v15_v5 = vld [vmem:[%s309_s0 + $0x8] sm:$0xff]  ;;  %v16_v7 = vld [vmem:[%s309_s0 + $0x10] sm:$0xff] }
   0x3   :  { %v18_v4 = vld [vmem:[%s309_s0 + $0x20] sm:$0xff]  ;;  %201 = vmatprep.mubr.msk.f32.mxu0 %vm31_vm1, %v14_v3  ;;  %v19_v6 = vld [vmem:[%s309_s0 + $0x28] sm:$0xff]  ;;  %v20_v8 = vld [vmem:[%s309_s0 + $0x30] sm:$0xff] }
   0x4   :  { %207 = vmatprep.mubr.msk.f32.mxu1 %vm31_vm1, %v18_v4  ;;  %215 = vmatprep.subr.msk.bf16.mxu0 %vm214_vm3, %v213_v2  ;;  %v17_v9 = vld [vmem:[%s309_s0 + $0x18] sm:$0xff]  ;;  %v177_v11 = vld [vmem:[%s310_s2] ss:$0 sm:$0xff] }
   0x5   :  { %219 = vmatprep.subr.msk.bf16.mxu1 %vm214_vm3, %v213_v2  ;;  %218 = vmatpush3.bf16.msk.msra.mxu0 %vm214_vm3, %v213_v2  ;;  %v21_v10 = vld [vmem:[%s309_s0 + $0x38] sm:$0xff] }
   0x6   :  { %220 = vmatpush3.bf16.msk.msra.mxu1 %vm214_vm3, %v213_v2 }
   0x8   :  { %202 = vmatmul.mubr.msk.f32.vlgmr.msra.gmra.mrb[0].mxu0 %vm31_vm1, %v15_v5 }
   0x9   :  { %208 = vmatmul.mubr.msk.f32.vlgmr.msra.gmra.mrb[0].mxu1 %vm31_vm1, %v19_v6  ;;  %204 = vmatprep.mubr.msk.f32.mxu0 %vm31_vm1, %v16_v7 }
   0xa   :  { %210 = vmatprep.mubr.msk.f32.mxu1 %vm31_vm1, %v20_v8 }
   0xc   :  { %205 = vmatmul.mubr.msk.f32.gmra.mrb[2].mxu0 %vm31_vm1, %v17_v9 }
   0xd   :  { %211 = vmatmul.mubr.msk.f32.gmra.mrb[2].mxu1 %vm31_vm1, %v21_v10 }
  0xdb   :  { %v203_v12 = vpop.f32.mrb[0].mxu0 }
  0xdc   :  { %v209_v13 = vpop.f32.mrb[0].mxu1  ;;  %v132_v14 = vadd.f32 %v203_v12, %v177_v11  ;;  %v126_v16 = vpop.f32.mrb[1].mxu0 }
  0xdd   :  { %v152_v15 = vadd.f32 %v209_v13, %v177_v11  ;;  %v146_v17 = vpop.f32.mrb[1].mxu1  ;;  %v127_v18 = vadd.f32 %v177_v11, %v126_v16 }
  0xde   :  { %v147_v19 = vadd.f32 %v177_v11, %v146_v17  ;;  %166 = vst [vmem:[%s311_s3 + $0x8] sm:$0xff] %v132_v14 }
  0xdf   :  { %170 = vst [vmem:[%s311_s3 + $0x28] sm:$0xff] %v152_v15  ;;  %165 = vst [vmem:[%s311_s3] sm:$0xff] %v127_v18  ;;  %v206_v20 = vpop.f32.mrb[2].mxu0 }
  0xe0   :  { %169 = vst [vmem:[%s311_s3 + $0x20] sm:$0xff] %v147_v19  ;;  %v212_v21 = vpop.f32.mrb[2].mxu1  ;;  %v142_v22 = vadd.f32 %v206_v20, %v177_v11  ;;  %v136_v24 = vpop.f32.mrb[3].mxu0 }
  0xe1   :  { %v162_v23 = vadd.f32 %v212_v21, %v177_v11  ;;  %v156_v25 = vpop.f32.mrb[3].mxu1  ;;  %v137_v26 = vadd.f32 %v177_v11, %v136_v24 }
  0xe2   :  { %v157_v27 = vadd.f32 %v177_v11, %v156_v25  ;;  %168 = vst [vmem:[%s311_s3 + $0x18] sm:$0xff] %v142_v22 }
  0xe3   :  { %172 = vst [vmem:[%s311_s3 + $0x38] sm:$0xff] %v162_v23  ;;  %167 = vst [vmem:[%s311_s3 + $0x10] sm:$0xff] %v137_v26 }
  0xe4   :  { %171 = vst [vmem:[%s311_s3 + $0x30] sm:$0xff] %v157_v27 }

// kernel: recognition_forward.11
= control target key start
LH: loop header
LB: loop body
LE: loop exit
PB: predicated region body
PF: predicated region fallthrough
CT: control target
= control target key end

     0   :  { %v424_v3 = vmov 0.0   ;;  %vm52_vm0 = vcmask 261120   ;;  %v329_v41 = vlaneseq  ;;  %s654_s3 = inlined_call_operand.vmem [shape: f32[32,256], index: 3, kind: input, shape index: {}]   ;;  %s655_s1 = inlined_call_operand.vmem [shape: f32[32,256], index: 1, kind: input, shape index: {}]   ;;  %s656_s2 = inlined_call_operand.vmem [shape: f32[64,32], index: 2, kind: input, shape index: {}]   ;;  %s657_s0 = inlined_call_operand.vmem [shape: f32[64,32], index: 0, kind: input, shape index: {}]   ;;  %s658_s4 = inlined_call_operand.vmem [shape: f32[1,256], index: 4, kind: input, shape index: {}]   ;;  %s659_s5 = inlined_call_operand.vmem [shape: f32[64,256], index: 5, kind: output, shape index: {}]  }
   0x1   :  { %v45_v0 = vld [vmem:[%s654_s3 + $0x8] sm:$0xff]  ;;  %v47_v1 = vld [vmem:[%s654_s3 + $0x18] sm:$0xff]  ;;  %141 = vmatprep.mubr.f32.mxu1 %v424_v3  ;;  %278 = vmatprep.mubr.f32.mxu0 %v424_v3  ;;  %v44_v6 = vld [vmem:[%s654_s3] sm:$0xff] }
   0x2   :  { %v29_v2 = vld [vmem:[%s655_s1 + $0x8] sm:$0xff]  ;;  %v391_v4 = vpack.c.bf16 %v47_v1, %v45_v0  ;;  %v31_v5 = vld [vmem:[%s655_s1 + $0x18] sm:$0xff]  ;;  %v46_v7 = vld [vmem:[%s654_s3 + $0x10] sm:$0xff]  ;;  %v330_v42 = vshrl.u32 %v329_v41, 7 }
   0x3   :  { %v399_v8 = vpack.c.bf16 %v31_v5, %v29_v2  ;;  %v393_v9 = vpack.c.bf16 %v46_v7, %v44_v6  ;;  %v28_v10 = vld [vmem:[%s655_s1] sm:$0xff]  ;;  %v30_v11 = vld [vmem:[%s655_s1 + $0x10] sm:$0xff]  ;;  %v49_v12 = vld [vmem:[%s654_s3 + $0x28] sm:$0xff] }
   0x4   :  { %392 = vmatprep.subr.bf16.mxu1 %v391_v4  ;;  %v401_v13 = vpack.c.bf16 %v30_v11, %v28_v10  ;;  %v51_v14 = vld [vmem:[%s654_s3 + $0x38] sm:$0xff]  ;;  %v33_v15 = vld [vmem:[%s655_s1 + $0x28] sm:$0xff]  ;;  %v48_v19 = vld [vmem:[%s654_s3 + $0x20] sm:$0xff]  ;;  %v331_v43 = vsub.s32 0, %v330_v42  ;;  %v335_v45 = vsub.s32 1, %v330_v42 }
   0x5   :  { %v35_v16 = vld [vmem:[%s655_s1 + $0x38] sm:$0xff]  ;;  %400 = vmatprep.subr.bf16.mxu0 %v399_v8  ;;  %394 = vmatpush1.bf16.msra.mxu1 %v393_v9  ;;  %v395_v17 = vpack.c.bf16 %v51_v14, %v49_v12  ;;  %v50_v20 = vld [vmem:[%s654_s3 + $0x30] sm:$0xff]  ;;  %v32_v21 = vld [vmem:[%s655_s1 + $0x20] sm:$0xff] }
   0x6   :  { %v403_v18 = vpack.c.bf16 %v35_v16, %v33_v15  ;;  %402 = vmatpush1.bf16.msra.mxu0 %v401_v13  ;;  %v397_v22 = vpack.c.bf16 %v50_v20, %v48_v19  ;;  %v34_v23 = vld [vmem:[%s655_s1 + $0x30] sm:$0xff]  ;;  %v36_v25 = vld [vmem:[%s656_s2] sm:$0xff]  ;;  %v37_v27 = vld [vmem:[%s656_s2 + $0x8] sm:$0xff] }
   0x7   :  { %396 = vmatprep.subr.bf16.mxu1 %v395_v17  ;;  %v405_v24 = vpack.c.bf16 %v34_v23, %v32_v21  ;;  %v20_v26 = vld [vmem:[%s657_s0] sm:$0xff]  ;;  %v21_v28 = vld [vmem:[%s657_s0 + $0x8] sm:$0xff]  ;;  %v38_v29 = vld [vmem:[%s656_s2 + $0x10] sm:$0xff] }
   0x8   :  { %404 = vmatprep.subr.bf16.mxu0 %v403_v18  ;;  %v22_v30 = vld [vmem:[%s657_s0 + $0x10] sm:$0xff]  ;;  %v39_v31 = vld [vmem:[%s656_s2 + $0x18] sm:$0xff]  ;;  %v40_v33 = vld [vmem:[%s656_s2 + $0x20] sm:$0xff] }
   0x9   :  { %398 = vmatpush1.bf16.msra.mxu1 %v397_v22  ;;  %v23_v32 = vld [vmem:[%s657_s0 + $0x18] sm:$0xff]  ;;  %v24_v34 = vld [vmem:[%s657_s0 + $0x20] sm:$0xff]  ;;  %v41_v35 = vld [vmem:[%s656_s2 + $0x28] sm:$0xff] }
   0xa   :  { %406 = vmatpush1.bf16.msra.mxu0 %v405_v24  ;;  %v25_v36 = vld [vmem:[%s657_s0 + $0x28] sm:$0xff]  ;;  %v42_v37 = vld [vmem:[%s656_s2 + $0x30] sm:$0xff]  ;;  %v43_v39 = vld [vmem:[%s656_s2 + $0x38] sm:$0xff] }
   0xb   :  { %v26_v38 = vld [vmem:[%s657_s0 + $0x30] sm:$0xff]  ;;  %v27_v40 = vld [vmem:[%s657_s0 + $0x38] sm:$0xff]  ;;  %v327_v44 = vld [vmem:[%s658_s4] sm:$0x3] }
   0xc   :  { %375 = vmatmul.mubr.msk.f32.vlgmr.msra.gmra.mrb[0].mxu1 %vm52_vm0, %v36_v25  ;;  %v586_v47 = vrot.slane %v327_v44, %v331_v43  ;;  %v588_v50 = vrot.slane %v327_v44, %v335_v45 }
   0xd   :  { %383 = vmatmul.mubr.msk.f32.vlgmr.msra.gmra.mrb[0].mxu0 %vm52_vm0, %v20_v26  ;;  %147 = vmatprep.mubr.f32.mxu1 %v424_v3 }
   0xe   :  { %284 = vmatprep.mubr.f32.mxu0 %v424_v3 }
  0x10   :  { %376 = vmatmul.mubr.msk.f32.gmra.mrb[2].mxu1 %vm52_vm0, %v37_v27 }
  0x11   :  { %384 = vmatmul.mubr.msk.f32.gmra.mrb[2].mxu0 %vm52_vm0, %v21_v28  ;;  %153 = vmatprep.mubr.f32.mxu1 %v424_v3 }
  0x12   :  { %290 = vmatprep.mubr.f32.mxu0 %v424_v3 }
  0x14   :  { %377 = vmatmul.mubr.msk.f32.gmra.mrb[4].mxu1 %vm52_vm0, %v38_v29 }
  0x15   :  { %385 = vmatmul.mubr.msk.f32.gmra.mrb[4].mxu0 %vm52_vm0, %v22_v30  ;;  %159 = vmatprep.mubr.f32.mxu1 %v424_v3 }
  0x16   :  { %296 = vmatprep.mubr.f32.mxu0 %v424_v3 }
  0x18   :  { %378 = vmatmul.mubr.msk.f32.gmra.mrb[6].mxu1 %vm52_vm0, %v39_v31 }
  0x19   :  { %386 = vmatmul.mubr.msk.f32.gmra.mrb[6].mxu0 %vm52_vm0, %v23_v32  ;;  %165 = vmatprep.mubr.f32.mxu1 %v424_v3 }
  0x1a   :  { %302 = vmatprep.mubr.f32.mxu0 %v424_v3 }
  0x1c   :  { %379 = vmatmul.mubr.msk.f32.gmra.mrb[8].mxu1 %vm52_vm0, %v40_v33 }
  0x1d   :  { %387 = vmatmul.mubr.msk.f32.gmra.mrb[8].mxu0 %vm52_vm0, %v24_v34  ;;  %171 = vmatprep.mubr.f32.mxu1 %v424_v3 }
  0x1e   :  { %308 = vmatprep.mubr.f32.mxu0 %v424_v3 }
  0x20   :  { %380 = vmatmul.mubr.msk.f32.gmra.mrb[10].mxu1 %vm52_vm0, %v41_v35 }
  0x21   :  { %388 = vmatmul.mubr.msk.f32.gmra.mrb[10].mxu0 %vm52_vm0, %v25_v36  ;;  %177 = vmatprep.mubr.f32.mxu1 %v424_v3 }
  0x22   :  { %314 = vmatprep.mubr.f32.mxu0 %v424_v3 }
  0x24   :  { %381 = vmatmul.mubr.msk.f32.gmra.mrb[12].mxu1 %vm52_vm0, %v42_v37 }
  0x25   :  { %389 = vmatmul.mubr.msk.f32.gmra.mrb[12].mxu0 %vm52_vm0, %v26_v38  ;;  %183 = vmatprep.mubr.f32.mxu1 %v424_v3 }
  0x26   :  { %320 = vmatprep.mubr.f32.mxu0 %v424_v3 }
  0x28   :  { %382 = vmatmul.mubr.msk.f32.gmra.mrb[14].mxu1 %vm52_vm0, %v43_v39 }
  0x29   :  { %390 = vmatmul.mubr.msk.f32.gmra.mrb[14].mxu0 %vm52_vm0, %v27_v40 }
  0xdf   :  { %v143_v46 = vpop.f32.mrb[0].mxu1 }
  0xe0   :  { %v280_v48 = vpop.f32.mrb[0].mxu0  ;;  %v145_v49 = vpop.f32.mrb[1].mxu1 }
  0xe1   :  { %v281_v51 = vadd.f32 %v280_v48, %v143_v46  ;;  %v282_v52 = vpop.f32.mrb[1].mxu0 }
  0xe2   :  { %v283_v53 = vadd.f32 %v282_v52, %v145_v49 }
  0xe3   :  { %v339_v54 = vadd.f32 %v586_v47, %v281_v51  ;;  %v149_v55 = vpop.f32.mrb[2].mxu1 }
  0xe4   :  { %v340_v56 = vadd.f32 %v588_v50, %v283_v53  ;;  %v286_v57 = vpop.f32.mrb[2].mxu0  ;;  %v151_v58 = vpop.f32.mrb[3].mxu1 }
  0xe5   :  { %355 = vst [vmem:[%s659_s5] sm:$0xff] %v339_v54  ;;  %v287_v59 = vadd.f32 %v286_v57, %v149_v55  ;;  %v288_v60 = vpop.f32.mrb[3].mxu0 }
  0xe6   :  { %356 = vst [vmem:[%s659_s5 + $0x8] sm:$0xff] %v340_v56  ;;  %v289_v61 = vadd.f32 %v288_v60, %v151_v58 }
  0xe7   :  { %v341_v62 = vadd.f32 %v586_v47, %v287_v59  ;;  %v155_v63 = vpop.f32.mrb[4].mxu1 }
  0xe8   :  { %v342_v0 = vadd.f32 %v588_v50, %v289_v61  ;;  %v292_v1 = vpop.f32.mrb[4].mxu0  ;;  %v157_v2 = vpop.f32.mrb[5].mxu1 }
  0xe9   :  { %357 = vst [vmem:[%s659_s5 + $0x10] sm:$0xff] %v341_v62  ;;  %v293_v3 = vadd.f32 %v292_v1, %v155_v63  ;;  %v294_v4 = vpop.f32.mrb[5].mxu0 }
  0xea   :  { %358 = vst [vmem:[%s659_s5 + $0x18] sm:$0xff] %v342_v0  ;;  %v295_v5 = vadd.f32 %v294_v4, %v157_v2 }
  0xeb   :  { %v343_v6 = vadd.f32 %v586_v47, %v293_v3  ;;  %v161_v7 = vpop.f32.mrb[6].mxu1 }
  0xec   :  { %v344_v8 = vadd.f32 %v588_v50, %v295_v5  ;;  %v298_v9 = vpop.f32.mrb[6].mxu0  ;;  %v163_v10 = vpop.f32.mrb[7].mxu1 }
  0xed   :  { %359 = vst [vmem:[%s659_s5 + $0x20] sm:$0xff] %v343_v6  ;;  %v299_v11 = vadd.f32 %v298_v9, %v161_v7  ;;  %v300_v12 = vpop.f32.mrb[7].mxu0 }
  0xee   :  { %360 = vst [vmem:[%s659_s5 + $0x28] sm:$0xff] %v344_v8  ;;  %v301_v13 = vadd.f32 %v300_v12, %v163_v10 }
  0xef   :  { %v345_v14 = vadd.f32 %v586_v47, %v299_v11  ;;  %v167_v15 = vpop.f32.mrb[8].mxu1 }
  0xf0   :  { %v346_v16 = vadd.f32 %v588_v50, %v301_v13  ;;  %v304_v17 = vpop.f32.mrb[8].mxu0  ;;  %v169_v18 = vpop.f32.mrb[9].mxu1 }
  0xf1   :  { %361 = vst [vmem:[%s659_s5 + $0x30] sm:$0xff] %v345_v14  ;;  %v305_v19 = vadd.f32 %v304_v17, %v167_v15  ;;  %v306_v20 = vpop.f32.mrb[9].mxu0 }
  0xf2   :  { %362 = vst [vmem:[%s659_s5 + $0x38] sm:$0xff] %v346_v16  ;;  %v307_v21 = vadd.f32 %v306_v20, %v169_v18 }
  0xf3   :  { %v347_v22 = vadd.f32 %v586_v47, %v305_v19  ;;  %v173_v23 = vpop.f32.mrb[10].mxu1 }
  0xf4   :  { %v348_v24 = vadd.f32 %v588_v50, %v307_v21  ;;  %v310_v25 = vpop.f32.mrb[10].mxu0  ;;  %v175_v26 = vpop.f32.mrb[11].mxu1 }
  0xf5   :  { %363 = vst [vmem:[%s659_s5 + $0x40] sm:$0xff] %v347_v22  ;;  %v311_v27 = vadd.f32 %v310_v25, %v173_v23  ;;  %v312_v28 = vpop.f32.mrb[11].mxu0 }
  0xf6   :  { %364 = vst [vmem:[%s659_s5 + $0x48] sm:$0xff] %v348_v24  ;;  %v313_v29 = vadd.f32 %v312_v28, %v175_v26 }
  0xf7   :  { %v349_v30 = vadd.f32 %v586_v47, %v311_v27  ;;  %v179_v31 = vpop.f32.mrb[12].mxu1 }
  0xf8   :  { %v350_v32 = vadd.f32 %v588_v50, %v313_v29  ;;  %v316_v33 = vpop.f32.mrb[12].mxu0  ;;  %v181_v34 = vpop.f32.mrb[13].mxu1 }
  0xf9   :  { %365 = vst [vmem:[%s659_s5 + $0x50] sm:$0xff] %v349_v30  ;;  %v317_v35 = vadd.f32 %v316_v33, %v179_v31  ;;  %v318_v36 = vpop.f32.mrb[13].mxu0 }
  0xfa   :  { %366 = vst [vmem:[%s659_s5 + $0x58] sm:$0xff] %v350_v32  ;;  %v319_v37 = vadd.f32 %v318_v36, %v181_v34 }
  0xfb   :  { %v351_v38 = vadd.f32 %v586_v47, %v317_v35  ;;  %v185_v39 = vpop.f32.mrb[14].mxu1 }
  0xfc   :  { %v352_v40 = vadd.f32 %v588_v50, %v319_v37  ;;  %v322_v41 = vpop.f32.mrb[14].mxu0  ;;  %v187_v42 = vpop.f32.mrb[15].mxu1 }
  0xfd   :  { %367 = vst [vmem:[%s659_s5 + $0x60] sm:$0xff] %v351_v38  ;;  %v323_v43 = vadd.f32 %v322_v41, %v185_v39  ;;  %v324_v44 = vpop.f32.mrb[15].mxu0 }
  0xfe   :  { %368 = vst [vmem:[%s659_s5 + $0x68] sm:$0xff] %v352_v40  ;;  %v325_v45 = vadd.f32 %v324_v44, %v187_v42 }
  0xff   :  { %v353_v46 = vadd.f32 %v586_v47, %v323_v43 }
 0x100   :  { %v354_v48 = vadd.f32 %v588_v50, %v325_v45 }
 0x101   :  { %369 = vst [vmem:[%s659_s5 + $0x70] sm:$0xff] %v353_v46 }
 0x102   :  { %370 = vst [vmem:[%s659_s5 + $0x78] sm:$0xff] %v354_v48 }

// kernel: recognition_forward.10
= control target key start
LH: loop header
LB: loop body
LE: loop exit
PB: predicated region body
PF: predicated region fallthrough
CT: control target
= control target key end

     0   :  { %v1512_v0 = vmov 0.0|0.0   ;;  %vm1513_vm0 = vmmov 0   ;;  %v1514_v4 = vmov 0.0   ;;  %v1515_v8 = vmov 0   ;;  %s1516_s25 = smov 64   ;;  %s1517_s26 = smov 32   ;;  %s1987_s1 = inlined_call_operand.vmem [shape: f32[32,128], index: 1, kind: input, shape index: {}]   ;;  %s1988_s0 = inlined_call_operand.vmem [shape: f32[8,8,128], index: 0, kind: input, shape index: {}]   ;;  %s1989_s2 = inlined_call_operand.vmem [shape: s32[8,1], index: 2, kind: input, shape index: {}]   ;;  %s1990_s3 = inlined_call_operand.vmem [shape: f32[8,8,32], index: 3, kind: output, shape index: {}]  }
   0x1   :  { %1374 = vmatprep.subr.bf16.mxu0 %v1512_v0  ;;  %v14_v1 = vld [vmem:[%s1987_s1] sm:$0xff]  ;;  %v15_v2 = vld [vmem:[%s1987_s1 + $0x8] sm:$0xff]  ;;  %v16_v3 = vld [vmem:[%s1987_s1 + $0x10] sm:$0xff]  ;;  %1294 = vmatprep.mubr.msk.f32.mxu0 %vm1513_vm0, %v1514_v4  ;;  %v19_v9 = vlaneseq  ;;  %s1519_s27 = smov 96   ;;  %vm140_vm8 = vcmask 130048   ;;  %vm30_vm9 = vcmask 261120  }
   0x2   :  { %v1552_v5 = vpack.c.bf16 %v15_v2, %v14_v1  ;;  %v17_v6 = vld [vmem:[%s1987_s1 + $0x18] sm:$0xff]  ;;  %1380 = vmatprep.subr.bf16.mxu1 %v1512_v0  ;;  %1305 = vmatprep.mubr.msk.f32.mxu1 %vm1513_vm0, %v1514_v4  ;;  %v1586_v12 = vld [vmem:[%s1988_s0] sm:$0xff]  ;;  %v1634_v45 = vld [vmem:[%s1988_s0 + $0x8] sm:$0xff] }
   0x3   :  { %v1561_v7 = vpack.c.bf16 %v17_v6, %v16_v3  ;;  %1430 = vset.pattern.permute.xlu0 %v1515_v8  ;;  %1431 = vset.pattern.permute.xlu1 %v1515_v8  ;;  %v20_v10 = vand.u32 127, %v19_v9  ;;  %v1591_v13 = vld [vmem:[%s1988_s0 + $0x38] sm:$0xff]  ;;  %v1600_v19 = vld [vmem:[%s1989_s2] sm:$0xff]  ;;  %s1518_s2 = smov 16   ;;  %v1639_v46 = vld [vmem:[%s1988_s0 + $0x30] sm:$0xff] }
   0x4   :  { %1376 = vmatpush3.bf16.msra.mxu0 %v1552_v5  ;;  %1382 = vmatpush3.bf16.msra.mxu1 %v1552_v5  ;;  %vm157_vm6 = vcmp.gt.s32.totalorder %v1600_v19, 7  ;;  %vm314_vm10 = vcmp.gt.s32.totalorder %v1600_v19, 6  ;;  %vm470_vm12 = vcmp.gt.s32.totalorder %v1600_v19, 5  ;;  %vm626_vm14 = vcmp.gt.s32.totalorder %v1600_v19, 4 }
   0x5   :  { %1377 = vmatprep.subr.bf16.mxu0 %v1512_v0  ;;  %1383 = vmatprep.subr.bf16.mxu1 %v1512_v0  ;;  %vm22_vm1 = vcmp.ge.s32.totalorder %v20_v10, 96  ;;  %vm23_vm2 = vcmp.lt.s32.totalorder %v20_v10, 112  ;;  %vm21_vm3 = vcmp.lt.s32.totalorder %v20_v10, 48  ;;  %v158_v20 = vsel %vm157_vm6, 1, %v1515_v8 }
   0x6   :  { %vm24_vm4 = vmand %vm22_vm1, %vm23_vm2  ;;  %v315_v60 = vsel %vm314_vm10, 1, %v1515_v8  ;;  %vm597_vm1 = vcmp.gt.s32.totalorder %v1600_v19, 3  ;;  %vm171_vm10 = vcmask 261248  }
   0x7   :  { %vm1579_vm5 = vmor %vm21_vm3, %vm24_vm4  ;;  %vm285_vm4 = vcmp.gt.s32.totalorder %v1600_v19, 1 }
   0x8   :  { %1379 = vmatpush3.bf16.msra.mxu0 %v1561_v7  ;;  %1385 = vmatpush3.bf16.msra.mxu1 %v1561_v7  ;;  %v29_v14 = vsel %vm1579_vm5, %v1586_v12, %v1591_v13  ;;  %v186_v47 = vsel %vm1579_vm5, %v1634_v45, %v1639_v46 }
   0x9   :  { %1386 = vmatprep.subr.bf16.mxu0 %v1512_v0  ;;  %1392 = vmatprep.subr.bf16.mxu1 %v1512_v0 }
   0xb   :  { %1295 = vmatmul.mubr.f32.vlgmr.msra.gmra.mrb[0].mxu0 %v1514_v4 }
   0xc   :  { %1388 = vmatpush3.bf16.msra.mxu0 %v1552_v5  ;;  %1316 = vmatprep.mubr.msk.f32.mxu0 %vm1513_vm0, %v1514_v4 }
   0xd   :  { %1389 = vmatprep.subr.bf16.mxu0 %v1512_v0 }
  0x10   :  { %1391 = vmatpush3.bf16.msra.mxu0 %v1561_v7 }
  0x11   :  { %1398 = vmatprep.subr.bf16.mxu0 %v1512_v0 }
  0xde   :  { %v100_v15 = vpop.f32.mrb[0].mxu0 }
  0xdf   :  { %v104_v16 = vadd.f32 %v100_v15, %v29_v14  ;;  %v1296_v17 = vpop.f32.mrb[1].mxu0 }
  0xe1   :  { %1432 = vtanh.f32 %v104_v16  ;;  %v1204_v21 = vmul.f32 -1.442695, %v104_v16 }
  0xe3   :  { %1434 = vpow2.f32 %v1204_v21 }
  0xeb   :  { %v1433_v18 = vpop.eup %1432 }
  0xec   :  { %142 = vrot.lane.b32.xlu0 %v1433_v18, %s1516_s25 }
  0xed   :  { %v1435_v22 = vpop.eup %1434 }
  0xee   :  { %v108_v23 = vadd.f32 1.0, %v1435_v22 }
  0xf0   :  { %114 = vrot.lane.b32.xlu0 %v1433_v18, %s1517_s26  ;;  %1436 = vrcp.f32 %v108_v23 }
  0xf4   :  { %160 = vperm.xlu0 %1430, %v158_v20  }
  0xfa   :  { %v1437_v24 = vpop.eup %1436 }
  0xfb   :  { %v112_v29 = vmul.f32 0.0, %v1437_v24 }
 0x15e   :  { %v143_v25 = vpop.permute.xlu0 %142 }
 0x15f   :  { %v145_v26 = vmul.f32 %v1437_v24, %v143_v25  ;;  %v1684_v25 = vld [vmem:[%s1988_s0 + $0x28] sm:$0xff] }
 0x161   :  { %147 = vrot.lane.b32.xlu1 %v145_v26, %s1518_s2 }
 0x162   :  { %v115_v27 = vpop.permute.xlu0 %114 }
 0x163   :  { %v117_v28 = vmul.f32 %v1437_v24, %v115_v27 }
 0x165   :  { %119 = vrot.lane.b32.xlu1 %v117_v28, %s1518_s2 }
 0x173   :  { %v1610_v36 = vpop.permute.xlu0 %160 }
 0x174   :  { %vm162_vm7 = vcmp.eq.s32.totalorder %v1610_v36, 1 }
 0x1d3   :  { %v148_v30 = vpop.permute.xlu1 %147 }
 0x1d4   :  { %v150_v31 = vadd.f32 %v148_v30, %v112_v29 }
 0x1d6   :  { %1438 = vtanh.f32 %v150_v31  ;;  %v164_v61 = vsel %vm162_vm7, %v150_v31, 0.0 }
 0x1d7   :  { %v120_v32 = vpop.permute.xlu1 %119 }
 0x1d8   :  { %v122_v33 = vadd.f32 %v120_v32, %v112_v29 }
 0x1da   :  { %1440 = vtanh.f32 %v122_v33 }
 0x1e0   :  { %v1439_v34 = vpop.eup %1438 }
 0x1e1   :  { %153 = vrot.lane.b32.xlu1 %v1439_v34, %s1518_s2 }
 0x1e4   :  { %v1441_v35 = vpop.eup %1440 }
 0x1e5   :  { %125 = vrot.lane.b32.xlu1 %v1441_v35, %s1518_s2 }
 0x253   :  { %v154_v37 = vpop.permute.xlu1 %153 }
 0x254   :  { %v1612_v38 = vmul.f32 %v1437_v24, %v154_v37 }
 0x256   :  { %v163_v39 = vsel %vm162_vm7, %v1612_v38, 0.0 }
 0x257   :  { %178 = vrot.lane.b32.xlu1 %v163_v39, %s1516_s25  ;;  %v126_v40 = vpop.permute.xlu1 %125 }
 0x258   :  { %v1619_v41 = vmul.f32 %v1437_v24, %v126_v40  ;;  %v1679_v24 = vld [vmem:[%s1988_s0 + $0x10] sm:$0xff] }
 0x259   :  { %v342_v26 = vsel %vm1579_vm5, %v1679_v24, %v1684_v25 }
 0x25a   :  { %174 = vrot.lane.b32.xlu0 %v1619_v41, %s1519_s27 }
 0x2c9   :  { %v179_v42 = vpop.permute.xlu1 %178 }
 0x2cc   :  { %v175_v43 = vpop.permute.xlu0 %174 }
 0x2cd   :  { %v181_v44 = vsel %vm140_vm8, %v175_v43, %v179_v42  ;;  %v471_v42 = vsel %vm470_vm12, 1, %v1515_v8 }
 0x2ce   :  { %1306 = vmatmul.mubr.msk.f32.vlgmr.msra.gmra.mrb[0].mxu1 %vm30_vm9, %v181_v44 }
 0x2cf   :  { %1394 = vmatpush3.bf16.msra.mxu1 %v1552_v5  ;;  %1327 = vmatprep.mubr.msk.f32.mxu1 %vm1513_vm0, %v1514_v4 }
 0x2d0   :  { %1395 = vmatprep.subr.bf16.mxu1 %v1512_v0 }
 0x2d3   :  { %1397 = vmatpush3.bf16.msra.mxu1 %v1561_v7 }
 0x2d4   :  { %1404 = vmatprep.subr.bf16.mxu1 %v1512_v0 }
 0x3a1   :  { %v256_v48 = vpop.f32.mrb[0].mxu1 }
 0x3a2   :  { %v260_v49 = vadd.f32 %v256_v48, %v186_v47  ;;  %v1307_v50 = vpop.f32.mrb[1].mxu1 }
 0x3a4   :  { %1442 = vtanh.f32 %v260_v49  ;;  %v1209_v52 = vmul.f32 -1.442695, %v260_v49 }
 0x3a6   :  { %1444 = vpow2.f32 %v1209_v52 }
 0x3ae   :  { %v1443_v51 = vpop.eup %1442 }
 0x3af   :  { %270 = vrot.lane.b32.xlu1 %v1443_v51, %s1517_s26  ;;  %299 = vrot.lane.b32.xlu0 %v1443_v51, %s1516_s25 }
 0x3b0   :  { %v1445_v53 = vpop.eup %1444 }
 0x3b1   :  { %v264_v54 = vadd.f32 1.0, %v1445_v53 }
 0x3b3   :  { %1446 = vrcp.f32 %v264_v54 }
 0x3bd   :  { %v1447_v55 = vpop.eup %1446 }
 0x3be   :  { %v298_v62 = vmul.f32 %v1447_v55, %v164_v61  ;;  %v268_v63 = vmul.f32 %v1447_v55, %v122_v33 }
 0x421   :  { %v271_v56 = vpop.permute.xlu1 %270  ;;  %v300_v57 = vpop.permute.xlu0 %299 }
 0x422   :  { %v273_v58 = vmul.f32 %v1447_v55, %v271_v56  ;;  %v302_v59 = vmul.f32 %v1447_v55, %v300_v57 }
 0x424   :  { %304 = vrot.lane.b32.xlu0 %v302_v59, %s1518_s2  ;;  %275 = vrot.lane.b32.xlu1 %v273_v58, %s1518_s2 }
 0x428   :  { %317 = vperm.xlu0 %1430, %v315_v60  }
 0x496   :  { %v305_v1 = vpop.permute.xlu0 %304  ;;  %v276_v2 = vpop.permute.xlu1 %275 }
 0x497   :  { %v307_v3 = vadd.f32 %v305_v1, %v298_v62  ;;  %v278_v6 = vadd.f32 %v276_v2, %v268_v63  ;;  %v1218_v63 = vld [vmem:[%s1988_s0 + $0x18] sm:$0xff]  ;;  %v1219_v1 = vld [vmem:[%s1988_s0 + $0x20] sm:$0xff] }
 0x498   :  { %v498_v2 = vsel %vm1579_vm5, %v1218_v63, %v1219_v1 }
 0x499   :  { %1448 = vtanh.f32 %v307_v3 }
 0x49a   :  { %1450 = vtanh.f32 %v278_v6 }
 0x4a3   :  { %v1449_v9 = vpop.eup %1448 }
 0x4a4   :  { %v1451_v10 = vpop.eup %1450  ;;  %310 = vrot.lane.b32.xlu1 %v1449_v9, %s1518_s2 }
 0x4a5   :  { %281 = vrot.lane.b32.xlu0 %v1451_v10, %s1518_s2 }
 0x4a7   :  { %v1655_v14 = vpop.permute.xlu0 %317 }
 0x4a8   :  { %vm319_vm11 = vcmp.eq.s32.totalorder %v1655_v14, 1 }
 0x4a9   :  { %v321_v43 = vsel %vm319_vm11, %v307_v3, 0.0 }
 0x516   :  { %v311_v15 = vpop.permute.xlu1 %310 }
 0x517   :  { %v1657_v16 = vmul.f32 %v1447_v55, %v311_v15  ;;  %v282_v17 = vpop.permute.xlu0 %281 }
 0x518   :  { %v1660_v18 = vmul.f32 %v1447_v55, %v282_v17 }
 0x519   :  { %v320_v20 = vsel %vm319_vm11, %v1657_v16, 0.0 }
 0x51a   :  { %330 = vrot.lane.b32.xlu1 %v1660_v18, %s1519_s27  ;;  %334 = vrot.lane.b32.xlu0 %v320_v20, %s1516_s25 }
 0x58c   :  { %v331_v21 = vpop.permute.xlu1 %330  ;;  %v335_v22 = vpop.permute.xlu0 %334 }
 0x58d   :  { %v337_v23 = vsel %vm140_vm8, %v331_v21, %v335_v22 }
 0x58e   :  { %1317 = vmatmul.mubr.msk.f32.vlgmr.msra.gmra.mrb[2].mxu0 %vm30_vm9, %v337_v23 }
 0x58f   :  { %1400 = vmatpush3.bf16.msra.mxu0 %v1552_v5  ;;  %1338 = vmatprep.mubr.msk.f32.mxu0 %vm1513_vm0, %v1514_v4 }
 0x590   :  { %1401 = vmatprep.subr.bf16.mxu0 %v1512_v0 }
 0x593   :  { %1403 = vmatpush3.bf16.msra.mxu0 %v1561_v7 }
 0x594   :  { %1410 = vmatprep.subr.bf16.mxu0 %v1512_v0 }
 0x661   :  { %v412_v27 = vpop.f32.mrb[2].mxu0 }
 0x662   :  { %v416_v28 = vadd.f32 %v412_v27, %v342_v26  ;;  %v1318_v29 = vpop.f32.mrb[3].mxu0 }
 0x664   :  { %1452 = vtanh.f32 %v416_v28  ;;  %v1215_v31 = vmul.f32 -1.442695, %v416_v28  ;;  %v627_v28 = vsel %vm626_vm14, 1, %v1515_v8 }
 0x666   :  { %1454 = vpow2.f32 %v1215_v31 }
 0x66e   :  { %v1453_v30 = vpop.eup %1452 }
 0x66f   :  { %426 = vrot.lane.b32.xlu0 %v1453_v30, %s1517_s26  ;;  %455 = vrot.lane.b32.xlu1 %v1453_v30, %s1516_s25 }
 0x670   :  { %v1455_v32 = vpop.eup %1454 }
 0x671   :  { %v420_v33 = vadd.f32 1.0, %v1455_v32 }
 0x673   :  { %1456 = vrcp.f32 %v420_v33 }
 0x67d   :  { %v1457_v34 = vpop.eup %1456 }
 0x67e   :  { %v454_v44 = vmul.f32 %v1457_v34, %v321_v43  ;;  %v424_v47 = vmul.f32 %v1457_v34, %v278_v6 }
 0x6e1   :  { %v427_v35 = vpop.permute.xlu0 %426  ;;  %v456_v37 = vpop.permute.xlu1 %455 }
 0x6e2   :  { %v429_v39 = vmul.f32 %v1457_v34, %v427_v35  ;;  %v458_v40 = vmul.f32 %v1457_v34, %v456_v37 }
 0x6e4   :  { %460 = vrot.lane.b32.xlu1 %v458_v40, %s1518_s2  ;;  %431 = vrot.lane.b32.xlu0 %v429_v39, %s1518_s2 }
 0x6e8   :  { %473 = vperm.xlu1 %1431, %v471_v42  }
 0x756   :  { %v461_v48 = vpop.permute.xlu1 %460  ;;  %v432_v49 = vpop.permute.xlu0 %431 }
 0x757   :  { %v463_v50 = vadd.f32 %v461_v48, %v454_v44  ;;  %v434_v51 = vadd.f32 %v432_v49, %v424_v47 }
 0x759   :  { %1458 = vtanh.f32 %v463_v50 }
 0x75a   :  { %1460 = vtanh.f32 %v434_v51 }
 0x763   :  { %v1459_v52 = vpop.eup %1458 }
 0x764   :  { %v1461_v53 = vpop.eup %1460  ;;  %466 = vrot.lane.b32.xlu0 %v1459_v52, %s1518_s2  ;;  %v652_v52 = vsel %vm1579_vm5, %v1219_v1, %v1218_v63  ;;  %v598_v63 = vsel %vm597_vm1, 1, %v1515_v8 }
 0x765   :  { %437 = vrot.lane.b32.xlu1 %v1461_v53, %s1518_s2 }
 0x767   :  { %v1700_v54 = vpop.permute.xlu1 %473 }
 0x768   :  { %vm475_vm13 = vcmp.eq.s32.totalorder %v1700_v54, 1 }
 0x769   :  { %v477_v29 = vsel %vm475_vm13, %v463_v50, 0.0 }
 0x7d6   :  { %v467_v55 = vpop.permute.xlu0 %466 }
 0x7d7   :  { %v1702_v56 = vmul.f32 %v1457_v34, %v467_v55  ;;  %v438_v57 = vpop.permute.xlu1 %437 }
 0x7d8   :  { %v1705_v58 = vmul.f32 %v1457_v34, %v438_v57 }
 0x7d9   :  { %v476_v59 = vsel %vm475_vm13, %v1702_v56, 0.0 }
 0x7da   :  { %486 = vrot.lane.b32.xlu0 %v1705_v58, %s1519_s27  ;;  %490 = vrot.lane.b32.xlu1 %v476_v59, %s1516_s25 }
 0x84c   :  { %v487_v60 = vpop.permute.xlu0 %486  ;;  %v491_v61 = vpop.permute.xlu1 %490 }
 0x84d   :  { %v493_v62 = vsel %vm140_vm8, %v487_v60, %v491_v61 }
 0x84e   :  { %1328 = vmatmul.mubr.msk.f32.vlgmr.msra.gmra.mrb[2].mxu1 %vm30_vm9, %v493_v62 }
 0x84f   :  { %1406 = vmatpush3.bf16.msra.mxu1 %v1552_v5  ;;  %1349 = vmatprep.mubr.msk.f32.mxu1 %vm1513_vm0, %v1514_v4 }
 0x850   :  { %1407 = vmatprep.subr.bf16.mxu1 %v1512_v0 }
 0x853   :  { %1409 = vmatpush3.bf16.msra.mxu1 %v1561_v7 }
 0x854   :  { %1416 = vmatprep.subr.bf16.mxu1 %v1512_v0 }
 0x921   :  { %v568_v3 = vpop.f32.mrb[2].mxu1 }
 0x922   :  { %v572_v6 = vadd.f32 %v568_v3, %v498_v2  ;;  %v1329_v9 = vpop.f32.mrb[3].mxu1 }
 0x924   :  { %1462 = vtanh.f32 %v572_v6  ;;  %v1221_v15 = vmul.f32 -1.442695, %v572_v6 }
 0x926   :  { %1464 = vpow2.f32 %v1221_v15 }
 0x92e   :  { %v1463_v10 = vpop.eup %1462 }
 0x92f   :  { %582 = vrot.lane.b32.xlu1 %v1463_v10, %s1517_s26  ;;  %611 = vrot.lane.b32.xlu0 %v1463_v10, %s1516_s25 }
 0x930   :  { %v1465_v17 = vpop.eup %1464 }
 0x931   :  { %v576_v20 = vadd.f32 1.0, %v1465_v17 }
 0x933   :  { %1466 = vrcp.f32 %v576_v20 }
 0x93d   :  { %v1467_v21 = vpop.eup %1466 }
 0x93e   :  { %v610_v30 = vmul.f32 %v1467_v21, %v477_v29  ;;  %v580_v31 = vmul.f32 %v1467_v21, %v434_v51 }
 0x9a1   :  { %v583_v22 = vpop.permute.xlu1 %582  ;;  %v612_v23 = vpop.permute.xlu0 %611 }
 0x9a2   :  { %v585_v26 = vmul.f32 %v1467_v21, %v583_v22  ;;  %v614_v27 = vmul.f32 %v1467_v21, %v612_v23 }
 0x9a4   :  { %616 = vrot.lane.b32.xlu0 %v614_v27, %s1518_s2  ;;  %587 = vrot.lane.b32.xlu1 %v585_v26, %s1518_s2 }
 0x9a8   :  { %629 = vperm.xlu0 %1430, %v627_v28  }
 0xa16   :  { %v617_v32 = vpop.permute.xlu0 %616  ;;  %v588_v33 = vpop.permute.xlu1 %587 }
 0xa17   :  { %v619_v34 = vadd.f32 %v617_v32, %v610_v30  ;;  %v590_v35 = vadd.f32 %v588_v33, %v580_v31 }
 0xa19   :  { %1468 = vtanh.f32 %v619_v34 }
 0xa1a   :  { %1470 = vtanh.f32 %v590_v35 }
 0xa23   :  { %v1469_v37 = vpop.eup %1468 }
 0xa24   :  { %v1471_v39 = vpop.eup %1470  ;;  %622 = vrot.lane.b32.xlu1 %v1469_v37, %s1518_s2 }
 0xa25   :  { %593 = vrot.lane.b32.xlu0 %v1471_v39, %s1518_s2  ;;  %v792_v39 = vsel %vm1579_vm5, %v1684_v25, %v1679_v24 }
 0xa27   :  { %v1739_v40 = vpop.permute.xlu0 %629 }
 0xa28   :  { %vm631_vm15 = vcmp.eq.s32.totalorder %v1739_v40, 1 }
 0xa29   :  { %v633_v1 = vsel %vm631_vm15, %v619_v34, 0.0 }
 0xa96   :  { %v623_v42 = vpop.permute.xlu1 %622 }
 0xa97   :  { %v1741_v43 = vmul.f32 %v1467_v21, %v623_v42  ;;  %v594_v44 = vpop.permute.xlu0 %593 }
 0xa98   :  { %v1744_v47 = vmul.f32 %v1467_v21, %v594_v44 }
 0xa99   :  { %v632_v48 = vsel %vm631_vm15, %v1741_v43, 0.0 }
 0xa9a   :  { %642 = vrot.lane.b32.xlu1 %v1744_v47, %s1519_s27  ;;  %646 = vrot.lane.b32.xlu0 %v632_v48, %s1516_s25 }
 0xb0c   :  { %v643_v49 = vpop.permute.xlu1 %642  ;;  %v647_v50 = vpop.permute.xlu0 %646 }
 0xb0d   :  { %v649_v51 = vsel %vm140_vm8, %v643_v49, %v647_v50 }
 0xb0e   :  { %1339 = vmatmul.mubr.msk.f32.vlgmr.msra.gmra.mrb[4].mxu0 %vm30_vm9, %v649_v51 }
 0xb0f   :  { %1412 = vmatpush3.bf16.msra.mxu0 %v1552_v5  ;;  %1360 = vmatprep.mubr.msk.f32.mxu0 %vm1513_vm0, %v1514_v4 }
 0xb10   :  { %1413 = vmatprep.subr.bf16.mxu0 %v1512_v0 }
 0xb13   :  { %1415 = vmatpush3.bf16.msra.mxu0 %v1561_v7 }
 0xbe1   :  { %v722_v53 = vpop.f32.mrb[4].mxu0 }
 0xbe2   :  { %v726_v55 = vadd.f32 %v722_v53, %v652_v52  ;;  %v1340_v57 = vpop.f32.mrb[5].mxu0 }
 0xbe4   :  { %1472 = vtanh.f32 %v726_v55  ;;  %v1227_v60 = vmul.f32 -1.442695, %v726_v55 }
 0xbe6   :  { %1474 = vpow2.f32 %v1227_v60 }
 0xbee   :  { %v1473_v59 = vpop.eup %1472 }
 0xbef   :  { %736 = vrot.lane.b32.xlu0 %v1473_v59, %s1517_s26  ;;  %758 = vrot.lane.b32.xlu1 %v1473_v59, %s1516_s25 }
 0xbf0   :  { %v1475_v61 = vpop.eup %1474 }
 0xbf1   :  { %v730_v62 = vadd.f32 1.0, %v1475_v61 }
 0xbf3   :  { %1476 = vrcp.f32 %v730_v62 }
 0xbfd   :  { %v1477_v2 = vpop.eup %1476 }
 0xbfe   :  { %v757_v15 = vmul.f32 %v1477_v2, %v633_v1  ;;  %v734_v17 = vmul.f32 %v1477_v2, %v590_v35 }
 0xc61   :  { %v737_v3 = vpop.permute.xlu0 %736  ;;  %v759_v6 = vpop.permute.xlu1 %758 }
 0xc62   :  { %v739_v9 = vmul.f32 %v1477_v2, %v737_v3  ;;  %v761_v10 = vmul.f32 %v1477_v2, %v759_v6 }
 0xc64   :  { %763 = vrot.lane.b32.xlu1 %v761_v10, %s1518_s2  ;;  %741 = vrot.lane.b32.xlu0 %v739_v9, %s1518_s2 }
 0xc68   :  { %600 = vperm.xlu1 %1431, %v598_v63  }
 0xcd6   :  { %v764_v20 = vpop.permute.xlu1 %763  ;;  %v742_v21 = vpop.permute.xlu0 %741 }
 0xcd7   :  { %v766_v22 = vadd.f32 %v764_v20, %v757_v15  ;;  %v744_v23 = vadd.f32 %v742_v21, %v734_v17 }
 0xcd9   :  { %1478 = vtanh.f32 %v766_v22 }
 0xcda   :  { %1480 = vtanh.f32 %v744_v23 }
 0xce3   :  { %v1479_v26 = vpop.eup %1478 }
 0xce4   :  { %v1481_v27 = vpop.eup %1480  ;;  %769 = vrot.lane.b32.xlu0 %v1479_v26, %s1518_s2 }
 0xce5   :  { %747 = vrot.lane.b32.xlu1 %v1481_v27, %s1518_s2 }
 0xce7   :  { %v1771_v28 = vpop.permute.xlu1 %600 }
 0xce8   :  { %vm602_vm2 = vcmp.eq.s32.totalorder %v1771_v28, 1 }
 0xce9   :  { %v774_v25 = vsel %vm602_vm2, %v766_v22, 0.0  ;;  %v932_v22 = vsel %vm1579_vm5, %v1639_v46, %v1634_v45  ;;  %v286_v45 = vsel %vm285_vm4, 1, %v1515_v8 }
 0xd56   :  { %v770_v29 = vpop.permute.xlu0 %769 }
 0xd57   :  { %v1773_v30 = vmul.f32 %v1477_v2, %v770_v29  ;;  %v748_v31 = vpop.permute.xlu1 %747 }
 0xd58   :  { %v1776_v32 = vmul.f32 %v1477_v2, %v748_v31 }
 0xd59   :  { %v773_v33 = vsel %vm602_vm2, %v1773_v30, 0.0 }
 0xd5a   :  { %782 = vrot.lane.b32.xlu0 %v1776_v32, %s1519_s27  ;;  %786 = vrot.lane.b32.xlu1 %v773_v33, %s1516_s25 }
 0xdcc   :  { %v783_v34 = vpop.permute.xlu0 %782  ;;  %v787_v35 = vpop.permute.xlu1 %786 }
 0xdcd   :  { %v789_v37 = vsel %vm140_vm8, %v783_v34, %v787_v35 }
 0xdce   :  { %1350 = vmatmul.mubr.msk.f32.vlgmr.msra.gmra.mrb[4].mxu1 %vm30_vm9, %v789_v37 }
 0xdcf   :  { %1418 = vmatpush3.bf16.msra.mxu1 %v1552_v5  ;;  %1371 = vmatprep.mubr.msk.f32.mxu1 %vm1513_vm0, %v1514_v4  ;;  %vm441_vm0 = vcmp.gt.s32.totalorder %v1600_v19, 2 }
 0xdd0   :  { %1419 = vmatprep.subr.bf16.mxu1 %v1512_v0  ;;  %v442_v24 = vsel %vm441_vm0, 1, %v1515_v8 }
 0xdd3   :  { %1421 = vmatpush3.bf16.msra.mxu1 %v1561_v7 }
 0xea1   :  { %v862_v42 = vpop.f32.mrb[4].mxu1 }
 0xea2   :  { %v866_v44 = vadd.f32 %v862_v42, %v792_v39  ;;  %v1351_v48 = vpop.f32.mrb[5].mxu1 }
 0xea4   :  { %1482 = vtanh.f32 %v866_v44  ;;  %v1233_v5 = vmul.f32 -1.442695, %v866_v44 }
 0xea6   :  { %1484 = vpow2.f32 %v1233_v5 }
 0xeae   :  { %v1483_v49 = vpop.eup %1482 }
 0xeaf   :  { %876 = vrot.lane.b32.xlu1 %v1483_v49, %s1517_s26  ;;  %898 = vrot.lane.b32.xlu0 %v1483_v49, %s1516_s25 }
 0xeb0   :  { %v1485_v4 = vpop.eup %1484 }
 0xeb1   :  { %v870_v0 = vadd.f32 1.0, %v1485_v4 }
 0xeb3   :  { %1486 = vrcp.f32 %v870_v0 }
 0xebd   :  { %v1487_v7 = vpop.eup %1486 }
 0xebe   :  { %v897_v55 = vmul.f32 %v1487_v7, %v774_v25  ;;  %v874_v57 = vmul.f32 %v1487_v7, %v744_v23 }
 0xf21   :  { %v877_v50 = vpop.permute.xlu1 %876  ;;  %v899_v51 = vpop.permute.xlu0 %898 }
 0xf22   :  { %v879_v52 = vmul.f32 %v1487_v7, %v877_v50  ;;  %v901_v53 = vmul.f32 %v1487_v7, %v899_v51 }
 0xf24   :  { %903 = vrot.lane.b32.xlu0 %v901_v53, %s1518_s2  ;;  %881 = vrot.lane.b32.xlu1 %v879_v52, %s1518_s2 }
 0xf28   :  { %444 = vperm.xlu0 %1430, %v442_v24  }
 0xf96   :  { %v904_v59 = vpop.permute.xlu0 %903  ;;  %v882_v60 = vpop.permute.xlu1 %881 }
 0xf97   :  { %v906_v61 = vadd.f32 %v904_v59, %v897_v55  ;;  %v884_v62 = vadd.f32 %v882_v60, %v874_v57 }
 0xf99   :  { %1488 = vtanh.f32 %v906_v61 }
 0xf9a   :  { %1490 = vtanh.f32 %v884_v62 }
 0xfa3   :  { %v1489_v2 = vpop.eup %1488 }
 0xfa4   :  { %v1491_v3 = vpop.eup %1490  ;;  %909 = vrot.lane.b32.xlu1 %v1489_v2, %s1518_s2 }
 0xfa5   :  { %887 = vrot.lane.b32.xlu0 %v1491_v3, %s1518_s2 }
 0xfa7   :  { %v1805_v6 = vpop.permute.xlu0 %444 }
 0xfa8   :  { %vm446_vm3 = vcmp.eq.s32.totalorder %v1805_v6, 1 }
 0xfa9   :  { %v914_v46 = vsel %vm446_vm3, %v906_v61, 0.0 }
0x1016   :  { %v910_v9 = vpop.permute.xlu1 %909 }
0x1017   :  { %v1807_v10 = vmul.f32 %v1487_v7, %v910_v9  ;;  %v888_v63 = vpop.permute.xlu0 %887 }
0x1018   :  { %v1810_v1 = vmul.f32 %v1487_v7, %v888_v63 }
0x1019   :  { %v913_v15 = vsel %vm446_vm3, %v1807_v10, 0.0 }
0x101a   :  { %922 = vrot.lane.b32.xlu1 %v1810_v1, %s1519_s27  ;;  %926 = vrot.lane.b32.xlu0 %v913_v15, %s1516_s25 }
0x108c   :  { %v923_v17 = vpop.permute.xlu1 %922  ;;  %v927_v20 = vpop.permute.xlu0 %926 }
0x108d   :  { %v929_v21 = vsel %vm140_vm8, %v923_v17, %v927_v20 }
0x108e   :  { %1361 = vmatmul.mubr.msk.f32.vlgmr.msra.gmra.mrb[6].mxu0 %vm30_vm9, %v929_v21 }
0x1161   :  { %v1002_v23 = vpop.f32.mrb[6].mxu0 }
0x1162   :  { %v1006_v26 = vadd.f32 %v1002_v23, %v932_v22  ;;  %v1362_v27 = vpop.f32.mrb[7].mxu0 }
0x1164   :  { %1492 = vtanh.f32 %v1006_v26  ;;  %v1239_v31 = vmul.f32 -1.442695, %v1006_v26 }
0x1166   :  { %1494 = vpow2.f32 %v1239_v31 }
0x116e   :  { %v1493_v29 = vpop.eup %1492 }
0x116f   :  { %1016 = vrot.lane.b32.xlu0 %v1493_v29, %s1517_s26  ;;  %1038 = vrot.lane.b32.xlu1 %v1493_v29, %s1516_s25 }
0x1170   :  { %v1495_v33 = vpop.eup %1494 }
0x1171   :  { %v1010_v34 = vadd.f32 1.0, %v1495_v33 }
0x1173   :  { %1496 = vrcp.f32 %v1010_v34 }
0x117d   :  { %v1497_v35 = vpop.eup %1496 }
0x117e   :  { %v1037_v48 = vmul.f32 %v1497_v35, %v914_v46  ;;  %v1014_v49 = vmul.f32 %v1497_v35, %v884_v62  ;;  %v1072_v62 = vsel %vm1579_vm5, %v1591_v13, %v1586_v12  ;;  %vm129_vm5 = vcmp.gt.s32.totalorder %v1600_v19, 0 }
0x117f   :  { %v130_v12 = vsel %vm129_vm5, 1, %v1515_v8  ;;  %v165_v8 = vsel %vm162_vm7, %v1612_v38, -1.0  ;;  %v478_v38 = vsel %vm475_vm13, %v1702_v56, -1.0  ;;  %v775_v56 = vsel %vm602_vm2, %v1773_v30, -1.0 }
0x11e1   :  { %v1017_v37 = vpop.permute.xlu0 %1016  ;;  %v1039_v39 = vpop.permute.xlu1 %1038 }
0x11e2   :  { %v1019_v42 = vmul.f32 %v1497_v35, %v1017_v37  ;;  %v1041_v44 = vmul.f32 %v1497_v35, %v1039_v39 }
0x11e4   :  { %1043 = vrot.lane.b32.xlu1 %v1041_v44, %s1518_s2  ;;  %1021 = vrot.lane.b32.xlu0 %v1019_v42, %s1518_s2  ;;  %v322_v44 = vsel %vm319_vm11, %v1657_v16, -1.0  ;;  %v634_v16 = vsel %vm631_vm15, %v1741_v43, -1.0  ;;  %v915_v43 = vsel %vm446_vm3, %v1807_v10, -1.0 }
0x11e8   :  { %288 = vperm.xlu1 %1431, %v286_v45  }
0x1256   :  { %v1044_v5 = vpop.permute.xlu1 %1043  ;;  %v1022_v4 = vpop.permute.xlu0 %1021 }
0x1257   :  { %v1046_v0 = vadd.f32 %v1044_v5, %v1037_v48  ;;  %v1024_v7 = vadd.f32 %v1022_v4, %v1014_v49 }
0x1259   :  { %1498 = vtanh.f32 %v1046_v0 }
0x125a   :  { %1500 = vtanh.f32 %v1024_v7 }
0x1263   :  { %v1499_v50 = vpop.eup %1498 }
0x1264   :  { %v1501_v51 = vpop.eup %1500  ;;  %1049 = vrot.lane.b32.xlu0 %v1499_v50, %s1518_s2 }
0x1265   :  { %1027 = vrot.lane.b32.xlu1 %v1501_v51, %s1518_s2 }
0x1267   :  { %v1834_v52 = vpop.permute.xlu1 %288 }
0x1268   :  { %vm290_vm6 = vcmp.eq.s32.totalorder %v1834_v52, 1 }
0x1269   :  { %v1054_v13 = vsel %vm290_vm6, %v1046_v0, 0.0  ;;  %v291_v45 = vsel %vm290_vm6, %v1660_v18, -1.0  ;;  %v603_v18 = vsel %vm602_vm2, %v1744_v47, -1.0  ;;  %v891_v47 = vsel %vm475_vm13, %v1810_v1, -1.0 }
0x12d6   :  { %v1050_v53 = vpop.permute.xlu0 %1049 }
0x12d7   :  { %v1836_v24 = vmul.f32 %v1497_v35, %v1050_v53  ;;  %v1028_v25 = vpop.permute.xlu1 %1027 }
0x12d8   :  { %v1839_v55 = vmul.f32 %v1497_v35, %v1028_v25 }
0x12d9   :  { %v1053_v57 = vsel %vm290_vm6, %v1836_v24, 0.0  ;;  %v1055_v28 = vsel %vm290_vm6, %v1836_v24, -1.0 }
0x12da   :  { %1062 = vrot.lane.b32.xlu0 %v1839_v55, %s1519_s27  ;;  %1066 = vrot.lane.b32.xlu1 %v1053_v57, %s1516_s25  ;;  %v1031_v40 = vsel %vm319_vm11, %v1839_v55, -1.0 }
0x134c   :  { %v1063_v59 = vpop.permute.xlu0 %1062  ;;  %v1067_v60 = vpop.permute.xlu1 %1066 }
0x134d   :  { %v1069_v61 = vsel %vm140_vm8, %v1063_v59, %v1067_v60 }
0x134e   :  { %1372 = vmatmul.mubr.msk.f32.vlgmr.msra.gmra.mrb[6].mxu1 %vm30_vm9, %v1069_v61 }
0x1421   :  { %v1142_v2 = vpop.f32.mrb[6].mxu1 }
0x1422   :  { %v1146_v3 = vadd.f32 %v1142_v2, %v1072_v62  ;;  %v1373_v9 = vpop.f32.mrb[7].mxu1 }
0x1424   :  { %1502 = vtanh.f32 %v1146_v3  ;;  %v1244_v15 = vmul.f32 -1.442695, %v1146_v3 }
0x1426   :  { %1504 = vpow2.f32 %v1244_v15 }
0x142e   :  { %v1503_v63 = vpop.eup %1502 }
0x142f   :  { %1178 = vrot.lane.b32.xlu1 %v1503_v63, %s1516_s25  ;;  %1156 = vrot.lane.b32.xlu0 %v1503_v63, %s1517_s26 }
0x1430   :  { %v1505_v17 = vpop.eup %1504 }
0x1431   :  { %v1150_v20 = vadd.f32 1.0, %v1505_v17 }
0x1433   :  { %1506 = vrcp.f32 %v1150_v20 }
0x143d   :  { %v1507_v21 = vpop.eup %1506 }
0x143e   :  { %v1177_v27 = vmul.f32 %v1507_v21, %v1054_v13  ;;  %v1154_v29 = vmul.f32 %v1507_v21, %v1024_v7 }
0x14a1   :  { %v1179_v22 = vpop.permute.xlu1 %1178  ;;  %v1157_v23 = vpop.permute.xlu0 %1156 }
0x14a2   :  { %v1181_v26 = vmul.f32 %v1507_v21, %v1179_v22  ;;  %v1159_v11 = vmul.f32 %v1507_v21, %v1157_v23 }
0x14a4   :  { %1183 = vrot.lane.b32.xlu1 %v1181_v26, %s1518_s2  ;;  %1161 = vrot.lane.b32.xlu0 %v1159_v11, %s1518_s2 }
0x14a8   :  { %132 = vperm.xlu0 %1430, %v130_v12  }
0x1516   :  { %v1184_v31 = vpop.permute.xlu1 %1183  ;;  %v1162_v33 = vpop.permute.xlu0 %1161 }
0x1517   :  { %v1186_v34 = vadd.f32 %v1184_v31, %v1177_v27  ;;  %v1164_v35 = vadd.f32 %v1162_v33, %v1154_v29 }
0x1519   :  { %1508 = vtanh.f32 %v1186_v34 }
0x151a   :  { %1510 = vtanh.f32 %v1164_v35 }
0x1523   :  { %v1509_v37 = vpop.eup %1508 }
0x1524   :  { %v1511_v19 = vpop.eup %1510  ;;  %1189 = vrot.lane.b32.xlu0 %v1509_v37, %s1518_s2 }
0x1525   :  { %1167 = vrot.lane.b32.xlu1 %v1511_v19, %s1518_s2 }
0x1527   :  { %v133_v39 = vpop.permute.xlu0 %132 }
0x1528   :  { %vm134_vm9 = vcmp.eq.s32.totalorder %v133_v39, 1  ;;  %167 = vrot.lane.b32.xlu0 %v165_v8, %s1516_s25 }
0x1529   :  { %v135_v42 = vsel %vm134_vm9, %v1619_v41, -1.0  ;;  %v447_v41 = vsel %vm446_vm3, %v1705_v58, -1.0  ;;  %v751_v58 = vsel %vm631_vm15, %v1776_v32, -1.0 }
0x152a   :  { %137 = vrot.lane.b32.xlu1 %v135_v42, %s1519_s27 }
0x152c   :  { %324 = vrot.lane.b32.xlu0 %v322_v44, %s1516_s25 }
0x152e   :  { %293 = vrot.lane.b32.xlu1 %v291_v45, %s1519_s27 }
0x1530   :  { %480 = vrot.lane.b32.xlu0 %v478_v38, %s1516_s25 }
0x1532   :  { %449 = vrot.lane.b32.xlu1 %v447_v41, %s1519_s27 }
0x1534   :  { %636 = vrot.lane.b32.xlu0 %v634_v16, %s1516_s25 }
0x1536   :  { %605 = vrot.lane.b32.xlu1 %v603_v18, %s1519_s27 }
0x1538   :  { %777 = vrot.lane.b32.xlu0 %v775_v56, %s1516_s25 }
0x153a   :  { %753 = vrot.lane.b32.xlu1 %v751_v58, %s1519_s27 }
0x153c   :  { %917 = vrot.lane.b32.xlu0 %v915_v43, %s1516_s25 }
0x153e   :  { %893 = vrot.lane.b32.xlu1 %v891_v47, %s1519_s27 }
0x1540   :  { %1057 = vrot.lane.b32.xlu0 %v1055_v28, %s1516_s25 }
0x1542   :  { %1033 = vrot.lane.b32.xlu1 %v1031_v40, %s1519_s27 }
0x1596   :  { %v1190_v30 = vpop.permute.xlu0 %1189 }
0x1597   :  { %v1192_v32 = vmul.f32 %v1507_v21, %v1190_v30  ;;  %v1168_v6 = vpop.permute.xlu1 %1167 }
0x1598   :  { %v1170_v10 = vmul.f32 %v1507_v21, %v1168_v6 }
0x1599   :  { %v1193_v54 = vsel %vm134_vm9, %v1192_v32, -1.0 }
0x159a   :  { %1195 = vrot.lane.b32.xlu0 %v1193_v54, %s1516_s25  ;;  %v168_v1 = vpop.permute.xlu0 %167  ;;  %v1171_v46 = vsel %vm162_vm7, %v1170_v10, -1.0 }
0x159b   :  { %1205 = vst.msk [vmem:[%s1990_s3 + $0x38] sm:$0xff] %vm171_vm10, %v168_v1  ;;  %1173 = vrot.lane.b32.xlu1 %v1171_v46, %s1519_s27 }
0x159c   :  { %v138_v14 = vpop.permute.xlu1 %137 }
0x159d   :  { %141 = vst.msk [vmem:[%s1990_s3] sm:$0xff] %vm140_vm8, %v138_v14 }
0x159e   :  { %v325_v48 = vpop.permute.xlu0 %324 }
0x159f   :  { %1211 = vst.msk [vmem:[%s1990_s3 + $0x30] sm:$0xff] %vm171_vm10, %v325_v48 }
0x15a0   :  { %v294_v36 = vpop.permute.xlu1 %293 }
0x15a1   :  { %1210 = vst.msk [vmem:[%s1990_s3 + $0x8] sm:$0xff] %vm140_vm8, %v294_v36 }
0x15a2   :  { %v481_v49 = vpop.permute.xlu0 %480 }
0x15a3   :  { %1217 = vst.msk [vmem:[%s1990_s3 + $0x28] sm:$0xff] %vm171_vm10, %v481_v49 }
0x15a4   :  { %v450_v5 = vpop.permute.xlu1 %449 }
0x15a5   :  { %1216 = vst.msk [vmem:[%s1990_s3 + $0x10] sm:$0xff] %vm140_vm8, %v450_v5 }
0x15a6   :  { %v637_v4 = vpop.permute.xlu0 %636 }
0x15a7   :  { %1223 = vst.msk [vmem:[%s1990_s3 + $0x20] sm:$0xff] %vm171_vm10, %v637_v4 }
0x15a8   :  { %v606_v0 = vpop.permute.xlu1 %605 }
0x15a9   :  { %1222 = vst.msk [vmem:[%s1990_s3 + $0x18] sm:$0xff] %vm140_vm8, %v606_v0 }
0x15aa   :  { %v778_v7 = vpop.permute.xlu0 %777 }
0x15ab   :  { %1229 = vst.msk [vmem:[%s1990_s3 + $0x18] sm:$0xff] %vm171_vm10, %v778_v7 }
0x15ac   :  { %v754_v50 = vpop.permute.xlu1 %753 }
0x15ad   :  { %1228 = vst.msk [vmem:[%s1990_s3 + $0x20] sm:$0xff] %vm140_vm8, %v754_v50 }
0x15ae   :  { %v918_v51 = vpop.permute.xlu0 %917 }
0x15af   :  { %1235 = vst.msk [vmem:[%s1990_s3 + $0x10] sm:$0xff] %vm171_vm10, %v918_v51 }
0x15b0   :  { %v894_v52 = vpop.permute.xlu1 %893 }
0x15b1   :  { %1234 = vst.msk [vmem:[%s1990_s3 + $0x28] sm:$0xff] %vm140_vm8, %v894_v52 }
0x15b2   :  { %v1058_v53 = vpop.permute.xlu0 %1057 }
0x15b3   :  { %1241 = vst.msk [vmem:[%s1990_s3 + $0x8] sm:$0xff] %vm171_vm10, %v1058_v53 }
0x15b4   :  { %v1034_v24 = vpop.permute.xlu1 %1033 }
0x15b5   :  { %1240 = vst.msk [vmem:[%s1990_s3 + $0x30] sm:$0xff] %vm140_vm8, %v1034_v24 }
0x160c   :  { %v1196_v25 = vpop.permute.xlu0 %1195 }
0x160d   :  { %1198 = vst.msk [vmem:[%s1990_s3] sm:$0xff] %vm171_vm10, %v1196_v25  ;;  %v1174_v55 = vpop.permute.xlu1 %1173 }
0x160e   :  { %1245 = vst.msk [vmem:[%s1990_s3 + $0x38] sm:$0xff] %vm140_vm8, %v1174_v55 }

// kernel: recognition_forward.13
= control target key start
LH: loop header
LB: loop body
LE: loop exit
PB: predicated region body
PF: predicated region fallthrough
CT: control target
= control target key end

     0   :  { %vm37_vm0 = vcmask 523264   ;;  %s359_s1 = inlined_call_operand.vmem [shape: f32[64,128], index: 1, kind: input, shape index: {}]   ;;  %s360_s0 = inlined_call_operand.vmem [shape: f32[64,64], index: 0, kind: input, shape index: {}]   ;;  %s361_s2 = inlined_call_operand.vmem [shape: f32[1,128], index: 2, kind: input, shape index: {}]   ;;  %s362_s3 = inlined_call_operand.vmem [shape: f32[64,128], index: 3, kind: output, shape index: {}]  }
   0x1   :  { %v22_v0 = vld [vmem:[%s359_s1] sm:$0xff]  ;;  %v23_v1 = vld [vmem:[%s359_s1 + $0x8] sm:$0xff]  ;;  %v24_v2 = vld [vmem:[%s359_s1 + $0x10] sm:$0xff] }
   0x2   :  { %v232_v3 = vpack.c.bf16 %v23_v1, %v22_v0  ;;  %v25_v4 = vld [vmem:[%s359_s1 + $0x18] sm:$0xff]  ;;  %v26_v6 = vld [vmem:[%s359_s1 + $0x20] sm:$0xff]  ;;  %v27_v7 = vld [vmem:[%s359_s1 + $0x28] sm:$0xff] }
   0x3   :  { %v236_v5 = vpack.c.bf16 %v25_v4, %v24_v2  ;;  %v14_v8 = vld [vmem:[%s360_s0] sm:$0xff]  ;;  %v240_v10 = vpack.c.bf16 %v27_v7, %v26_v6  ;;  %v28_v11 = vld [vmem:[%s359_s1 + $0x30] sm:$0xff]  ;;  %v29_v12 = vld [vmem:[%s359_s1 + $0x38] sm:$0xff] }
   0x4   :  { %233 = vmatprep.subr.bf16.mxu0 %v232_v3  ;;  %248 = vmatprep.subr.bf16.mxu1 %v232_v3  ;;  %v18_v9 = vld [vmem:[%s360_s0 + $0x20] sm:$0xff]  ;;  %v244_v13 = vpack.c.bf16 %v29_v12, %v28_v11  ;;  %v15_v14 = vld [vmem:[%s360_s0 + $0x8] sm:$0xff]  ;;  %v16_v16 = vld [vmem:[%s360_s0 + $0x10] sm:$0xff] }
   0x5   :  { %235 = vmatpush3.bf16.msra.mxu0 %v232_v3  ;;  %252 = vmatpush3.bf16.msra.mxu1 %v232_v3  ;;  %v19_v15 = vld [vmem:[%s360_s0 + $0x28] sm:$0xff]  ;;  %v20_v17 = vld [vmem:[%s360_s0 + $0x30] sm:$0xff]  ;;  %v17_v18 = vld [vmem:[%s360_s0 + $0x18] sm:$0xff] }
   0x6   :  { %237 = vmatprep.subr.bf16.mxu0 %v236_v5  ;;  %249 = vmatprep.subr.bf16.mxu1 %v236_v5  ;;  %v21_v19 = vld [vmem:[%s360_s0 + $0x38] sm:$0xff]  ;;  %v179_v20 = vld [vmem:[%s361_s2] ss:$0 sm:$0xff] }
   0x7   :  { %220 = vmatprep.mubr.msk.f32.mxu0 %vm37_vm0, %v14_v8  ;;  %226 = vmatprep.mubr.msk.f32.mxu1 %vm37_vm0, %v18_v9 }
   0x9   :  { %239 = vmatpush3.bf16.msra.mxu0 %v236_v5  ;;  %253 = vmatpush3.bf16.msra.mxu1 %v236_v5 }
   0xa   :  { %241 = vmatprep.subr.bf16.mxu0 %v240_v10  ;;  %250 = vmatprep.subr.bf16.mxu1 %v240_v10 }
   0xd   :  { %243 = vmatpush3.bf16.msra.mxu0 %v240_v10  ;;  %254 = vmatpush3.bf16.msra.mxu1 %v240_v10 }
   0xe   :  { %245 = vmatprep.subr.bf16.mxu0 %v244_v13  ;;  %251 = vmatprep.subr.bf16.mxu1 %v244_v13 }
  0x11   :  { %247 = vmatpush3.bf16.msra.mxu0 %v244_v13  ;;  %255 = vmatpush3.bf16.msra.mxu1 %v244_v13 }
  0x14   :  { %221 = vmatmul.mubr.msk.f32.vlgmr.msra.gmra.mrb[0].mxu0 %vm37_vm0, %v15_v14  ;;  %227 = vmatmul.mubr.msk.f32.vlgmr.msra.gmra.mrb[0].mxu1 %vm37_vm0, %v19_v15 }
  0x15   :  { %223 = vmatprep.mubr.msk.f32.mxu0 %vm37_vm0, %v16_v16  ;;  %229 = vmatprep.mubr.msk.f32.mxu1 %vm37_vm0, %v20_v17 }
  0x18   :  { %224 = vmatmul.mubr.msk.f32.gmra.mrb[2].mxu0 %vm37_vm0, %v17_v18  ;;  %230 = vmatmul.mubr.msk.f32.gmra.mrb[2].mxu1 %vm37_vm0, %v21_v19 }
  0xe7   :  { %v222_v21 = vpop.f32.mrb[0].mxu0  ;;  %v228_v22 = vpop.f32.mrb[0].mxu1 }
  0xe8   :  { %v134_v23 = vadd.f32 %v222_v21, %v179_v20  ;;  %v154_v24 = vadd.f32 %v228_v22, %v179_v20  ;;  %v128_v25 = vpop.f32.mrb[1].mxu0  ;;  %v148_v26 = vpop.f32.mrb[1].mxu1 }
  0xe9   :  { %v129_v27 = vadd.f32 %v179_v20, %v128_v25  ;;  %v149_v28 = vadd.f32 %v179_v20, %v148_v26 }
  0xea   :  { %168 = vst [vmem:[%s362_s3 + $0x8] sm:$0xff] %v134_v23  ;;  %172 = vst [vmem:[%s362_s3 + $0x28] sm:$0xff] %v154_v24 }
  0xeb   :  { %167 = vst [vmem:[%s362_s3] sm:$0xff] %v129_v27  ;;  %171 = vst [vmem:[%s362_s3 + $0x20] sm:$0xff] %v149_v28  ;;  %v225_v29 = vpop.f32.mrb[2].mxu0  ;;  %v231_v30 = vpop.f32.mrb[2].mxu1 }
  0xec   :  { %v144_v31 = vadd.f32 %v225_v29, %v179_v20  ;;  %v164_v32 = vadd.f32 %v231_v30, %v179_v20  ;;  %v138_v33 = vpop.f32.mrb[3].mxu0  ;;  %v158_v34 = vpop.f32.mrb[3].mxu1 }
  0xed   :  { %v139_v35 = vadd.f32 %v179_v20, %v138_v33  ;;  %v159_v36 = vadd.f32 %v179_v20, %v158_v34 }
  0xee   :  { %170 = vst [vmem:[%s362_s3 + $0x18] sm:$0xff] %v144_v31  ;;  %174 = vst [vmem:[%s362_s3 + $0x38] sm:$0xff] %v164_v32 }
  0xef   :  { %169 = vst [vmem:[%s362_s3 + $0x10] sm:$0xff] %v139_v35  ;;  %173 = vst [vmem:[%s362_s3 + $0x30] sm:$0xff] %v159_v36 }

// kernel: recognition_forward.12
= control target key start
LH: loop header
LB: loop body
LE: loop exit
PB: predicated region body
PF: predicated region fallthrough
CT: control target
= control target key end

     0   :  { %v1537_v3 = vmov 0.0   ;;  %v31_v25 = vlaneseq  ;;  %v1538_v40 = vmov 0   ;;  %s1539_s24 = smov 64   ;;  %s1540_s25 = smov 32   ;;  %vm194_vm5 = vcmask 523520   ;;  %s2147_s1 = inlined_call_operand.vmem [shape: f32[64,256], index: 1, kind: input, shape index: {}]   ;;  %s2148_s0 = inlined_call_operand.vmem [shape: f32[8,8,256], index: 0, kind: input, shape index: {}]   ;;  %s2149_s2 = inlined_call_operand.vmem [shape: s32[8,1], index: 2, kind: input, shape index: {}]   ;;  %s2150_s3 = inlined_call_operand.vmem [shape: f32[8,8,64], index: 3, kind: output, shape index: {}]  }
   0x1   :  { %v15_v0 = vld [vmem:[%s2147_s1 + $0x8] sm:$0xff]  ;;  %v17_v1 = vld [vmem:[%s2147_s1 + $0x18] sm:$0xff]  ;;  %v14_v2 = vld [vmem:[%s2147_s1] sm:$0xff]  ;;  %119 = vmatprep.mubr.f32.mxu0 %v1537_v3  ;;  %276 = vmatprep.mubr.f32.mxu1 %v1537_v3  ;;  %vm169_vm7 = vcmask 261120   ;;  %vm51_vm8 = vcmask 523264  }
   0x2   :  { %v1572_v4 = vpack.c.bf16 %v17_v1, %v15_v0  ;;  %v16_v5 = vld [vmem:[%s2147_s1 + $0x10] sm:$0xff]  ;;  %v19_v6 = vld [vmem:[%s2147_s1 + $0x28] sm:$0xff]  ;;  %v21_v7 = vld [vmem:[%s2147_s1 + $0x38] sm:$0xff]  ;;  %v1655_v26 = vand.u32 127, %v31_v25  ;;  %1423 = vset.pattern.permute.xlu0 %v1538_v40  ;;  %1424 = vset.pattern.permute.xlu1 %v1538_v40 }
   0x3   :  { %v1583_v8 = vpack.c.bf16 %v16_v5, %v14_v2  ;;  %v1585_v9 = vpack.c.bf16 %v21_v7, %v19_v6  ;;  %v18_v10 = vld [vmem:[%s2147_s1 + $0x20] sm:$0xff]  ;;  %v20_v11 = vld [vmem:[%s2147_s1 + $0x30] sm:$0xff]  ;;  %v23_v12 = vld [vmem:[%s2147_s1 + $0x48] sm:$0xff] }
   0x4   :  { %1292 = vmatprep.subr.bf16.mxu0 %v1572_v4  ;;  %v25_v13 = vld [vmem:[%s2147_s1 + $0x58] sm:$0xff]  ;;  %1308 = vmatprep.subr.bf16.mxu1 %v1572_v4  ;;  %v1602_v14 = vpack.c.bf16 %v20_v11, %v18_v10  ;;  %v22_v16 = vld [vmem:[%s2147_s1 + $0x40] sm:$0xff]  ;;  %v24_v17 = vld [vmem:[%s2147_s1 + $0x50] sm:$0xff]  ;;  %v33_v27 = vadd.s32 128, %v1655_v26  ;;  %vm34_vm2 = vcmp.lt.s32.totalorder %v1655_v26, 96 }
   0x5   :  { %1294 = vmatpush1.bf16.msra.mxu0 %v1583_v8  ;;  %1310 = vmatpush1.bf16.msra.mxu1 %v1583_v8  ;;  %v1606_v15 = vpack.c.bf16 %v25_v13, %v23_v12  ;;  %v27_v18 = vld [vmem:[%s2147_s1 + $0x68] sm:$0xff]  ;;  %v29_v19 = vld [vmem:[%s2147_s1 + $0x78] sm:$0xff]  ;;  %v1622_v20 = vpack.c.bf16 %v24_v17, %v22_v16  ;;  %v26_v22 = vld [vmem:[%s2147_s1 + $0x60] sm:$0xff] }
   0x6   :  { %1296 = vmatprep.subr.bf16.mxu0 %v1585_v9  ;;  %1312 = vmatprep.subr.bf16.mxu1 %v1585_v9  ;;  %v1626_v21 = vpack.c.bf16 %v29_v19, %v27_v18  ;;  %v28_v23 = vld [vmem:[%s2147_s1 + $0x70] sm:$0xff]  ;;  %vm37_vm0 = vcmp.ge.s32.totalorder %v33_v27, 192  ;;  %vm39_vm1 = vcmp.lt.s32.totalorder %v33_v27, 224  ;;  %v1662_v28 = vld [vmem:[%s2148_s0] sm:$0xff]  ;;  %v1676_v31 = vld [vmem:[%s2148_s0 + $0x8] sm:$0xff] }
   0x7   :  { %v1636_v24 = vpack.c.bf16 %v28_v23, %v26_v22  ;;  %v1667_v29 = vld [vmem:[%s2148_s0 + $0x70] sm:$0xff]  ;;  %vm1669_vm3 = vmand %vm37_vm0, %vm39_vm1  ;;  %v1681_v32 = vld [vmem:[%s2148_s0 + $0x78] sm:$0xff] }
   0x8   :  { %v49_v33 = vsel %vm34_vm2, %v1662_v28, %v1667_v29  ;;  %v50_v34 = vsel %vm1669_vm3, %v1676_v31, %v1681_v32  ;;  %v1698_v46 = vld [vmem:[%s2149_s2] sm:$0xff]  ;;  %v1740_v11 = vld [vmem:[%s2148_s0 + $0x10] sm:$0xff]  ;;  %v1750_v13 = vld [vmem:[%s2148_s0 + $0x18] sm:$0xff] }
   0x9   :  { %1298 = vmatpush1.bf16.msra.mxu0 %v1602_v14  ;;  %1314 = vmatpush1.bf16.msra.mxu1 %v1602_v14  ;;  %vm184_vm4 = vcmp.gt.s32.totalorder %v1698_v46, 7  ;;  %v1745_v12 = vld [vmem:[%s2148_s0 + $0x60] sm:$0xff]  ;;  %v1755_v16 = vld [vmem:[%s2148_s0 + $0x68] sm:$0xff]  ;;  %vm341_vm9 = vcmp.gt.s32.totalorder %v1698_v46, 6  ;;  %vm497_vm11 = vcmp.gt.s32.totalorder %v1698_v46, 5  ;;  %vm653_vm13 = vcmp.gt.s32.totalorder %v1698_v46, 4 }
   0xa   :  { %1300 = vmatprep.subr.bf16.mxu0 %v1606_v15  ;;  %1316 = vmatprep.subr.bf16.mxu1 %v1606_v15  ;;  %v185_v49 = vsel %vm184_vm4, 1, %v1538_v40  ;;  %v207_v17 = vsel %vm34_vm2, %v1740_v11, %v1745_v12  ;;  %v208_v18 = vsel %vm1669_vm3, %v1750_v13, %v1755_v16  ;;  %vm627_vm15 = vcmp.gt.s32.totalorder %v1698_v46, 3 }
   0xb   :  { %vm471_vm1 = vcmp.gt.s32.totalorder %v1698_v46, 2 }
   0xd   :  { %1302 = vmatpush1.bf16.msra.mxu0 %v1622_v20  ;;  %1318 = vmatpush1.bf16.msra.mxu1 %v1622_v20 }
   0xe   :  { %1304 = vmatprep.subr.bf16.mxu0 %v1626_v21  ;;  %1320 = vmatprep.subr.bf16.mxu1 %v1626_v21 }
  0x11   :  { %1306 = vmatpush1.bf16.msra.mxu0 %v1636_v24  ;;  %1322 = vmatpush1.bf16.msra.mxu1 %v1636_v24 }
  0x12   :  { %1324 = vmatprep.subr.bf16.mxu0 %v1572_v4  ;;  %1340 = vmatprep.subr.bf16.mxu1 %v1572_v4 }
  0x14   :  { %120 = vmatmul.mubr.f32.vlgmr.msra.gmra.mrb[0].mxu0 %v1537_v3 }
  0x15   :  { %1326 = vmatpush1.bf16.msra.mxu0 %v1583_v8  ;;  %432 = vmatprep.mubr.f32.mxu0 %v1537_v3 }
  0x16   :  { %1328 = vmatprep.subr.bf16.mxu0 %v1585_v9 }
  0x19   :  { %1330 = vmatpush1.bf16.msra.mxu0 %v1602_v14 }
  0x1a   :  { %1332 = vmatprep.subr.bf16.mxu0 %v1606_v15 }
  0x1d   :  { %1334 = vmatpush1.bf16.msra.mxu0 %v1622_v20 }
  0x1e   :  { %1336 = vmatprep.subr.bf16.mxu0 %v1626_v21 }
  0x21   :  { %1338 = vmatpush1.bf16.msra.mxu0 %v1636_v24 }
  0x22   :  { %1356 = vmatprep.subr.bf16.mxu0 %v1572_v4 }
  0xe7   :  { %v121_v35 = vpop.f32.mrb[0].mxu0 }
  0xe8   :  { %v126_v36 = vadd.f32 %v121_v35, %v49_v33  ;;  %v123_v37 = vpop.f32.mrb[1].mxu0 }
  0xe9   :  { %v127_v38 = vadd.f32 %v123_v37, %v50_v34 }
  0xea   :  { %v1228_v39 = vmul.f32 -1.442695, %v126_v36 }
  0xeb   :  { %1425 = vtanh.f32 %v127_v38  ;;  %v1229_v50 = vmul.f32 -1.442695, %v127_v38  ;;  %v342_v38 = vsel %vm341_vm9, 1, %v1538_v40  ;;  %vm315_vm9 = vcmp.gt.s32.totalorder %v1698_v46, 1 }
  0xec   :  { %1427 = vpow2.f32 %v1228_v39 }
  0xf5   :  { %v1426_v41 = vpop.eup %1425 }
  0xf6   :  { %v1428_v42 = vpop.eup %1427  ;;  %143 = vrot.lane.b32.xlu0 %v1426_v41, %s1539_s24 }
  0xf7   :  { %v134_v43 = vadd.f32 1.0, %v1428_v42 }
  0xf9   :  { %1429 = vrcp.f32 %v134_v43 }
  0xfa   :  { %1431 = vpow2.f32 %v1229_v50 }
 0x103   :  { %v1430_v44 = vpop.eup %1429 }
 0x104   :  { %v172_v45 = vmul.f32 %v1430_v44, %v1426_v41  ;;  %v1432_v51 = vpop.eup %1431  ;;  %v141_v54 = vmul.f32 0.0, %v1430_v44 }
 0x105   :  { %v135_v52 = vadd.f32 1.0, %v1432_v51 }
 0x106   :  { %174 = vrot.lane.b32.xlu1 %v172_v45, %s1540_s25 }
 0x107   :  { %1433 = vrcp.f32 %v135_v52 }
 0x111   :  { %v1434_v53 = vpop.eup %1433 }
 0x112   :  { %v171_v57 = vmul.f32 0.0, %v1434_v53 }
 0x168   :  { %v144_v47 = vpop.permute.xlu0 %143 }
 0x169   :  { %v146_v48 = vmul.f32 %v1430_v44, %v144_v47 }
 0x16b   :  { %148 = vrot.lane.b32.xlu0 %v146_v48, %s1540_s25 }
 0x16f   :  { %187 = vperm.xlu0 %1423, %v185_v49  }
 0x178   :  { %v175_v55 = vpop.permute.xlu1 %174 }
 0x179   :  { %v1705_v59 = vadd.f32 %v175_v55, %v171_v57 }
 0x1dd   :  { %v149_v56 = vpop.permute.xlu0 %148 }
 0x1de   :  { %v1703_v58 = vadd.f32 %v149_v56, %v141_v54 }
 0x1e0   :  { %1435 = vtanh.f32 %v1703_v58 }
 0x1e1   :  { %1437 = vtanh.f32 %v1705_v59 }
 0x1ea   :  { %v1436_v60 = vpop.eup %1435 }
 0x1eb   :  { %154 = vrot.lane.b32.xlu1 %v1436_v60, %s1540_s25  ;;  %v1438_v61 = vpop.eup %1437 }
 0x1ee   :  { %v1713_v0 = vpop.permute.xlu0 %187 }
 0x1ef   :  { %180 = vrot.lane.b32.xlu1 %v1438_v61, %s1540_s25  ;;  %vm189_vm6 = vcmp.eq.s32.totalorder %v1713_v0, 1 }
 0x1f0   :  { %v191_v48 = vsel %vm189_vm6, %v1705_v59, 0.0 }
 0x25d   :  { %v155_v62 = vpop.permute.xlu1 %154 }
 0x25e   :  { %v1711_v63 = vmul.f32 %v1430_v44, %v155_v62 }
 0x260   :  { %197 = vrot.lane.b32.xlu1 %v1711_v63, %s1539_s24 }
 0x261   :  { %v181_v1 = vpop.permute.xlu1 %180 }
 0x262   :  { %v183_v2 = vmul.f32 %v1434_v53, %v181_v1 }
 0x264   :  { %v192_v5 = vsel %vm189_vm6, %v183_v2, -1.0  ;;  %v190_v6 = vsel %vm189_vm6, %v183_v2, 0.0 }
 0x265   :  { %1230 = vst.msk [vmem:[%s2150_s3 + $0x38] sm:$0xff] %vm194_vm5, %v192_v5  ;;  %v1811_v5 = vld [vmem:[%s2148_s0 + $0x20] sm:$0xff] }
 0x2d2   :  { %v198_v7 = vpop.permute.xlu1 %197 }
 0x2d3   :  { %v200_v10 = vsel %vm169_vm7, %v198_v7, %v190_v6  ;;  %v1816_v6 = vld [vmem:[%s2148_s0 + $0x50] sm:$0xff]  ;;  %v1821_v7 = vld [vmem:[%s2148_s0 + $0x28] sm:$0xff] }
 0x2d4   :  { %1235 = vmatmul.mubr.msk.f32.vlgmr.msra.gmra.mrb[0].mxu1 %vm51_vm8, %v200_v10  ;;  %v1826_v10 = vld [vmem:[%s2148_s0 + $0x58] sm:$0xff] }
 0x2d5   :  { %1342 = vmatpush1.bf16.msra.mxu1 %v1583_v8  ;;  %588 = vmatprep.mubr.f32.mxu1 %v1537_v3 }
 0x2d6   :  { %1344 = vmatprep.subr.bf16.mxu1 %v1585_v9 }
 0x2d9   :  { %1346 = vmatpush1.bf16.msra.mxu1 %v1602_v14 }
 0x2da   :  { %1348 = vmatprep.subr.bf16.mxu1 %v1606_v15 }
 0x2dd   :  { %1350 = vmatpush1.bf16.msra.mxu1 %v1622_v20 }
 0x2de   :  { %1352 = vmatprep.subr.bf16.mxu1 %v1626_v21 }
 0x2e1   :  { %1354 = vmatpush1.bf16.msra.mxu1 %v1636_v24 }
 0x2e2   :  { %1372 = vmatprep.subr.bf16.mxu1 %v1572_v4 }
 0x3a7   :  { %v278_v19 = vpop.f32.mrb[0].mxu1 }
 0x3a8   :  { %v283_v22 = vadd.f32 %v278_v19, %v207_v17  ;;  %v280_v23 = vpop.f32.mrb[1].mxu1  ;;  %v363_v17 = vsel %vm34_vm2, %v1811_v5, %v1816_v6 }
 0x3a9   :  { %v284_v25 = vadd.f32 %v280_v23, %v208_v18  ;;  %v364_v18 = vsel %vm1669_vm3, %v1821_v7, %v1826_v10 }
 0x3aa   :  { %v1236_v27 = vmul.f32 -1.442695, %v283_v22 }
 0x3ab   :  { %1439 = vtanh.f32 %v284_v25  ;;  %v1237_v42 = vmul.f32 -1.442695, %v284_v25 }
 0x3ac   :  { %1441 = vpow2.f32 %v1236_v27 }
 0x3b5   :  { %v1440_v33 = vpop.eup %1439 }
 0x3b6   :  { %v1442_v34 = vpop.eup %1441  ;;  %300 = vrot.lane.b32.xlu0 %v1440_v33, %s1539_s24 }
 0x3b7   :  { %v291_v35 = vadd.f32 1.0, %v1442_v34 }
 0x3b9   :  { %1443 = vrcp.f32 %v291_v35 }
 0x3ba   :  { %1445 = vpow2.f32 %v1237_v42 }
 0x3c3   :  { %v1444_v36 = vpop.eup %1443 }
 0x3c4   :  { %v329_v37 = vmul.f32 %v1444_v36, %v1440_v33  ;;  %v1446_v43 = vpop.eup %1445  ;;  %v298_v47 = vmul.f32 %v1444_v36, %v1703_v58 }
 0x3c5   :  { %v292_v44 = vadd.f32 1.0, %v1446_v43 }
 0x3c6   :  { %331 = vrot.lane.b32.xlu0 %v329_v37, %s1540_s25 }
 0x3c7   :  { %1447 = vrcp.f32 %v292_v44 }
 0x3ca   :  { %344 = vperm.xlu0 %1423, %v342_v38   ;;  %v498_v38 = vsel %vm497_vm11, 1, %v1538_v40 }
 0x3d1   :  { %v1448_v45 = vpop.eup %1447 }
 0x3d2   :  { %v328_v51 = vmul.f32 %v1448_v45, %v191_v48 }
 0x428   :  { %v301_v39 = vpop.permute.xlu0 %300 }
 0x429   :  { %v303_v41 = vmul.f32 %v1444_v36, %v301_v39 }
 0x42b   :  { %305 = vrot.lane.b32.xlu1 %v303_v41, %s1540_s25 }
 0x438   :  { %v332_v49 = vpop.permute.xlu0 %331 }
 0x439   :  { %v1776_v53 = vadd.f32 %v332_v49, %v328_v51 }
 0x449   :  { %v1784_v58 = vpop.permute.xlu0 %344 }
 0x44a   :  { %vm346_vm10 = vcmp.eq.s32.totalorder %v1784_v58, 1 }
 0x44b   :  { %v348_v48 = vsel %vm346_vm10, %v1776_v53, 0.0 }
 0x49d   :  { %v306_v50 = vpop.permute.xlu1 %305 }
 0x49e   :  { %v1774_v52 = vadd.f32 %v306_v50, %v298_v47 }
 0x4a0   :  { %1449 = vtanh.f32 %v1774_v52 }
 0x4a1   :  { %1451 = vtanh.f32 %v1776_v53 }
 0x4aa   :  { %v1450_v54 = vpop.eup %1449 }
 0x4ab   :  { %311 = vrot.lane.b32.xlu1 %v1450_v54, %s1540_s25  ;;  %v1452_v55 = vpop.eup %1451 }
 0x4af   :  { %337 = vrot.lane.b32.xlu1 %v1452_v55, %s1540_s25 }
 0x51d   :  { %v312_v56 = vpop.permute.xlu1 %311 }
 0x51e   :  { %v1782_v57 = vmul.f32 %v1444_v36, %v312_v56 }
 0x520   :  { %353 = vrot.lane.b32.xlu0 %v1782_v57, %s1539_s24 }
 0x521   :  { %v338_v59 = vpop.permute.xlu1 %337 }
 0x522   :  { %v340_v60 = vmul.f32 %v1448_v45, %v338_v59 }
 0x524   :  { %v349_v61 = vsel %vm346_vm10, %v340_v60, -1.0  ;;  %v347_v62 = vsel %vm346_vm10, %v340_v60, 0.0 }
 0x525   :  { %1239 = vst.msk [vmem:[%s2150_s3 + $0x30] sm:$0xff] %vm194_vm5, %v349_v61 }
 0x592   :  { %v354_v1 = vpop.permute.xlu0 %353 }
 0x593   :  { %v356_v2 = vsel %vm169_vm7, %v354_v1, %v347_v62 }
 0x594   :  { %1244 = vmatmul.mubr.msk.f32.vlgmr.msra.gmra.mrb[2].mxu0 %vm51_vm8, %v356_v2 }
 0x595   :  { %1358 = vmatpush1.bf16.msra.mxu0 %v1583_v8  ;;  %742 = vmatprep.mubr.f32.mxu0 %v1537_v3 }
 0x596   :  { %1360 = vmatprep.subr.bf16.mxu0 %v1585_v9 }
 0x599   :  { %1362 = vmatpush1.bf16.msra.mxu0 %v1602_v14 }
 0x59a   :  { %1364 = vmatprep.subr.bf16.mxu0 %v1606_v15 }
 0x59d   :  { %1366 = vmatpush1.bf16.msra.mxu0 %v1622_v20 }
 0x59e   :  { %1368 = vmatprep.subr.bf16.mxu0 %v1626_v21 }
 0x5a1   :  { %1370 = vmatpush1.bf16.msra.mxu0 %v1636_v24 }
 0x5a2   :  { %1388 = vmatprep.subr.bf16.mxu0 %v1572_v4 }
 0x667   :  { %v434_v19 = vpop.f32.mrb[2].mxu0 }
 0x668   :  { %v439_v22 = vadd.f32 %v434_v19, %v363_v17  ;;  %v436_v23 = vpop.f32.mrb[3].mxu0  ;;  %v1882_v19 = vld [vmem:[%s2148_s0 + $0x30] sm:$0xff] }
 0x669   :  { %v440_v25 = vadd.f32 %v436_v23, %v364_v18  ;;  %v1892_v23 = vld [vmem:[%s2148_s0 + $0x38] sm:$0xff] }
 0x66a   :  { %v1245_v27 = vmul.f32 -1.442695, %v439_v22  ;;  %v1887_v22 = vld [vmem:[%s2148_s0 + $0x40] sm:$0xff] }
 0x66b   :  { %1453 = vtanh.f32 %v440_v25  ;;  %v1246_v42 = vmul.f32 -1.442695, %v440_v25  ;;  %v1897_v25 = vld [vmem:[%s2148_s0 + $0x48] sm:$0xff] }
 0x66c   :  { %1455 = vpow2.f32 %v1245_v27  ;;  %v520_v27 = vsel %vm1669_vm3, %v1892_v23, %v1897_v25 }
 0x675   :  { %v1454_v33 = vpop.eup %1453 }
 0x676   :  { %v1456_v34 = vpop.eup %1455  ;;  %456 = vrot.lane.b32.xlu1 %v1454_v33, %s1539_s24 }
 0x677   :  { %v447_v35 = vadd.f32 1.0, %v1456_v34 }
 0x679   :  { %1457 = vrcp.f32 %v447_v35 }
 0x67a   :  { %1459 = vpow2.f32 %v1246_v42 }
 0x683   :  { %v1458_v36 = vpop.eup %1457 }
 0x684   :  { %v485_v37 = vmul.f32 %v1458_v36, %v1454_v33  ;;  %v1460_v43 = vpop.eup %1459  ;;  %v454_v47 = vmul.f32 %v1458_v36, %v1774_v52 }
 0x685   :  { %v448_v44 = vadd.f32 1.0, %v1460_v43 }
 0x686   :  { %487 = vrot.lane.b32.xlu1 %v485_v37, %s1540_s25 }
 0x687   :  { %1461 = vrcp.f32 %v448_v44  ;;  %v654_v44 = vsel %vm653_vm13, 1, %v1538_v40 }
 0x68a   :  { %500 = vperm.xlu1 %1424, %v498_v38  }
 0x691   :  { %v1462_v45 = vpop.eup %1461 }
 0x692   :  { %v484_v51 = vmul.f32 %v1462_v45, %v348_v48 }
 0x6e8   :  { %v457_v39 = vpop.permute.xlu1 %456 }
 0x6e9   :  { %v459_v41 = vmul.f32 %v1458_v36, %v457_v39 }
 0x6eb   :  { %461 = vrot.lane.b32.xlu0 %v459_v41, %s1540_s25 }
 0x6f8   :  { %v488_v49 = vpop.permute.xlu1 %487 }
 0x6f9   :  { %v1847_v55 = vadd.f32 %v488_v49, %v484_v51 }
 0x709   :  { %v1855_v53 = vpop.permute.xlu1 %500 }
 0x70a   :  { %vm502_vm12 = vcmp.eq.s32.totalorder %v1855_v53, 1 }
 0x75d   :  { %v462_v50 = vpop.permute.xlu0 %461 }
 0x75e   :  { %v1845_v54 = vadd.f32 %v462_v50, %v454_v47 }
 0x760   :  { %1463 = vtanh.f32 %v1845_v54 }
 0x761   :  { %1465 = vtanh.f32 %v1847_v55 }
 0x76a   :  { %v1464_v56 = vpop.eup %1463 }
 0x76b   :  { %467 = vrot.lane.b32.xlu0 %v1464_v56, %s1540_s25  ;;  %v1466_v59 = vpop.eup %1465 }
 0x76f   :  { %493 = vrot.lane.b32.xlu0 %v1466_v59, %s1540_s25  ;;  %v504_v59 = vsel %vm502_vm12, %v1847_v55, 0.0 }
 0x7dd   :  { %v468_v52 = vpop.permute.xlu0 %467 }
 0x7de   :  { %v1853_v60 = vmul.f32 %v1458_v36, %v468_v52 }
 0x7e0   :  { %509 = vrot.lane.b32.xlu1 %v1853_v60, %s1539_s24 }
 0x7e1   :  { %v494_v61 = vpop.permute.xlu0 %493 }
 0x7e2   :  { %v496_v62 = vmul.f32 %v1462_v45, %v494_v61 }
 0x7e4   :  { %v505_v1 = vsel %vm502_vm12, %v496_v62, -1.0  ;;  %v503_v2 = vsel %vm502_vm12, %v496_v62, 0.0 }
 0x7e5   :  { %1248 = vst.msk [vmem:[%s2150_s3 + $0x28] sm:$0xff] %vm194_vm5, %v505_v1 }
 0x852   :  { %v510_v17 = vpop.permute.xlu1 %509 }
 0x853   :  { %v512_v18 = vsel %vm169_vm7, %v510_v17, %v503_v2 }
 0x854   :  { %1253 = vmatmul.mubr.msk.f32.vlgmr.msra.gmra.mrb[2].mxu1 %vm51_vm8, %v512_v18 }
 0x855   :  { %1374 = vmatpush1.bf16.msra.mxu1 %v1583_v8  ;;  %882 = vmatprep.mubr.f32.mxu1 %v1537_v3 }
 0x856   :  { %1376 = vmatprep.subr.bf16.mxu1 %v1585_v9 }
 0x859   :  { %1378 = vmatpush1.bf16.msra.mxu1 %v1602_v14 }
 0x85a   :  { %1380 = vmatprep.subr.bf16.mxu1 %v1606_v15 }
 0x85d   :  { %1382 = vmatpush1.bf16.msra.mxu1 %v1622_v20 }
 0x85e   :  { %1384 = vmatprep.subr.bf16.mxu1 %v1626_v21 }
 0x861   :  { %1386 = vmatpush1.bf16.msra.mxu1 %v1636_v24 }
 0x862   :  { %1404 = vmatprep.subr.bf16.mxu1 %v1572_v4  ;;  %v519_v4 = vsel %vm34_vm2, %v1882_v19, %v1887_v22 }
 0x927   :  { %v590_v33 = vpop.f32.mrb[2].mxu1 }
 0x928   :  { %v595_v34 = vadd.f32 %v590_v33, %v519_v4  ;;  %v592_v35 = vpop.f32.mrb[3].mxu1 }
 0x929   :  { %v596_v36 = vadd.f32 %v592_v35, %v520_v27 }
 0x92a   :  { %v1254_v37 = vmul.f32 -1.442695, %v595_v34 }
 0x92b   :  { %1467 = vtanh.f32 %v596_v36  ;;  %v1255_v48 = vmul.f32 -1.442695, %v596_v36 }
 0x92c   :  { %1469 = vpow2.f32 %v1254_v37 }
 0x935   :  { %v1468_v38 = vpop.eup %1467 }
 0x936   :  { %v1470_v39 = vpop.eup %1469  ;;  %612 = vrot.lane.b32.xlu0 %v1468_v38, %s1539_s24 }
 0x937   :  { %v603_v41 = vadd.f32 1.0, %v1470_v39  ;;  %v674_v39 = vsel %vm1669_vm3, %v1897_v25, %v1892_v23 }
 0x939   :  { %1471 = vrcp.f32 %v603_v41 }
 0x93a   :  { %1473 = vpow2.f32 %v1255_v48 }
 0x943   :  { %v1472_v42 = vpop.eup %1471 }
 0x944   :  { %v641_v43 = vmul.f32 %v1472_v42, %v1468_v38  ;;  %v1474_v49 = vpop.eup %1473  ;;  %v610_v56 = vmul.f32 %v1472_v42, %v1845_v54  ;;  %v673_v38 = vsel %vm34_vm2, %v1887_v22, %v1882_v19  ;;  %v628_v22 = vsel %vm627_vm15, 1, %v1538_v40 }
 0x945   :  { %v604_v50 = vadd.f32 1.0, %v1474_v49 }
 0x946   :  { %643 = vrot.lane.b32.xlu0 %v641_v43, %s1540_s25 }
 0x947   :  { %1475 = vrcp.f32 %v604_v50 }
 0x94a   :  { %656 = vperm.xlu0 %1423, %v654_v44  }
 0x951   :  { %v1476_v51 = vpop.eup %1475 }
 0x952   :  { %v640_v62 = vmul.f32 %v1476_v51, %v504_v59 }
 0x9a8   :  { %v613_v45 = vpop.permute.xlu0 %612 }
 0x9a9   :  { %v615_v47 = vmul.f32 %v1472_v42, %v613_v45 }
 0x9ab   :  { %617 = vrot.lane.b32.xlu1 %v615_v47, %s1540_s25 }
 0x9b8   :  { %v644_v52 = vpop.permute.xlu0 %643 }
 0x9b9   :  { %v646_v2 = vadd.f32 %v644_v52, %v640_v62 }
 0x9c9   :  { %v1920_v54 = vpop.permute.xlu0 %656 }
 0x9ca   :  { %vm658_vm14 = vcmp.eq.s32.totalorder %v1920_v54, 1 }
 0x9cb   :  { %v660_v62 = vsel %vm658_vm14, %v646_v2, 0.0 }
 0xa1d   :  { %v618_v61 = vpop.permute.xlu1 %617 }
 0xa1e   :  { %v620_v1 = vadd.f32 %v618_v61, %v610_v56 }
 0xa20   :  { %1477 = vtanh.f32 %v620_v1 }
 0xa21   :  { %1479 = vtanh.f32 %v646_v2 }
 0xa2a   :  { %v1478_v17 = vpop.eup %1477 }
 0xa2b   :  { %623 = vrot.lane.b32.xlu1 %v1478_v17, %s1540_s25  ;;  %v1480_v18 = vpop.eup %1479 }
 0xa2f   :  { %649 = vrot.lane.b32.xlu1 %v1480_v18, %s1540_s25 }
 0xa9d   :  { %v624_v4 = vpop.permute.xlu1 %623 }
 0xa9e   :  { %v1918_v27 = vmul.f32 %v1472_v42, %v624_v4 }
 0xaa0   :  { %665 = vrot.lane.b32.xlu0 %v1918_v27, %s1539_s24 }
 0xaa1   :  { %v650_v55 = vpop.permute.xlu1 %649 }
 0xaa2   :  { %v652_v33 = vmul.f32 %v1476_v51, %v650_v55 }
 0xaa4   :  { %v661_v34 = vsel %vm658_vm14, %v652_v33, -1.0  ;;  %v659_v35 = vsel %vm658_vm14, %v652_v33, 0.0 }
 0xaa5   :  { %1257 = vst.msk [vmem:[%s2150_s3 + $0x20] sm:$0xff] %vm194_vm5, %v661_v34 }
 0xb12   :  { %v666_v36 = vpop.permute.xlu0 %665 }
 0xb13   :  { %v668_v37 = vsel %vm169_vm7, %v666_v36, %v659_v35 }
 0xb14   :  { %1262 = vmatmul.mubr.msk.f32.vlgmr.msra.gmra.mrb[4].mxu0 %vm51_vm8, %v668_v37 }
 0xb15   :  { %1390 = vmatpush1.bf16.msra.mxu0 %v1583_v8  ;;  %1022 = vmatprep.mubr.f32.mxu0 %v1537_v3 }
 0xb16   :  { %1392 = vmatprep.subr.bf16.mxu0 %v1585_v9 }
 0xb19   :  { %1394 = vmatpush1.bf16.msra.mxu0 %v1602_v14 }
 0xb1a   :  { %1396 = vmatprep.subr.bf16.mxu0 %v1606_v15 }
 0xb1d   :  { %1398 = vmatpush1.bf16.msra.mxu0 %v1622_v20 }
 0xb1e   :  { %1400 = vmatprep.subr.bf16.mxu0 %v1626_v21 }
 0xb21   :  { %1402 = vmatpush1.bf16.msra.mxu0 %v1636_v24 }
 0xbe7   :  { %v744_v41 = vpop.f32.mrb[4].mxu0 }
 0xbe8   :  { %v749_v42 = vadd.f32 %v744_v41, %v673_v38  ;;  %v746_v43 = vpop.f32.mrb[5].mxu0 }
 0xbe9   :  { %v750_v44 = vadd.f32 %v746_v43, %v674_v39  ;;  %v813_v43 = vsel %vm34_vm2, %v1816_v6, %v1811_v5  ;;  %v472_v6 = vsel %vm471_vm1, 1, %v1538_v40 }
 0xbea   :  { %v1263_v45 = vmul.f32 -1.442695, %v749_v42 }
 0xbeb   :  { %1481 = vtanh.f32 %v750_v44  ;;  %v1264_v51 = vmul.f32 -1.442695, %v750_v44 }
 0xbec   :  { %1483 = vpow2.f32 %v1263_v45 }
 0xbf5   :  { %v1482_v47 = vpop.eup %1481 }
 0xbf6   :  { %v1484_v48 = vpop.eup %1483  ;;  %766 = vrot.lane.b32.xlu1 %v1482_v47, %s1539_s24 }
 0xbf7   :  { %v757_v49 = vadd.f32 1.0, %v1484_v48 }
 0xbf9   :  { %1485 = vrcp.f32 %v757_v49 }
 0xbfa   :  { %1487 = vpow2.f32 %v1264_v51 }
 0xc03   :  { %v1486_v50 = vpop.eup %1485 }
 0xc04   :  { %v788_v19 = vmul.f32 %v1486_v50, %v1482_v47  ;;  %v1488_v56 = vpop.eup %1487  ;;  %v764_v61 = vmul.f32 %v1486_v50, %v620_v1 }
 0xc05   :  { %v758_v59 = vadd.f32 1.0, %v1488_v56 }
 0xc06   :  { %790 = vrot.lane.b32.xlu1 %v788_v19, %s1540_s25 }
 0xc07   :  { %1489 = vrcp.f32 %v758_v59 }
 0xc0a   :  { %630 = vperm.xlu1 %1424, %v628_v22  }
 0xc11   :  { %v1490_v52 = vpop.eup %1489 }
 0xc12   :  { %v787_v4 = vmul.f32 %v1490_v52, %v660_v62 }
 0xc68   :  { %v767_v23 = vpop.permute.xlu1 %766 }
 0xc69   :  { %v769_v25 = vmul.f32 %v1486_v50, %v767_v23 }
 0xc6b   :  { %771 = vrot.lane.b32.xlu0 %v769_v25, %s1540_s25 }
 0xc78   :  { %v791_v17 = vpop.permute.xlu1 %790 }
 0xc79   :  { %v793_v33 = vadd.f32 %v791_v17, %v787_v4 }
 0xc89   :  { %v1964_v2 = vpop.permute.xlu1 %630 }
 0xc8a   :  { %vm632_vm0 = vcmp.eq.s32.totalorder %v1964_v2, 1 }
 0xc8b   :  { %v801_v22 = vsel %vm632_vm0, %v793_v33, 0.0 }
 0xcdd   :  { %v772_v18 = vpop.permute.xlu0 %771 }
 0xcde   :  { %v774_v55 = vadd.f32 %v772_v18, %v764_v61 }
 0xce0   :  { %1491 = vtanh.f32 %v774_v55 }
 0xce1   :  { %1493 = vtanh.f32 %v793_v33 }
 0xcea   :  { %v1492_v34 = vpop.eup %1491 }
 0xceb   :  { %777 = vrot.lane.b32.xlu0 %v1492_v34, %s1540_s25  ;;  %v1494_v35 = vpop.eup %1493 }
 0xcef   :  { %796 = vrot.lane.b32.xlu0 %v1494_v35, %s1540_s25 }
 0xd5d   :  { %v778_v36 = vpop.permute.xlu0 %777 }
 0xd5e   :  { %v1960_v37 = vmul.f32 %v1486_v50, %v778_v36  ;;  %v953_v36 = vsel %vm34_vm2, %v1745_v12, %v1740_v11  ;;  %v316_v12 = vsel %vm315_vm9, 1, %v1538_v40 }
 0xd60   :  { %805 = vrot.lane.b32.xlu1 %v1960_v37, %s1539_s24 }
 0xd61   :  { %v797_v1 = vpop.permute.xlu0 %796 }
 0xd62   :  { %v1966_v38 = vmul.f32 %v1490_v52, %v797_v1  ;;  %v954_v1 = vsel %vm1669_vm3, %v1755_v16, %v1750_v13 }
 0xd64   :  { %v800_v39 = vsel %vm632_vm0, %v1966_v38, 0.0  ;;  %v802_v58 = vsel %vm632_vm0, %v1966_v38, -1.0 }
 0xdd2   :  { %v806_v41 = vpop.permute.xlu1 %805 }
 0xdd3   :  { %v808_v42 = vsel %vm169_vm7, %v806_v41, %v800_v39 }
 0xdd4   :  { %1271 = vmatmul.mubr.msk.f32.vlgmr.msra.gmra.mrb[4].mxu1 %vm51_vm8, %v808_v42 }
 0xdd5   :  { %1406 = vmatpush1.bf16.msra.mxu1 %v1583_v8  ;;  %1162 = vmatprep.mubr.f32.mxu1 %v1537_v3  ;;  %v814_v3 = vsel %vm1669_vm3, %v1826_v10, %v1821_v7 }
 0xdd6   :  { %1408 = vmatprep.subr.bf16.mxu1 %v1585_v9 }
 0xdd9   :  { %1410 = vmatpush1.bf16.msra.mxu1 %v1602_v14 }
 0xdda   :  { %1412 = vmatprep.subr.bf16.mxu1 %v1606_v15 }
 0xddd   :  { %1414 = vmatpush1.bf16.msra.mxu1 %v1622_v20 }
 0xdde   :  { %1416 = vmatprep.subr.bf16.mxu1 %v1626_v21 }
 0xde1   :  { %1418 = vmatpush1.bf16.msra.mxu1 %v1636_v24 }
 0xea7   :  { %v884_v8 = vpop.f32.mrb[4].mxu1 }
 0xea8   :  { %v889_v9 = vadd.f32 %v884_v8, %v813_v43  ;;  %v886_v14 = vpop.f32.mrb[5].mxu1 }
 0xea9   :  { %v890_v15 = vadd.f32 %v886_v14, %v814_v3 }
 0xeaa   :  { %v1272_v44 = vmul.f32 -1.442695, %v889_v9 }
 0xeab   :  { %1495 = vtanh.f32 %v890_v15  ;;  %v1273_v47 = vmul.f32 -1.442695, %v890_v15 }
 0xeac   :  { %1497 = vpow2.f32 %v1272_v44 }
 0xeb5   :  { %v1496_v20 = vpop.eup %1495 }
 0xeb6   :  { %v1498_v21 = vpop.eup %1497  ;;  %906 = vrot.lane.b32.xlu0 %v1496_v20, %s1539_s24 }
 0xeb7   :  { %v897_v24 = vadd.f32 1.0, %v1498_v21 }
 0xeb9   :  { %1499 = vrcp.f32 %v897_v24 }
 0xeba   :  { %1501 = vpow2.f32 %v1273_v47 }
 0xec3   :  { %v1500_v45 = vpop.eup %1499 }
 0xec4   :  { %v928_v5 = vmul.f32 %v1500_v45, %v1496_v20  ;;  %v1502_v48 = vpop.eup %1501  ;;  %v904_v19 = vmul.f32 %v1500_v45, %v774_v55 }
 0xec5   :  { %v898_v49 = vadd.f32 1.0, %v1502_v48 }
 0xec6   :  { %930 = vrot.lane.b32.xlu0 %v928_v5, %s1540_s25 }
 0xec7   :  { %1503 = vrcp.f32 %v898_v49 }
 0xeca   :  { %474 = vperm.xlu0 %1423, %v472_v6  }
 0xed1   :  { %v1504_v50 = vpop.eup %1503 }
 0xed2   :  { %v927_v51 = vmul.f32 %v1504_v50, %v801_v22 }
 0xf28   :  { %v907_v7 = vpop.permute.xlu0 %906 }
 0xf29   :  { %v909_v10 = vmul.f32 %v1500_v45, %v907_v7 }
 0xf2b   :  { %911 = vrot.lane.b32.xlu1 %v909_v10, %s1540_s25 }
 0xf38   :  { %v931_v23 = vpop.permute.xlu0 %930 }
 0xf39   :  { %v933_v59 = vadd.f32 %v931_v23, %v927_v51 }
 0xf49   :  { %v2003_v4 = vpop.permute.xlu0 %474 }
 0xf4a   :  { %vm476_vm4 = vcmp.eq.s32.totalorder %v2003_v4, 1 }
 0xf4b   :  { %v941_v5 = vsel %vm476_vm4, %v933_v59, 0.0  ;;  %v477_v53 = vsel %vm476_vm4, %v1853_v60, -1.0 }
 0xf9d   :  { %v912_v25 = vpop.permute.xlu1 %911 }
 0xf9e   :  { %v914_v56 = vadd.f32 %v912_v25, %v904_v19 }
 0xfa0   :  { %1505 = vtanh.f32 %v914_v56 }
 0xfa1   :  { %1507 = vtanh.f32 %v933_v59 }
 0xfaa   :  { %v1506_v52 = vpop.eup %1505 }
 0xfab   :  { %917 = vrot.lane.b32.xlu1 %v1506_v52, %s1540_s25  ;;  %v1508_v61 = vpop.eup %1507 }
 0xfaf   :  { %936 = vrot.lane.b32.xlu1 %v1508_v61, %s1540_s25  ;;  %v1093_v61 = vsel %vm34_vm2, %v1667_v29, %v1662_v28  ;;  %vm158_vm2 = vcmp.gt.s32.totalorder %v1698_v46, 0 }
0x101d   :  { %v918_v62 = vpop.permute.xlu1 %917 }
0x101e   :  { %v1999_v17 = vmul.f32 %v1500_v45, %v918_v62  ;;  %v1094_v62 = vsel %vm1669_vm3, %v1681_v32, %v1676_v31 }
0x1020   :  { %945 = vrot.lane.b32.xlu0 %v1999_v17, %s1539_s24 }
0x1021   :  { %v937_v18 = vpop.permute.xlu1 %936 }
0x1022   :  { %v2005_v55 = vmul.f32 %v1504_v50, %v937_v18 }
0x1024   :  { %v940_v33 = vsel %vm476_vm4, %v2005_v55, 0.0 }
0x1092   :  { %v946_v34 = vpop.permute.xlu0 %945 }
0x1093   :  { %v948_v35 = vsel %vm169_vm7, %v946_v34, %v940_v33 }
0x1094   :  { %1280 = vmatmul.mubr.msk.f32.vlgmr.msra.gmra.mrb[6].mxu0 %vm51_vm8, %v948_v35 }
0x1167   :  { %v1024_v39 = vpop.f32.mrb[6].mxu0 }
0x1168   :  { %v1029_v41 = vadd.f32 %v1024_v39, %v953_v36  ;;  %v1026_v42 = vpop.f32.mrb[7].mxu0 }
0x1169   :  { %v1030_v43 = vadd.f32 %v1026_v42, %v954_v1 }
0x116a   :  { %v1281_v3 = vmul.f32 -1.442695, %v1029_v41 }
0x116b   :  { %1509 = vtanh.f32 %v1030_v43  ;;  %v1282_v44 = vmul.f32 -1.442695, %v1030_v43  ;;  %v159_v43 = vsel %vm158_vm2, 1, %v1538_v40  ;;  %v633_v40 = vsel %vm632_vm0, %v1918_v27, -1.0 }
0x116c   :  { %1511 = vpow2.f32 %v1281_v3 }
0x1175   :  { %v1510_v8 = vpop.eup %1509 }
0x1176   :  { %v1512_v9 = vpop.eup %1511  ;;  %1046 = vrot.lane.b32.xlu1 %v1510_v8, %s1539_s24 }
0x1177   :  { %v1037_v14 = vadd.f32 1.0, %v1512_v9 }
0x1179   :  { %1513 = vrcp.f32 %v1037_v14 }
0x117a   :  { %1515 = vpow2.f32 %v1282_v44 }
0x1183   :  { %v1514_v15 = vpop.eup %1513 }
0x1184   :  { %v1068_v11 = vmul.f32 %v1514_v15, %v1510_v8  ;;  %v1516_v20 = vpop.eup %1515  ;;  %v1044_v45 = vmul.f32 %v1514_v15, %v914_v56 }
0x1185   :  { %v1038_v21 = vadd.f32 1.0, %v1516_v20 }
0x1186   :  { %1070 = vrot.lane.b32.xlu1 %v1068_v11, %s1540_s25 }
0x1187   :  { %1517 = vrcp.f32 %v1038_v21 }
0x118a   :  { %318 = vperm.xlu1 %1424, %v316_v12   ;;  %v921_v12 = vsel %vm502_vm12, %v1999_v17, -1.0  ;;  %v781_v17 = vsel %vm658_vm14, %v1960_v37, -1.0 }
0x1191   :  { %v1518_v24 = vpop.eup %1517 }
0x1192   :  { %v1067_v10 = vmul.f32 %v1518_v24, %v941_v5 }
0x11e8   :  { %v1047_v13 = vpop.permute.xlu1 %1046 }
0x11e9   :  { %v1049_v16 = vmul.f32 %v1514_v15, %v1047_v13 }
0x11eb   :  { %1051 = vrot.lane.b32.xlu0 %v1049_v16, %s1540_s25 }
0x11f8   :  { %v1071_v6 = vpop.permute.xlu1 %1070 }
0x11f9   :  { %v1073_v48 = vadd.f32 %v1071_v6, %v1067_v10 }
0x1209   :  { %v2034_v25 = vpop.permute.xlu1 %318 }
0x120a   :  { %vm320_vm11 = vcmp.eq.s32.totalorder %v2034_v25, 1 }
0x120b   :  { %v1081_v8 = vsel %vm320_vm11, %v1073_v48, 0.0  ;;  %v321_v46 = vsel %vm320_vm11, %v1782_v57, -1.0 }
0x125d   :  { %v1052_v7 = vpop.permute.xlu0 %1051 }
0x125e   :  { %v1054_v47 = vadd.f32 %v1052_v7, %v1044_v45 }
0x1260   :  { %1519 = vtanh.f32 %v1054_v47 }
0x1261   :  { %1521 = vtanh.f32 %v1073_v48 }
0x126a   :  { %v1520_v49 = vpop.eup %1519 }
0x126b   :  { %1057 = vrot.lane.b32.xlu0 %v1520_v49, %s1540_s25  ;;  %v1522_v50 = vpop.eup %1521 }
0x126f   :  { %1076 = vrot.lane.b32.xlu0 %v1522_v50, %s1540_s25 }
0x12dd   :  { %v1058_v19 = vpop.permute.xlu0 %1057 }
0x12de   :  { %v2030_v22 = vmul.f32 %v1514_v15, %v1058_v19 }
0x12e0   :  { %1085 = vrot.lane.b32.xlu1 %v2030_v22, %s1539_s24 }
0x12e1   :  { %v1077_v23 = vpop.permute.xlu0 %1076 }
0x12e2   :  { %v2036_v51 = vmul.f32 %v1518_v24, %v1077_v23 }
0x12e4   :  { %v1080_v56 = vsel %vm320_vm11, %v2036_v51, 0.0  ;;  %v1082_v60 = vsel %vm320_vm11, %v2036_v51, -1.0 }
0x1352   :  { %v1086_v59 = vpop.permute.xlu1 %1085 }
0x1353   :  { %v1088_v52 = vsel %vm169_vm7, %v1086_v59, %v1080_v56 }
0x1354   :  { %1287 = vmatmul.mubr.msk.f32.vlgmr.msra.gmra.mrb[6].mxu1 %vm51_vm8, %v1088_v52 }
0x1427   :  { %v1164_v18 = vpop.f32.mrb[6].mxu1 }
0x1428   :  { %v1169_v33 = vadd.f32 %v1164_v18, %v1093_v61  ;;  %v1166_v34 = vpop.f32.mrb[7].mxu1 }
0x1429   :  { %v1170_v35 = vadd.f32 %v1166_v34, %v1094_v62 }
0x142a   :  { %v1288_v36 = vmul.f32 -1.442695, %v1169_v33 }
0x142b   :  { %1523 = vtanh.f32 %v1170_v35  ;;  %v1289_v29 = vmul.f32 -1.442695, %v1170_v35 }
0x142c   :  { %1525 = vpow2.f32 %v1288_v36 }
0x1435   :  { %v1524_v1 = vpop.eup %1523 }
0x1436   :  { %v1526_v39 = vpop.eup %1525  ;;  %1186 = vrot.lane.b32.xlu0 %v1524_v1, %s1539_s24 }
0x1437   :  { %v1177_v41 = vadd.f32 1.0, %v1526_v39 }
0x1439   :  { %1527 = vrcp.f32 %v1177_v41 }
0x143a   :  { %1529 = vpow2.f32 %v1289_v29 }
0x1443   :  { %v1528_v26 = vpop.eup %1527 }
0x1444   :  { %v1208_v28 = vmul.f32 %v1528_v26, %v1524_v1  ;;  %v1530_v30 = vpop.eup %1529  ;;  %v1184_v13 = vmul.f32 %v1528_v26, %v1054_v47  ;;  %v942_v47 = vsel %vm476_vm4, %v2005_v55, -1.0 }
0x1445   :  { %v1178_v31 = vadd.f32 1.0, %v1530_v30 }
0x1446   :  { %1210 = vrot.lane.b32.xlu0 %v1208_v28, %s1540_s25 }
0x1447   :  { %1531 = vrcp.f32 %v1178_v31 }
0x1451   :  { %v1532_v3 = vpop.eup %1531 }
0x1452   :  { %v1207_v9 = vmul.f32 %v1532_v3, %v1081_v8 }
0x14a8   :  { %v1187_v32 = vpop.permute.xlu0 %1186 }
0x14a9   :  { %v1189_v42 = vmul.f32 %v1528_v26, %v1187_v32 }
0x14ab   :  { %1191 = vrot.lane.b32.xlu1 %v1189_v42, %s1540_s25 }
0x14af   :  { %161 = vperm.xlu1 %1424, %v159_v43  }
0x14b8   :  { %v1211_v14 = vpop.permute.xlu0 %1210 }
0x14b9   :  { %v1213_v15 = vadd.f32 %v1211_v14, %v1207_v9 }
0x14bb   :  { %1533 = vtanh.f32 %v1213_v15 }
0x14c5   :  { %v1534_v11 = vpop.eup %1533 }
0x14c6   :  { %1216 = vrot.lane.b32.xlu1 %v1534_v11, %s1540_s25 }
0x14ca   :  { %323 = vrot.lane.b32.xlu1 %v321_v46, %s1539_s24 }
0x14ce   :  { %635 = vrot.lane.b32.xlu1 %v633_v40, %s1539_s24 }
0x14d2   :  { %923 = vrot.lane.b32.xlu1 %v921_v12, %s1539_s24 }
0x151d   :  { %v1192_v16 = vpop.permute.xlu1 %1191 }
0x151e   :  { %v1194_v44 = vadd.f32 %v1192_v16, %v1184_v13 }
0x1520   :  { %1535 = vtanh.f32 %v1194_v44 }
0x152a   :  { %v1536_v20 = vpop.eup %1535 }
0x152b   :  { %1197 = vrot.lane.b32.xlu0 %v1536_v20, %s1540_s25 }
0x152e   :  { %v162_v57 = vpop.permute.xlu1 %161 }
0x152f   :  { %vm163_vm3 = vcmp.eq.s32.totalorder %v162_v57, 1 }
0x1530   :  { %v164_v21 = vsel %vm163_vm3, %v1711_v63, -1.0  ;;  %v1061_v63 = vsel %vm346_vm10, %v2030_v22, -1.0 }
0x1531   :  { %166 = vrot.lane.b32.xlu0 %v164_v21, %s1539_s24 }
0x1535   :  { %479 = vrot.lane.b32.xlu0 %v477_v53, %s1539_s24 }
0x1538   :  { %v1217_v27 = vpop.permute.xlu1 %1216 }
0x1539   :  { %v1219_v24 = vmul.f32 %v1532_v3, %v1217_v27  ;;  %783 = vrot.lane.b32.xlu0 %v781_v17, %s1539_s24 }
0x153b   :  { %v1220_v45 = vsel %vm163_vm3, %v1219_v24, -1.0 }
0x153c   :  { %v324_v5 = vpop.permute.xlu1 %323 }
0x153d   :  { %1238 = vst.msk [vmem:[%s2150_s3 + $0x8] sm:$0xff] %vm169_vm7, %v324_v5  ;;  %1063 = vrot.lane.b32.xlu0 %v1061_v63, %s1539_s24 }
0x153e   :  { %1284 = vst.msk [vmem:[%s2150_s3 + $0x8] sm:$0xff] %vm194_vm5, %v1082_v60 }
0x1540   :  { %v636_v54 = vpop.permute.xlu1 %635 }
0x1541   :  { %1256 = vst.msk [vmem:[%s2150_s3 + $0x18] sm:$0xff] %vm169_vm7, %v636_v54 }
0x1542   :  { %1266 = vst.msk [vmem:[%s2150_s3 + $0x18] sm:$0xff] %vm194_vm5, %v802_v58 }
0x1544   :  { %v924_v37 = vpop.permute.xlu1 %923 }
0x1545   :  { %1274 = vst.msk [vmem:[%s2150_s3 + $0x28] sm:$0xff] %vm169_vm7, %v924_v37 }
0x159d   :  { %v1198_v6 = vpop.permute.xlu0 %1197 }
0x159e   :  { %v1200_v7 = vmul.f32 %v1528_v26, %v1198_v6 }
0x15a0   :  { %v1201_v2 = vsel %vm189_vm6, %v1200_v7, -1.0 }
0x15a1   :  { %1203 = vrot.lane.b32.xlu1 %v1201_v2, %s1539_s24 }
0x15a3   :  { %v167_v38 = vpop.permute.xlu0 %166 }
0x15a4   :  { %170 = vst.msk [vmem:[%s2150_s3] sm:$0xff] %vm169_vm7, %v167_v38 }
0x15a5   :  { %1221 = vst.msk [vmem:[%s2150_s3] sm:$0xff] %vm194_vm5, %v1220_v45 }
0x15a7   :  { %v480_v10 = vpop.permute.xlu0 %479 }
0x15a8   :  { %1247 = vst.msk [vmem:[%s2150_s3 + $0x10] sm:$0xff] %vm169_vm7, %v480_v10 }
0x15a9   :  { %1275 = vst.msk [vmem:[%s2150_s3 + $0x10] sm:$0xff] %vm194_vm5, %v942_v47 }
0x15ab   :  { %v784_v0 = vpop.permute.xlu0 %783 }
0x15ac   :  { %1265 = vst.msk [vmem:[%s2150_s3 + $0x20] sm:$0xff] %vm169_vm7, %v784_v0 }
0x15af   :  { %v1064_v48 = vpop.permute.xlu0 %1063 }
0x15b0   :  { %1283 = vst.msk [vmem:[%s2150_s3 + $0x30] sm:$0xff] %vm169_vm7, %v1064_v48 }
0x1613   :  { %v1204_v4 = vpop.permute.xlu1 %1203 }
0x1614   :  { %1290 = vst.msk [vmem:[%s2150_s3 + $0x38] sm:$0xff] %vm169_vm7, %v1204_v4 }

</bundles_post_ra>
